<compile_context>
chip_gen: v7x
topology: tpu7x:2x2x1
jax: 0.10.0
libtpu: 0.0.40
codegen_flags: <defaults>
</compile_context>

<pallas_src>
import functools

import jax
import jax.numpy as jnp
from jax.experimental import pallas as pl
from jax.experimental.pallas import tpu as pltpu


def _round_up(x, m):
    return ((x + m - 1) // m) * m


def _pad2(a, rows, cols):
    return jnp.pad(a, ((0, rows - a.shape[0]), (0, cols - a.shape[1])))


# ----------------------------------------------------------------------------
# Fused Seq2Seq kernel: encoder recurrence + decoder recurrence + greedy
# feedback, all in one invocation (no grid).
# ----------------------------------------------------------------------------
def _seq2seq_fused_kernel(
        tf_ref,                                    # SMEM (T,) int32 (sentinel 1 at end)
        src_emb_ref, trg_emb_ref,                  # (S*Bp,Ep) / (Tm1*Bp,Ep) bf16
        enc_w_in_ref, enc_ufh_ref, enc_uhh_ref, enc_bf_ref, enc_bh_ref,
        dec_w_in_ref, dec_ufh_ref, dec_uhh_ref, dec_bf_ref, dec_bh_ref,
        dec_emb_proj_ref, wout_ref, bout_ref,
        logits_ref,                                # out (Tm1, Bp, Vp) f32
        enc_xin_scr, trg_xin_scr, xin_fb_scr,      # VMEM scratch
        *, s_len, t_steps, bp, hp, v_real):
    f32 = jnp.float32
    bf16 = jnp.bfloat16

    # ---- hoisted input projections: one big MXU-efficient matmul each ----
    enc_xin_scr[...] = jnp.dot(src_emb_ref[...], enc_w_in_ref[...],
                               preferred_element_type=f32)
    trg_xin_scr[...] = jnp.dot(trg_emb_ref[...], dec_w_in_ref[...],
                               preferred_element_type=f32)
    xin_fb_scr[...] = jnp.zeros_like(xin_fb_scr)

    # ---- hoisted broadcasts / constants (JAX does not CSE broadcast_in_dim) ----
    enc_bf = jnp.broadcast_to(enc_bf_ref[...], (bp, hp))
    enc_bh = jnp.broadcast_to(enc_bh_ref[...], (bp, hp))
    dec_bf = jnp.broadcast_to(dec_bf_ref[...], (bp, hp))
    dec_bh = jnp.broadcast_to(dec_bh_ref[...], (bp, hp))
    bout = bout_ref[...]                            # (1, Vp)
    vp = bout.shape[1]
    col = jax.lax.broadcasted_iota(jnp.int32, (bp, vp), 1)
    colf = col.astype(f32)
    vocab_mask = col < v_real

    def mgu_step(xin, h, ufh_ref, uhh_ref, b_f, b_h):
        # bf16 matmul operands (f32 accumulation); f32 gate math (v5e-safe).
        f = jax.nn.sigmoid(
            xin[:, :hp]
            + jnp.dot(h.astype(bf16), ufh_ref[...], preferred_element_type=f32)
            + b_f)
        h_tilde = jnp.tanh(
            xin[:, hp:]
            + jnp.dot((f * h).astype(bf16), uhh_ref[...],
                      preferred_element_type=f32)
            + b_h)
        return (1.0 - f) * h + f * h_tilde

    # ---- encoder recurrence (hidden carried in registers, not HBM) ----
    def enc_body(t, h):
        row = pl.multiple_of(t * bp, 8)
        xin = enc_xin_scr[pl.ds(row, bp), :]        # (Bp, 2Hp) precomputed
        return mgu_step(xin, h, enc_ufh_ref, enc_uhh_ref, enc_bf, enc_bh)

    h0 = jax.lax.fori_loop(0, s_len, enc_body, jnp.zeros((bp, hp), f32),
                           unroll=True)

    # ---- decoder recurrence (greedy projected input carried in VMEM scratch) ----
    def dec_body(t, h):
        g = tf_ref[t].astype(f32)                   # 1.0 -> teacher forcing
        row = pl.multiple_of(t * bp, 8)
        xin = g * trg_xin_scr[pl.ds(row, bp), :] + (1.0 - g) * xin_fb_scr[...]
        h_new = mgu_step(xin, h, dec_ufh_ref, dec_uhh_ref, dec_bf, dec_bh)

        logits = (jnp.dot(h_new.astype(bf16), wout_ref[...],
                          preferred_element_type=f32) + bout)   # (Bp, Vp)
        logits_ref[t] = logits

        # Greedy feedback only when the NEXT step consumes it (tf_ref carries a
        # sentinel "1" at index t_steps, so the final step always skips this).
        @pl.when(tf_ref[t + 1] == 0)
        def _():
            masked = jnp.where(vocab_mask, logits, -1e30)
            mmax = jnp.max(masked, axis=1, keepdims=True)
            # First-occurrence argmax kept as two exact reductions so the
            # tie-break matches torch.argmax (index encoded in f32; exact for
            # V < 2^24 and logits stay f32).
            idx = jnp.min(jnp.where(masked == mmax, colf, float(vp)),
                          axis=1, keepdims=True)
            onehot = jnp.where(colf == idx, 1.0, 0.0).astype(bf16)
            # one-hot @ (dec_emb @ [Wfx|Whx]) yields the next step's PROJECTED
            # input directly: embedding gather + input projection fused.
            xin_fb_scr[...] = jnp.dot(onehot, dec_emb_proj_ref[...],
                                      preferred_element_type=f32)

        return h_new

    jax.lax.fori_loop(0, t_steps, dec_body, h0, unroll=True)


# ----------------------------------------------------------------------------
# Seq2Seq forward (mirrors the PyTorch module's forward).
# ----------------------------------------------------------------------------
def seq2seq_forward(src, trg, params, tf_key, teacher_forcing_ratio=0.5):
    B, S = src.shape
    T = trg.shape[1]
    Tm1 = T - 1
    E = params["enc_emb"].shape[1]
    H = params["enc_ufh"].shape[0]
    V = params["dec_wout"].shape[1]

    Bp = _round_up(B, 8)
    Ep = _round_up(E, 128)
    Hp = _round_up(H, 128)
    Vp = _round_up(V, 128)
    bf16 = jnp.bfloat16

    # ---- pad + pack encoder weights ([Wfx | Whx] fused input projection) ----
    enc_w_in = jnp.concatenate(
        [_pad2(params["enc_wfx"], Ep, Hp), _pad2(params["enc_whx"], Ep, Hp)],
        axis=1).astype(bf16)
    enc_ufh = _pad2(params["enc_ufh"], Hp, Hp).astype(bf16)
    enc_uhh = _pad2(params["enc_uhh"], Hp, Hp).astype(bf16)
    enc_bf = _pad2(params["enc_bf"], 1, Hp)
    enc_bh = _pad2(params["enc_bh"], 1, Hp)

    # ---- pad + pack decoder weights ----
    dec_w_in = jnp.concatenate(
        [_pad2(params["dec_wfx"], Ep, Hp), _pad2(params["dec_whx"], Ep, Hp)],
        axis=1).astype(bf16)
    dec_ufh = _pad2(params["dec_ufh"], Hp, Hp).astype(bf16)
    dec_uhh = _pad2(params["dec_uhh"], Hp, Hp).astype(bf16)
    dec_bf = _pad2(params["dec_bf"], 1, Hp)
    dec_bh = _pad2(params["dec_bh"], 1, Hp)
    dec_wout = _pad2(params["dec_wout"], Hp, Vp).astype(bf16)
    dec_bout = _pad2(params["dec_bout"], 1, Vp)
    # Pre-projected decoder embedding table (weight preprocessing, done once):
    # one-hot @ dec_emb_proj gives the greedy step's projected input directly.
    dec_emb_p = _pad2(params["dec_emb"], Vp, Ep).astype(bf16)
    dec_emb_proj = jnp.dot(dec_emb_p, dec_w_in,
                           preferred_element_type=jnp.float32).astype(bf16)

    # ---- token embeddings (glue), time-major, padded, flattened, bf16 ----
    src_emb = params["enc_emb"][src]                        # (B, S, E)
    src_emb = jnp.transpose(src_emb, (1, 0, 2))             # (S, B, E)
    src_emb = jnp.pad(src_emb, ((0, 0), (0, Bp - B), (0, Ep - E)))
    src_emb_flat = src_emb.reshape(S * Bp, Ep).astype(bf16)

    trg_emb = params["dec_emb"][trg[:, :Tm1]]               # (B, T-1, E)
    trg_emb = jnp.transpose(trg_emb, (1, 0, 2))             # (T-1, B, E)
    trg_emb = jnp.pad(trg_emb, ((0, 0), (0, Bp - B), (0, Ep - E)))
    trg_emb_flat = trg_emb.reshape(Tm1 * Bp, Ep).astype(bf16)

    # ---- per-step teacher-forcing flags (+ sentinel for "next step" lookups) ----
    draws = jax.random.uniform(tf_key, (T,))
    tf = (draws[:Tm1] < teacher_forcing_ratio).astype(jnp.int32)
    tf = tf.at[0].set(1)                                    # first input is trg[:, 0]
    tf_flags = jnp.concatenate([tf, jnp.ones((1,), jnp.int32)])   # (T,)

    # ---- explicit VMEM budget: resident inputs + output + scratch + headroom ----
    vmem_inputs = [src_emb_flat, trg_emb_flat, enc_w_in, enc_ufh, enc_uhh,
                   enc_bf, enc_bh, dec_w_in, dec_ufh, dec_uhh, dec_bf, dec_bh,
                   dec_emb_proj, dec_wout, dec_bout]
    total_bytes = sum(int(a.size) * a.dtype.itemsize for a in vmem_inputs)
    total_bytes += Tm1 * Bp * Vp * 4                        # logits output
    total_bytes += (S * Bp + Tm1 * Bp + Bp) * 2 * Hp * 4    # scratch
    vmem_limit = int(max(32 << 20, min(96 << 20, 2 * total_bytes + (8 << 20))))

    kernel = functools.partial(_seq2seq_fused_kernel, s_len=S, t_steps=Tm1,
                               bp=Bp, hp=Hp, v_real=V)
    vmem = pltpu.MemorySpace.VMEM
    smem = pltpu.MemorySpace.SMEM

    logits = pl.pallas_call(
        kernel,
        out_shape=jax.ShapeDtypeStruct((Tm1, Bp, Vp), jnp.float32),
        in_specs=[pl.BlockSpec(memory_space=smem)]
                 + [pl.BlockSpec(memory_space=vmem)] * len(vmem_inputs),
        out_specs=pl.BlockSpec(memory_space=vmem),
        scratch_shapes=[
            pltpu.VMEM((S * Bp, 2 * Hp), jnp.float32),      # encoder xin (all steps)
            pltpu.VMEM((Tm1 * Bp, 2 * Hp), jnp.float32),    # teacher xin (all steps)
            pltpu.VMEM((Bp, 2 * Hp), jnp.float32),          # greedy-feedback xin
        ],
        compiler_params=pltpu.CompilerParams(vmem_limit_bytes=vmem_limit),
    )(tf_flags, src_emb_flat, trg_emb_flat,
      enc_w_in, enc_ufh, enc_uhh, enc_bf, enc_bh,
      dec_w_in, dec_ufh, dec_uhh, dec_bf, dec_bh,
      dec_emb_proj, dec_wout, dec_bout)

    logits = jnp.transpose(logits[:, :B, :V], (1, 0, 2))    # (B, T-1, V)
    outputs = jnp.concatenate(
        [jnp.zeros((B, 1, V), jnp.float32), logits], axis=1)  # outputs[:,0,:]=0
    return outputs


# ----------------------------------------------------------------------------
# Deterministic parameter construction + demo run.
# ----------------------------------------------------------------------------
def make_params(key, src_vocab, trg_vocab, emb_dim, hidden, out_vocab):
    def u(k, shape):
        return jax.random.uniform(k, shape, jnp.float32, -0.1, 0.1)

    ks = jax.random.split(key, 16)
    return {
        # encoder
        "enc_emb": u(ks[0], (src_vocab, emb_dim)),
        "enc_wfx": u(ks[1], (emb_dim, hidden)),
        "enc_ufh": u(ks[2], (hidden, hidden)),
        "enc_bf":  u(ks[3], (1, hidden)),
        "enc_whx": u(ks[4], (emb_dim, hidden)),
        "enc_uhh": u(ks[5], (hidden, hidden)),
        "enc_bh":  u(ks[6], (1, hidden)),
        # decoder
        "dec_emb": u(ks[7], (trg_vocab, emb_dim)),
        "dec_wfx": u(ks[8], (emb_dim, hidden)),
        "dec_ufh": u(ks[9], (hidden, hidden)),
        "dec_bf":  u(ks[10], (1, hidden)),
        "dec_whx": u(ks[11], (emb_dim, hidden)),
        "dec_uhh": u(ks[12], (hidden, hidden)),
        "dec_bh":  u(ks[13], (1, hidden)),
        "dec_wout": u(ks[14], (hidden, out_vocab)),
        "dec_bout": u(ks[15], (1, out_vocab)),
    }


if __name__ == "__main__":
    B, S, T = 2, 8, 8          # batch, src len, trg len
    E, H = 32, 32              # embedding dim, hidden dim
    SRC_V, TRG_V = 16, 16      # vocab sizes (decoder.output_size == TRG_V)

    root = jax.random.PRNGKey(0)
    k_params, k_src, k_trg, k_tf = jax.random.split(root, 4)

    params = make_params(k_params, SRC_V, TRG_V, E, H, TRG_V)
    src = jax.random.randint(k_src, (B, S), 0, SRC_V, dtype=jnp.int32)
    trg = jax.random.randint(k_trg, (B, T), 0, TRG_V, dtype=jnp.int32)

    outputs = seq2seq_forward(src, trg, params, k_tf, teacher_forcing_ratio=0.5)
    outputs = jax.block_until_ready(outputs)

    assert outputs.shape == (B, T, TRG_V)
    assert bool(jnp.all(outputs[:, 0, :] == 0.0))     # first timestep zeros
    assert bool(jnp.all(jnp.isfinite(outputs)))
    print("KERNEL_OK")
</pallas_src>

<mosaic_0001>
module attributes {stable_mosaic.version = 11 : i64} {
  func.func @_seq2seq_fused_kernel(%arg0: memref<8xi32, #tpu.memory_space<smem>>, %arg1: memref<64x128xbf16, #tpu.memory_space<vmem>>, %arg2: memref<56x128xbf16, #tpu.memory_space<vmem>>, %arg3: memref<128x256xbf16, #tpu.memory_space<vmem>>, %arg4: memref<128x128xbf16, #tpu.memory_space<vmem>>, %arg5: memref<128x128xbf16, #tpu.memory_space<vmem>>, %arg6: memref<1x128xf32, #tpu.memory_space<vmem>>, %arg7: memref<1x128xf32, #tpu.memory_space<vmem>>, %arg8: memref<128x256xbf16, #tpu.memory_space<vmem>>, %arg9: memref<128x128xbf16, #tpu.memory_space<vmem>>, %arg10: memref<128x128xbf16, #tpu.memory_space<vmem>>, %arg11: memref<1x128xf32, #tpu.memory_space<vmem>>, %arg12: memref<1x128xf32, #tpu.memory_space<vmem>>, %arg13: memref<128x256xbf16, #tpu.memory_space<vmem>>, %arg14: memref<128x128xbf16, #tpu.memory_space<vmem>>, %arg15: memref<1x128xf32, #tpu.memory_space<vmem>>, %arg16: memref<7x8x128xf32, #tpu.memory_space<vmem>>, %arg17: memref<64x256xf32, #tpu.memory_space<vmem>>, %arg18: memref<56x256xf32, #tpu.memory_space<vmem>>, %arg19: memref<8x256xf32, #tpu.memory_space<vmem>>) attributes {dimension_semantics = [], scalar_prefetch = 0 : i64, scratch_operands = 3 : i64, tpu.core_type = #tpu.core_type<tc>} {
    %c0 = arith.constant 0 : index
    %c0_0 = arith.constant 0 : index
    %0 = vector.load %arg1[%c0, %c0_0] : memref<64x128xbf16, #tpu.memory_space<vmem>>, vector<64x128xbf16>
    %c0_1 = arith.constant 0 : index
    %c0_2 = arith.constant 0 : index
    %1 = vector.load %arg3[%c0_1, %c0_2] : memref<128x256xbf16, #tpu.memory_space<vmem>>, vector<128x256xbf16>
    %cst = arith.constant dense<0.000000e+00> : vector<64x256xf32>
    %2 = tpu.matmul %0, %1, %cst {dimension_numbers = #tpu.dot_dimension_numbers<[1], [0], [0], [1], [0, 0, 1, 1], [], []>} : vector<64x128xbf16>, vector<128x256xbf16>, vector<64x256xf32> -> vector<64x256xf32>
    %c0_3 = arith.constant 0 : index
    %c0_4 = arith.constant 0 : index
    %3 = vector.load %arg17[%c0_3, %c0_4] : memref<64x256xf32, #tpu.memory_space<vmem>>, vector<64x256xf32>
    tpu.vector_store %arg17[%c0_3, %c0_4], %2 {strides = array<i32>} : memref<64x256xf32, #tpu.memory_space<vmem>>, vector<64x256xf32>,
    %c0_5 = arith.constant 0 : index
    %c0_6 = arith.constant 0 : index
    %4 = vector.load %arg2[%c0_5, %c0_6] : memref<56x128xbf16, #tpu.memory_space<vmem>>, vector<56x128xbf16>
    %c0_7 = arith.constant 0 : index
    %c0_8 = arith.constant 0 : index
    %5 = vector.load %arg8[%c0_7, %c0_8] : memref<128x256xbf16, #tpu.memory_space<vmem>>, vector<128x256xbf16>
    %cst_9 = arith.constant dense<0.000000e+00> : vector<56x256xf32>
    %6 = tpu.matmul %4, %5, %cst_9 {dimension_numbers = #tpu.dot_dimension_numbers<[1], [0], [0], [1], [0, 0, 1, 1], [], []>} : vector<56x128xbf16>, vector<128x256xbf16>, vector<56x256xf32> -> vector<56x256xf32>
    %c0_10 = arith.constant 0 : index
    %c0_11 = arith.constant 0 : index
    %7 = vector.load %arg18[%c0_10, %c0_11] : memref<56x256xf32, #tpu.memory_space<vmem>>, vector<56x256xf32>
    tpu.vector_store %arg18[%c0_10, %c0_11], %6 {strides = array<i32>} : memref<56x256xf32, #tpu.memory_space<vmem>>, vector<56x256xf32>,
    %cst_12 = arith.constant 0.000000e+00 : f32
    %8 = vector.broadcast %cst_12 : f32 to vector<8x256xf32>
    %c0_13 = arith.constant 0 : index
    %c0_14 = arith.constant 0 : index
    %9 = vector.load %arg19[%c0_13, %c0_14] : memref<8x256xf32, #tpu.memory_space<vmem>>, vector<8x256xf32>
    tpu.vector_store %arg19[%c0_13, %c0_14], %8 {strides = array<i32>} : memref<8x256xf32, #tpu.memory_space<vmem>>, vector<8x256xf32>,
    %c0_15 = arith.constant 0 : index
    %c0_16 = arith.constant 0 : index
    %10 = vector.load %arg6[%c0_15, %c0_16] : memref<1x128xf32, #tpu.memory_space<vmem>>, vector<1x128xf32>
    %11 = vector.shape_cast %10 : vector<1x128xf32> to vector<1x128xf32>
    %12 = vector.broadcast %11 : vector<1x128xf32> to vector<8x128xf32>
    %c0_17 = arith.constant 0 : index
    %c0_18 = arith.constant 0 : index
    %13 = vector.load %arg7[%c0_17, %c0_18] : memref<1x128xf32, #tpu.memory_space<vmem>>, vector<1x128xf32>
    %14 = vector.shape_cast %13 : vector<1x128xf32> to vector<1x128xf32>
    %15 = vector.broadcast %14 : vector<1x128xf32> to vector<8x128xf32>
    %c0_19 = arith.constant 0 : index
    %c0_20 = arith.constant 0 : index
    %16 = vector.load %arg11[%c0_19, %c0_20] : memref<1x128xf32, #tpu.memory_space<vmem>>, vector<1x128xf32>
    %17 = vector.shape_cast %16 : vector<1x128xf32> to vector<1x128xf32>
    %18 = vector.broadcast %17 : vector<1x128xf32> to vector<8x128xf32>
    %c0_21 = arith.constant 0 : index
    %c0_22 = arith.constant 0 : index
    %19 = vector.load %arg12[%c0_21, %c0_22] : memref<1x128xf32, #tpu.memory_space<vmem>>, vector<1x128xf32>
    %20 = vector.shape_cast %19 : vector<1x128xf32> to vector<1x128xf32>
    %21 = vector.broadcast %20 : vector<1x128xf32> to vector<8x128xf32>
    %c0_23 = arith.constant 0 : index
    %c0_24 = arith.constant 0 : index
    %22 = vector.load %arg15[%c0_23, %c0_24] : memref<1x128xf32, #tpu.memory_space<vmem>>, vector<1x128xf32>
    %23 = tpu.iota {dimensions = array<i32: 1>} : vector<8x128xi32>
    %24 = arith.sitofp %23 : vector<8x128xi32> to vector<8x128xf32>
    %c16_i32 = arith.constant 16 : i32
    %25 = vector.broadcast %c16_i32 : i32 to vector<8x128xi32>
    %26 = arith.cmpi slt, %23, %25 : vector<8x128xi32>
    %cst_25 = arith.constant 0.000000e+00 : f32
    %27 = vector.broadcast %cst_25 : f32 to vector<8x128xf32>
    %c0_i32 = arith.constant 0 : i32
    %c8_i32 = arith.constant 8 : i32
    %28 = arith.muli %c0_i32, %c8_i32 : i32
    %29 = tpu.assume_multiple %28, 8 : i32
    %30 = arith.index_cast %29 : i32 to index
    %c0_26 = arith.constant 0 : index
    %31 = vector.load %arg17[%30, %c0_26] : memref<64x256xf32, #tpu.memory_space<vmem>>, vector<8x256xf32>
    %32 = vector.extract_strided_slice %31 {offsets = [0, 0], sizes = [8, 128], strides = [1, 1]} : vector<8x256xf32> to vector<8x128xf32>
    %33 = arith.truncf %27 : vector<8x128xf32> to vector<8x128xbf16>
    %c0_27 = arith.constant 0 : index
    %c0_28 = arith.constant 0 : index
    %34 = vector.load %arg4[%c0_27, %c0_28] : memref<128x128xbf16, #tpu.memory_space<vmem>>, vector<128x128xbf16>
    %cst_29 = arith.constant dense<0.000000e+00> : vector<8x128xf32>
    %35 = tpu.matmul %33, %34, %cst_29 {dimension_numbers = #tpu.dot_dimension_numbers<[1], [0], [0], [1], [0, 0, 1, 1], [], []>} : vector<8x128xbf16>, vector<128x128xbf16>, vector<8x128xf32> -> vector<8x128xf32>
    %36 = arith.addf %32, %35 : vector<8x128xf32>
    %37 = arith.addf %36, %12 : vector<8x128xf32>
    %38 = arith.negf %37 : vector<8x128xf32>
    %39 = math.exp %38 : vector<8x128xf32>
    %cst_30 = arith.constant 1.000000e+00 : f32
    %40 = vector.broadcast %cst_30 : f32 to vector<8x128xf32>
    %41 = arith.addf %40, %39 : vector<8x128xf32>
    %42 = arith.divf %40, %41 : vector<8x128xf32>
    %43 = vector.extract_strided_slice %31 {offsets = [0, 128], sizes = [8, 128], strides = [1, 1]} : vector<8x256xf32> to vector<8x128xf32>
    %44 = arith.mulf %42, %27 : vector<8x128xf32>
    %45 = arith.truncf %44 : vector<8x128xf32> to vector<8x128xbf16>
    %c0_31 = arith.constant 0 : index
    %c0_32 = arith.constant 0 : index
    %46 = vector.load %arg5[%c0_31, %c0_32] : memref<128x128xbf16, #tpu.memory_space<vmem>>, vector<128x128xbf16>
    %cst_33 = arith.constant dense<0.000000e+00> : vector<8x128xf32>
    %47 = tpu.matmul %45, %46, %cst_33 {dimension_numbers = #tpu.dot_dimension_numbers<[1], [0], [0], [1], [0, 0, 1, 1], [], []>} : vector<8x128xbf16>, vector<128x128xbf16>, vector<8x128xf32> -> vector<8x128xf32>
    %48 = arith.addf %43, %47 : vector<8x128xf32>
    %49 = arith.addf %48, %15 : vector<8x128xf32>
    %50 = math.tanh %49 : vector<8x128xf32>
    %cst_34 = arith.constant 1.000000e+00 : f32
    %51 = vector.broadcast %cst_34 : f32 to vector<8x128xf32>
    %52 = arith.subf %51, %42 : vector<8x128xf32>
    %53 = arith.mulf %52, %27 : vector<8x128xf32>
    %54 = arith.mulf %42, %50 : vector<8x128xf32>
    %55 = arith.addf %53, %54 : vector<8x128xf32>
    %c1_i32 = arith.constant 1 : i32
    %c8_i32_35 = arith.constant 8 : i32
    %56 = arith.muli %c1_i32, %c8_i32_35 : i32
    %57 = tpu.assume_multiple %56, 8 : i32
    %58 = arith.index_cast %57 : i32 to index
    %c0_36 = arith.constant 0 : index
    %59 = vector.load %arg17[%58, %c0_36] : memref<64x256xf32, #tpu.memory_space<vmem>>, vector<8x256xf32>
    %60 = vector.extract_strided_slice %59 {offsets = [0, 0], sizes = [8, 128], strides = [1, 1]} : vector<8x256xf32> to vector<8x128xf32>
    %61 = arith.truncf %55 : vector<8x128xf32> to vector<8x128xbf16>
    %c0_37 = arith.constant 0 : index
    %c0_38 = arith.constant 0 : index
    %62 = vector.load %arg4[%c0_37, %c0_38] : memref<128x128xbf16, #tpu.memory_space<vmem>>, vector<128x128xbf16>
    %cst_39 = arith.constant dense<0.000000e+00> : vector<8x128xf32>
    %63 = tpu.matmul %61, %62, %cst_39 {dimension_numbers = #tpu.dot_dimension_numbers<[1], [0], [0], [1], [0, 0, 1, 1], [], []>} : vector<8x128xbf16>, vector<128x128xbf16>, vector<8x128xf32> -> vector<8x128xf32>
    %64 = arith.addf %60, %63 : vector<8x128xf32>
    %65 = arith.addf %64, %12 : vector<8x128xf32>
    %66 = arith.negf %65 : vector<8x128xf32>
    %67 = math.exp %66 : vector<8x128xf32>
    %cst_40 = arith.constant 1.000000e+00 : f32
    %68 = vector.broadcast %cst_40 : f32 to vector<8x128xf32>
    %69 = arith.addf %68, %67 : vector<8x128xf32>
    %70 = arith.divf %68, %69 : vector<8x128xf32>
    %71 = vector.extract_strided_slice %59 {offsets = [0, 128], sizes = [8, 128], strides = [1, 1]} : vector<8x256xf32> to vector<8x128xf32>
    %72 = arith.mulf %70, %55 : vector<8x128xf32>
    %73 = arith.truncf %72 : vector<8x128xf32> to vector<8x128xbf16>
    %c0_41 = arith.constant 0 : index
    %c0_42 = arith.constant 0 : index
    %74 = vector.load %arg5[%c0_41, %c0_42] : memref<128x128xbf16, #tpu.memory_space<vmem>>, vector<128x128xbf16>
    %cst_43 = arith.constant dense<0.000000e+00> : vector<8x128xf32>
    %75 = tpu.matmul %73, %74, %cst_43 {dimension_numbers = #tpu.dot_dimension_numbers<[1], [0], [0], [1], [0, 0, 1, 1], [], []>} : vector<8x128xbf16>, vector<128x128xbf16>, vector<8x128xf32> -> vector<8x128xf32>
    %76 = arith.addf %71, %75 : vector<8x128xf32>
    %77 = arith.addf %76, %15 : vector<8x128xf32>
    %78 = math.tanh %77 : vector<8x128xf32>
    %cst_44 = arith.constant 1.000000e+00 : f32
    %79 = vector.broadcast %cst_44 : f32 to vector<8x128xf32>
    %80 = arith.subf %79, %70 : vector<8x128xf32>
    %81 = arith.mulf %80, %55 : vector<8x128xf32>
    %82 = arith.mulf %70, %78 : vector<8x128xf32>
    %83 = arith.addf %81, %82 : vector<8x128xf32>
    %c2_i32 = arith.constant 2 : i32
    %c8_i32_45 = arith.constant 8 : i32
    %84 = arith.muli %c2_i32, %c8_i32_45 : i32
    %85 = tpu.assume_multiple %84, 8 : i32
    %86 = arith.index_cast %85 : i32 to index
    %c0_46 = arith.constant 0 : index
    %87 = vector.load %arg17[%86, %c0_46] : memref<64x256xf32, #tpu.memory_space<vmem>>, vector<8x256xf32>
    %88 = vector.extract_strided_slice %87 {offsets = [0, 0], sizes = [8, 128], strides = [1, 1]} : vector<8x256xf32> to vector<8x128xf32>
    %89 = arith.truncf %83 : vector<8x128xf32> to vector<8x128xbf16>
    %c0_47 = arith.constant 0 : index
    %c0_48 = arith.constant 0 : index
    %90 = vector.load %arg4[%c0_47, %c0_48] : memref<128x128xbf16, #tpu.memory_space<vmem>>, vector<128x128xbf16>
    %cst_49 = arith.constant dense<0.000000e+00> : vector<8x128xf32>
    %91 = tpu.matmul %89, %90, %cst_49 {dimension_numbers = #tpu.dot_dimension_numbers<[1], [0], [0], [1], [0, 0, 1, 1], [], []>} : vector<8x128xbf16>, vector<128x128xbf16>, vector<8x128xf32> -> vector<8x128xf32>
    %92 = arith.addf %88, %91 : vector<8x128xf32>
    %93 = arith.addf %92, %12 : vector<8x128xf32>
    %94 = arith.negf %93 : vector<8x128xf32>
    %95 = math.exp %94 : vector<8x128xf32>
    %cst_50 = arith.constant 1.000000e+00 : f32
    %96 = vector.broadcast %cst_50 : f32 to vector<8x128xf32>
    %97 = arith.addf %96, %95 : vector<8x128xf32>
    %98 = arith.divf %96, %97 : vector<8x128xf32>
    %99 = vector.extract_strided_slice %87 {offsets = [0, 128], sizes = [8, 128], strides = [1, 1]} : vector<8x256xf32> to vector<8x128xf32>
    %100 = arith.mulf %98, %83 : vector<8x128xf32>
    %101 = arith.truncf %100 : vector<8x128xf32> to vector<8x128xbf16>
    %c0_51 = arith.constant 0 : index
    %c0_52 = arith.constant 0 : index
    %102 = vector.load %arg5[%c0_51, %c0_52] : memref<128x128xbf16, #tpu.memory_space<vmem>>, vector<128x128xbf16>
    %cst_53 = arith.constant dense<0.000000e+00> : vector<8x128xf32>
    %103 = tpu.matmul %101, %102, %cst_53 {dimension_numbers = #tpu.dot_dimension_numbers<[1], [0], [0], [1], [0, 0, 1, 1], [], []>} : vector<8x128xbf16>, vector<128x128xbf16>, vector<8x128xf32> -> vector<8x128xf32>
    %104 = arith.addf %99, %103 : vector<8x128xf32>
    %105 = arith.addf %104, %15 : vector<8x128xf32>
    %106 = math.tanh %105 : vector<8x128xf32>
    %cst_54 = arith.constant 1.000000e+00 : f32
    %107 = vector.broadcast %cst_54 : f32 to vector<8x128xf32>
    %108 = arith.subf %107, %98 : vector<8x128xf32>
    %109 = arith.mulf %108, %83 : vector<8x128xf32>
    %110 = arith.mulf %98, %106 : vector<8x128xf32>
    %111 = arith.addf %109, %110 : vector<8x128xf32>
    %c3_i32 = arith.constant 3 : i32
    %c8_i32_55 = arith.constant 8 : i32
    %112 = arith.muli %c3_i32, %c8_i32_55 : i32
    %113 = tpu.assume_multiple %112, 8 : i32
    %114 = arith.index_cast %113 : i32 to index
    %c0_56 = arith.constant 0 : index
    %115 = vector.load %arg17[%114, %c0_56] : memref<64x256xf32, #tpu.memory_space<vmem>>, vector<8x256xf32>
    %116 = vector.extract_strided_slice %115 {offsets = [0, 0], sizes = [8, 128], strides = [1, 1]} : vector<8x256xf32> to vector<8x128xf32>
    %117 = arith.truncf %111 : vector<8x128xf32> to vector<8x128xbf16>
    %c0_57 = arith.constant 0 : index
    %c0_58 = arith.constant 0 : index
    %118 = vector.load %arg4[%c0_57, %c0_58] : memref<128x128xbf16, #tpu.memory_space<vmem>>, vector<128x128xbf16>
    %cst_59 = arith.constant dense<0.000000e+00> : vector<8x128xf32>
    %119 = tpu.matmul %117, %118, %cst_59 {dimension_numbers = #tpu.dot_dimension_numbers<[1], [0], [0], [1], [0, 0, 1, 1], [], []>} : vector<8x128xbf16>, vector<128x128xbf16>, vector<8x128xf32> -> vector<8x128xf32>
    %120 = arith.addf %116, %119 : vector<8x128xf32>
    %121 = arith.addf %120, %12 : vector<8x128xf32>
    %122 = arith.negf %121 : vector<8x128xf32>
    %123 = math.exp %122 : vector<8x128xf32>
    %cst_60 = arith.constant 1.000000e+00 : f32
    %124 = vector.broadcast %cst_60 : f32 to vector<8x128xf32>
    %125 = arith.addf %124, %123 : vector<8x128xf32>
    %126 = arith.divf %124, %125 : vector<8x128xf32>
    %127 = vector.extract_strided_slice %115 {offsets = [0, 128], sizes = [8, 128], strides = [1, 1]} : vector<8x256xf32> to vector<8x128xf32>
    %128 = arith.mulf %126, %111 : vector<8x128xf32>
    %129 = arith.truncf %128 : vector<8x128xf32> to vector<8x128xbf16>
    %c0_61 = arith.constant 0 : index
    %c0_62 = arith.constant 0 : index
    %130 = vector.load %arg5[%c0_61, %c0_62] : memref<128x128xbf16, #tpu.memory_space<vmem>>, vector<128x128xbf16>
    %cst_63 = arith.constant dense<0.000000e+00> : vector<8x128xf32>
    %131 = tpu.matmul %129, %130, %cst_63 {dimension_numbers = #tpu.dot_dimension_numbers<[1], [0], [0], [1], [0, 0, 1, 1], [], []>} : vector<8x128xbf16>, vector<128x128xbf16>, vector<8x128xf32> -> vector<8x128xf32>
    %132 = arith.addf %127, %131 : vector<8x128xf32>
    %133 = arith.addf %132, %15 : vector<8x128xf32>
    %134 = math.tanh %133 : vector<8x128xf32>
    %cst_64 = arith.constant 1.000000e+00 : f32
    %135 = vector.broadcast %cst_64 : f32 to vector<8x128xf32>
    %136 = arith.subf %135, %126 : vector<8x128xf32>
    %137 = arith.mulf %136, %111 : vector<8x128xf32>
    %138 = arith.mulf %126, %134 : vector<8x128xf32>
    %139 = arith.addf %137, %138 : vector<8x128xf32>
    %c4_i32 = arith.constant 4 : i32
    %c8_i32_65 = arith.constant 8 : i32
    %140 = arith.muli %c4_i32, %c8_i32_65 : i32
    %141 = tpu.assume_multiple %140, 8 : i32
    %142 = arith.index_cast %141 : i32 to index
    %c0_66 = arith.constant 0 : index
    %143 = vector.load %arg17[%142, %c0_66] : memref<64x256xf32, #tpu.memory_space<vmem>>, vector<8x256xf32>
    %144 = vector.extract_strided_slice %143 {offsets = [0, 0], sizes = [8, 128], strides = [1, 1]} : vector<8x256xf32> to vector<8x128xf32>
    %145 = arith.truncf %139 : vector<8x128xf32> to vector<8x128xbf16>
    %c0_67 = arith.constant 0 : index
    %c0_68 = arith.constant 0 : index
    %146 = vector.load %arg4[%c0_67, %c0_68] : memref<128x128xbf16, #tpu.memory_space<vmem>>, vector<128x128xbf16>
    %cst_69 = arith.constant dense<0.000000e+00> : vector<8x128xf32>
    %147 = tpu.matmul %145, %146, %cst_69 {dimension_numbers = #tpu.dot_dimension_numbers<[1], [0], [0], [1], [0, 0, 1, 1], [], []>} : vector<8x128xbf16>, vector<128x128xbf16>, vector<8x128xf32> -> vector<8x128xf32>
    %148 = arith.addf %144, %147 : vector<8x128xf32>
    %149 = arith.addf %148, %12 : vector<8x128xf32>
    %150 = arith.negf %149 : vector<8x128xf32>
    %151 = math.exp %150 : vector<8x128xf32>
    %cst_70 = arith.constant 1.000000e+00 : f32
    %152 = vector.broadcast %cst_70 : f32 to vector<8x128xf32>
    %153 = arith.addf %152, %151 : vector<8x128xf32>
    %154 = arith.divf %152, %153 : vector<8x128xf32>
    %155 = vector.extract_strided_slice %143 {offsets = [0, 128], sizes = [8, 128], strides = [1, 1]} : vector<8x256xf32> to vector<8x128xf32>
    %156 = arith.mulf %154, %139 : vector<8x128xf32>
    %157 = arith.truncf %156 : vector<8x128xf32> to vector<8x128xbf16>
    %c0_71 = arith.constant 0 : index
    %c0_72 = arith.constant 0 : index
    %158 = vector.load %arg5[%c0_71, %c0_72] : memref<128x128xbf16, #tpu.memory_space<vmem>>, vector<128x128xbf16>
    %cst_73 = arith.constant dense<0.000000e+00> : vector<8x128xf32>
    %159 = tpu.matmul %157, %158, %cst_73 {dimension_numbers = #tpu.dot_dimension_numbers<[1], [0], [0], [1], [0, 0, 1, 1], [], []>} : vector<8x128xbf16>, vector<128x128xbf16>, vector<8x128xf32> -> vector<8x128xf32>
    %160 = arith.addf %155, %159 : vector<8x128xf32>
    %161 = arith.addf %160, %15 : vector<8x128xf32>
    %162 = math.tanh %161 : vector<8x128xf32>
    %cst_74 = arith.constant 1.000000e+00 : f32
    %163 = vector.broadcast %cst_74 : f32 to vector<8x128xf32>
    %164 = arith.subf %163, %154 : vector<8x128xf32>
    %165 = arith.mulf %164, %139 : vector<8x128xf32>
    %166 = arith.mulf %154, %162 : vector<8x128xf32>
    %167 = arith.addf %165, %166 : vector<8x128xf32>
    %c5_i32 = arith.constant 5 : i32
    %c8_i32_75 = arith.constant 8 : i32
    %168 = arith.muli %c5_i32, %c8_i32_75 : i32
    %169 = tpu.assume_multiple %168, 8 : i32
    %170 = arith.index_cast %169 : i32 to index
    %c0_76 = arith.constant 0 : index
    %171 = vector.load %arg17[%170, %c0_76] : memref<64x256xf32, #tpu.memory_space<vmem>>, vector<8x256xf32>
    %172 = vector.extract_strided_slice %171 {offsets = [0, 0], sizes = [8, 128], strides = [1, 1]} : vector<8x256xf32> to vector<8x128xf32>
    %173 = arith.truncf %167 : vector<8x128xf32> to vector<8x128xbf16>
    %c0_77 = arith.constant 0 : index
    %c0_78 = arith.constant 0 : index
    %174 = vector.load %arg4[%c0_77, %c0_78] : memref<128x128xbf16, #tpu.memory_space<vmem>>, vector<128x128xbf16>
    %cst_79 = arith.constant dense<0.000000e+00> : vector<8x128xf32>
    %175 = tpu.matmul %173, %174, %cst_79 {dimension_numbers = #tpu.dot_dimension_numbers<[1], [0], [0], [1], [0, 0, 1, 1], [], []>} : vector<8x128xbf16>, vector<128x128xbf16>, vector<8x128xf32> -> vector<8x128xf32>
    %176 = arith.addf %172, %175 : vector<8x128xf32>
    %177 = arith.addf %176, %12 : vector<8x128xf32>
    %178 = arith.negf %177 : vector<8x128xf32>
    %179 = math.exp %178 : vector<8x128xf32>
    %cst_80 = arith.constant 1.000000e+00 : f32
    %180 = vector.broadcast %cst_80 : f32 to vector<8x128xf32>
    %181 = arith.addf %180, %179 : vector<8x128xf32>
    %182 = arith.divf %180, %181 : vector<8x128xf32>
    %183 = vector.extract_strided_slice %171 {offsets = [0, 128], sizes = [8, 128], strides = [1, 1]} : vector<8x256xf32> to vector<8x128xf32>
    %184 = arith.mulf %182, %167 : vector<8x128xf32>
    %185 = arith.truncf %184 : vector<8x128xf32> to vector<8x128xbf16>
    %c0_81 = arith.constant 0 : index
    %c0_82 = arith.constant 0 : index
    %186 = vector.load %arg5[%c0_81, %c0_82] : memref<128x128xbf16, #tpu.memory_space<vmem>>, vector<128x128xbf16>
    %cst_83 = arith.constant dense<0.000000e+00> : vector<8x128xf32>
    %187 = tpu.matmul %185, %186, %cst_83 {dimension_numbers = #tpu.dot_dimension_numbers<[1], [0], [0], [1], [0, 0, 1, 1], [], []>} : vector<8x128xbf16>, vector<128x128xbf16>, vector<8x128xf32> -> vector<8x128xf32>
    %188 = arith.addf %183, %187 : vector<8x128xf32>
    %189 = arith.addf %188, %15 : vector<8x128xf32>
    %190 = math.tanh %189 : vector<8x128xf32>
    %cst_84 = arith.constant 1.000000e+00 : f32
    %191 = vector.broadcast %cst_84 : f32 to vector<8x128xf32>
    %192 = arith.subf %191, %182 : vector<8x128xf32>
    %193 = arith.mulf %192, %167 : vector<8x128xf32>
    %194 = arith.mulf %182, %190 : vector<8x128xf32>
    %195 = arith.addf %193, %194 : vector<8x128xf32>
    %c6_i32 = arith.constant 6 : i32
    %c8_i32_85 = arith.constant 8 : i32
    %196 = arith.muli %c6_i32, %c8_i32_85 : i32
    %197 = tpu.assume_multiple %196, 8 : i32
    %198 = arith.index_cast %197 : i32 to index
    %c0_86 = arith.constant 0 : index
    %199 = vector.load %arg17[%198, %c0_86] : memref<64x256xf32, #tpu.memory_space<vmem>>, vector<8x256xf32>
    %200 = vector.extract_strided_slice %199 {offsets = [0, 0], sizes = [8, 128], strides = [1, 1]} : vector<8x256xf32> to vector<8x128xf32>
    %201 = arith.truncf %195 : vector<8x128xf32> to vector<8x128xbf16>
    %c0_87 = arith.constant 0 : index
    %c0_88 = arith.constant 0 : index
    %202 = vector.load %arg4[%c0_87, %c0_88] : memref<128x128xbf16, #tpu.memory_space<vmem>>, vector<128x128xbf16>
    %cst_89 = arith.constant dense<0.000000e+00> : vector<8x128xf32>
    %203 = tpu.matmul %201, %202, %cst_89 {dimension_numbers = #tpu.dot_dimension_numbers<[1], [0], [0], [1], [0, 0, 1, 1], [], []>} : vector<8x128xbf16>, vector<128x128xbf16>, vector<8x128xf32> -> vector<8x128xf32>
    %204 = arith.addf %200, %203 : vector<8x128xf32>
    %205 = arith.addf %204, %12 : vector<8x128xf32>
    %206 = arith.negf %205 : vector<8x128xf32>
    %207 = math.exp %206 : vector<8x128xf32>
    %cst_90 = arith.constant 1.000000e+00 : f32
    %208 = vector.broadcast %cst_90 : f32 to vector<8x128xf32>
    %209 = arith.addf %208, %207 : vector<8x128xf32>
    %210 = arith.divf %208, %209 : vector<8x128xf32>
    %211 = vector.extract_strided_slice %199 {offsets = [0, 128], sizes = [8, 128], strides = [1, 1]} : vector<8x256xf32> to vector<8x128xf32>
    %212 = arith.mulf %210, %195 : vector<8x128xf32>
    %213 = arith.truncf %212 : vector<8x128xf32> to vector<8x128xbf16>
    %c0_91 = arith.constant 0 : index
    %c0_92 = arith.constant 0 : index
    %214 = vector.load %arg5[%c0_91, %c0_92] : memref<128x128xbf16, #tpu.memory_space<vmem>>, vector<128x128xbf16>
    %cst_93 = arith.constant dense<0.000000e+00> : vector<8x128xf32>
    %215 = tpu.matmul %213, %214, %cst_93 {dimension_numbers = #tpu.dot_dimension_numbers<[1], [0], [0], [1], [0, 0, 1, 1], [], []>} : vector<8x128xbf16>, vector<128x128xbf16>, vector<8x128xf32> -> vector<8x128xf32>
    %216 = arith.addf %211, %215 : vector<8x128xf32>
    %217 = arith.addf %216, %15 : vector<8x128xf32>
    %218 = math.tanh %217 : vector<8x128xf32>
    %cst_94 = arith.constant 1.000000e+00 : f32
    %219 = vector.broadcast %cst_94 : f32 to vector<8x128xf32>
    %220 = arith.subf %219, %210 : vector<8x128xf32>
    %221 = arith.mulf %220, %195 : vector<8x128xf32>
    %222 = arith.mulf %210, %218 : vector<8x128xf32>
    %223 = arith.addf %221, %222 : vector<8x128xf32>
    %c7_i32 = arith.constant 7 : i32
    %c8_i32_95 = arith.constant 8 : i32
    %224 = arith.muli %c7_i32, %c8_i32_95 : i32
    %225 = tpu.assume_multiple %224, 8 : i32
    %226 = arith.index_cast %225 : i32 to index
    %c0_96 = arith.constant 0 : index
    %227 = vector.load %arg17[%226, %c0_96] : memref<64x256xf32, #tpu.memory_space<vmem>>, vector<8x256xf32>
    %228 = vector.extract_strided_slice %227 {offsets = [0, 0], sizes = [8, 128], strides = [1, 1]} : vector<8x256xf32> to vector<8x128xf32>
    %229 = arith.truncf %223 : vector<8x128xf32> to vector<8x128xbf16>
    %c0_97 = arith.constant 0 : index
    %c0_98 = arith.constant 0 : index
    %230 = vector.load %arg4[%c0_97, %c0_98] : memref<128x128xbf16, #tpu.memory_space<vmem>>, vector<128x128xbf16>
    %cst_99 = arith.constant dense<0.000000e+00> : vector<8x128xf32>
    %231 = tpu.matmul %229, %230, %cst_99 {dimension_numbers = #tpu.dot_dimension_numbers<[1], [0], [0], [1], [0, 0, 1, 1], [], []>} : vector<8x128xbf16>, vector<128x128xbf16>, vector<8x128xf32> -> vector<8x128xf32>
    %232 = arith.addf %228, %231 : vector<8x128xf32>
    %233 = arith.addf %232, %12 : vector<8x128xf32>
    %234 = arith.negf %233 : vector<8x128xf32>
    %235 = math.exp %234 : vector<8x128xf32>
    %cst_100 = arith.constant 1.000000e+00 : f32
    %236 = vector.broadcast %cst_100 : f32 to vector<8x128xf32>
    %237 = arith.addf %236, %235 : vector<8x128xf32>
    %238 = arith.divf %236, %237 : vector<8x128xf32>
    %239 = vector.extract_strided_slice %227 {offsets = [0, 128], sizes = [8, 128], strides = [1, 1]} : vector<8x256xf32> to vector<8x128xf32>
    %240 = arith.mulf %238, %223 : vector<8x128xf32>
    %241 = arith.truncf %240 : vector<8x128xf32> to vector<8x128xbf16>
    %c0_101 = arith.constant 0 : index
    %c0_102 = arith.constant 0 : index
    %242 = vector.load %arg5[%c0_101, %c0_102] : memref<128x128xbf16, #tpu.memory_space<vmem>>, vector<128x128xbf16>
    %cst_103 = arith.constant dense<0.000000e+00> : vector<8x128xf32>
    %243 = tpu.matmul %241, %242, %cst_103 {dimension_numbers = #tpu.dot_dimension_numbers<[1], [0], [0], [1], [0, 0, 1, 1], [], []>} : vector<8x128xbf16>, vector<128x128xbf16>, vector<8x128xf32> -> vector<8x128xf32>
    %244 = arith.addf %239, %243 : vector<8x128xf32>
    %245 = arith.addf %244, %15 : vector<8x128xf32>
    %246 = math.tanh %245 : vector<8x128xf32>
    %cst_104 = arith.constant 1.000000e+00 : f32
    %247 = vector.broadcast %cst_104 : f32 to vector<8x128xf32>
    %248 = arith.subf %247, %238 : vector<8x128xf32>
    %249 = arith.mulf %248, %223 : vector<8x128xf32>
    %250 = arith.mulf %238, %246 : vector<8x128xf32>
    %251 = arith.addf %249, %250 : vector<8x128xf32>
    %c8_i32_105 = arith.constant 8 : i32
    %c0_i32_106 = arith.constant 0 : i32
    %252 = arith.index_cast %c0_i32_106 : i32 to index
    %253 = memref.load %arg0[%252] : memref<8xi32, #tpu.memory_space<smem>>
    %254 = arith.sitofp %253 : i32 to f32
    %c8_i32_107 = arith.constant 8 : i32
    %255 = arith.muli %c0_i32_106, %c8_i32_107 : i32
    %256 = tpu.assume_multiple %255, 8 : i32
    %257 = arith.index_cast %256 : i32 to index
    %c0_108 = arith.constant 0 : index
    %258 = vector.load %arg18[%257, %c0_108] : memref<56x256xf32, #tpu.memory_space<vmem>>, vector<8x256xf32>
    %259 = vector.broadcast %254 : f32 to vector<8x256xf32>
    %260 = arith.mulf %259, %258 : vector<8x256xf32>
    %cst_109 = arith.constant 1.000000e+00 : f32
    %261 = arith.subf %cst_109, %254 : f32
    %c0_110 = arith.constant 0 : index
    %c0_111 = arith.constant 0 : index
    %262 = vector.load %arg19[%c0_110, %c0_111] : memref<8x256xf32, #tpu.memory_space<vmem>>, vector<8x256xf32>
    %263 = vector.broadcast %261 : f32 to vector<8x256xf32>
    %264 = arith.mulf %263, %262 : vector<8x256xf32>
    %265 = arith.addf %260, %264 : vector<8x256xf32>
    %266 = vector.extract_strided_slice %265 {offsets = [0, 0], sizes = [8, 128], strides = [1, 1]} : vector<8x256xf32> to vector<8x128xf32>
    %267 = arith.truncf %251 : vector<8x128xf32> to vector<8x128xbf16>
    %c0_112 = arith.constant 0 : index
    %c0_113 = arith.constant 0 : index
    %268 = vector.load %arg9[%c0_112, %c0_113] : memref<128x128xbf16, #tpu.memory_space<vmem>>, vector<128x128xbf16>
    %cst_114 = arith.constant dense<0.000000e+00> : vector<8x128xf32>
    %269 = tpu.matmul %267, %268, %cst_114 {dimension_numbers = #tpu.dot_dimension_numbers<[1], [0], [0], [1], [0, 0, 1, 1], [], []>} : vector<8x128xbf16>, vector<128x128xbf16>, vector<8x128xf32> -> vector<8x128xf32>
    %270 = arith.addf %266, %269 : vector<8x128xf32>
    %271 = arith.addf %270, %18 : vector<8x128xf32>
    %272 = arith.negf %271 : vector<8x128xf32>
    %273 = math.exp %272 : vector<8x128xf32>
    %cst_115 = arith.constant 1.000000e+00 : f32
    %274 = vector.broadcast %cst_115 : f32 to vector<8x128xf32>
    %275 = arith.addf %274, %273 : vector<8x128xf32>
    %276 = arith.divf %274, %275 : vector<8x128xf32>
    %277 = vector.extract_strided_slice %265 {offsets = [0, 128], sizes = [8, 128], strides = [1, 1]} : vector<8x256xf32> to vector<8x128xf32>
    %278 = arith.mulf %276, %251 : vector<8x128xf32>
    %279 = arith.truncf %278 : vector<8x128xf32> to vector<8x128xbf16>
    %c0_116 = arith.constant 0 : index
    %c0_117 = arith.constant 0 : index
    %280 = vector.load %arg10[%c0_116, %c0_117] : memref<128x128xbf16, #tpu.memory_space<vmem>>, vector<128x128xbf16>
    %cst_118 = arith.constant dense<0.000000e+00> : vector<8x128xf32>
    %281 = tpu.matmul %279, %280, %cst_118 {dimension_numbers = #tpu.dot_dimension_numbers<[1], [0], [0], [1], [0, 0, 1, 1], [], []>} : vector<8x128xbf16>, vector<128x128xbf16>, vector<8x128xf32> -> vector<8x128xf32>
    %282 = arith.addf %277, %281 : vector<8x128xf32>
    %283 = arith.addf %282, %21 : vector<8x128xf32>
    %284 = math.tanh %283 : vector<8x128xf32>
    %cst_119 = arith.constant 1.000000e+00 : f32
    %285 = vector.broadcast %cst_119 : f32 to vector<8x128xf32>
    %286 = arith.subf %285, %276 : vector<8x128xf32>
    %287 = arith.mulf %286, %251 : vector<8x128xf32>
    %288 = arith.mulf %276, %284 : vector<8x128xf32>
    %289 = arith.addf %287, %288 : vector<8x128xf32>
    %290 = arith.truncf %289 : vector<8x128xf32> to vector<8x128xbf16>
    %c0_120 = arith.constant 0 : index
    %c0_121 = arith.constant 0 : index
    %291 = vector.load %arg14[%c0_120, %c0_121] : memref<128x128xbf16, #tpu.memory_space<vmem>>, vector<128x128xbf16>
    %cst_122 = arith.constant dense<0.000000e+00> : vector<8x128xf32>
    %292 = tpu.matmul %290, %291, %cst_122 {dimension_numbers = #tpu.dot_dimension_numbers<[1], [0], [0], [1], [0, 0, 1, 1], [], []>} : vector<8x128xbf16>, vector<128x128xbf16>, vector<8x128xf32> -> vector<8x128xf32>
    %293 = vector.broadcast %22 : vector<1x128xf32> to vector<8x128xf32>
    %294 = arith.addf %292, %293 : vector<8x128xf32>
    %295 = arith.index_cast %c0_i32_106 : i32 to index
    %c0_123 = arith.constant 0 : index
    %c0_124 = arith.constant 0 : index
    %296 = vector.load %arg16[%295, %c0_123, %c0_124] : memref<7x8x128xf32, #tpu.memory_space<vmem>>, vector<1x8x128xf32>
    %297 = vector.shape_cast %296 : vector<1x8x128xf32> to vector<8x128xf32>
    %298 = vector.shape_cast %294 : vector<8x128xf32> to vector<1x8x128xf32>
    tpu.vector_store %arg16[%295, %c0_123, %c0_124], %298 {strides = array<i32>} : memref<7x8x128xf32, #tpu.memory_space<vmem>>, vector<1x8x128xf32>,
    %c1_i32_125 = arith.constant 1 : i32
    %299 = arith.addi %c0_i32_106, %c1_i32_125 : i32
    %300 = arith.index_cast %299 : i32 to index
    %301 = memref.load %arg0[%300] : memref<8xi32, #tpu.memory_space<smem>>
    %c0_i32_126 = arith.constant 0 : i32
    %302 = arith.cmpi eq, %301, %c0_i32_126 : i32
    %303 = arith.extui %302 : i1 to i32
    %c0_i32_127 = arith.constant 0 : i32
    %304 = arith.cmpi ne, %303, %c0_i32_127 : i32
    scf.if %304 {
      %cst_261 = arith.constant -1.000000e+30 : f32
      %623 = vector.broadcast %cst_261 : f32 to vector<8x128xf32>
      %624 = arith.select %26, %294, %623 : vector<8x128xi1>, vector<8x128xf32>
      %cst_262 = arith.constant dense<0xFF800000> : vector<8xf32>
      %625 = vector.multi_reduction <maximumf>, %624, %cst_262 [1] : vector<8x128xf32> to vector<8xf32>
      %626 = vector.shape_cast %625 : vector<8xf32> to vector<8x1xf32>
      %627 = vector.broadcast %626 : vector<8x1xf32> to vector<8x128xf32>
      %628 = arith.cmpf oeq, %624, %627 : vector<8x128xf32>
      %cst_263 = arith.constant 1.280000e+02 : f32
      %629 = vector.broadcast %cst_263 : f32 to vector<8x128xf32>
      %630 = arith.select %628, %24, %629 : vector<8x128xi1>, vector<8x128xf32>
      %cst_264 = arith.constant dense<0x7F800000> : vector<8xf32>
      %631 = vector.multi_reduction <minimumf>, %630, %cst_264 [1] : vector<8x128xf32> to vector<8xf32>
      %632 = vector.shape_cast %631 : vector<8xf32> to vector<8x1xf32>
      %633 = vector.broadcast %632 : vector<8x1xf32> to vector<8x128xf32>
      %634 = arith.cmpf oeq, %24, %633 : vector<8x128xf32>
      %cst_265 = arith.constant 1.000000e+00 : f32
      %cst_266 = arith.constant 0.000000e+00 : f32
      %635 = vector.broadcast %cst_265 : f32 to vector<8x128xf32>
      %636 = vector.broadcast %cst_266 : f32 to vector<8x128xf32>
      %637 = arith.select %634, %635, %636 : vector<8x128xi1>, vector<8x128xf32>
      %638 = arith.truncf %637 : vector<8x128xf32> to vector<8x128xbf16>
      %c0_267 = arith.constant 0 : index
      %c0_268 = arith.constant 0 : index
      %639 = vector.load %arg13[%c0_267, %c0_268] : memref<128x256xbf16, #tpu.memory_space<vmem>>, vector<128x256xbf16>
      %cst_269 = arith.constant dense<0.000000e+00> : vector<8x256xf32>
      %640 = tpu.matmul %638, %639, %cst_269 {dimension_numbers = #tpu.dot_dimension_numbers<[1], [0], [0], [1], [0, 0, 1, 1], [], []>} : vector<8x128xbf16>, vector<128x256xbf16>, vector<8x256xf32> -> vector<8x256xf32>
      %c0_270 = arith.constant 0 : index
      %c0_271 = arith.constant 0 : index
      %641 = vector.load %arg19[%c0_270, %c0_271] : memref<8x256xf32, #tpu.memory_space<vmem>>, vector<8x256xf32>
      tpu.vector_store %arg19[%c0_270, %c0_271], %640 {strides = array<i32>} : memref<8x256xf32, #tpu.memory_space<vmem>>, vector<8x256xf32>,
    } else {
    }
    %c1_i32_128 = arith.constant 1 : i32
    %305 = arith.index_cast %c1_i32_128 : i32 to index
    %306 = memref.load %arg0[%305] : memref<8xi32, #tpu.memory_space<smem>>
    %307 = arith.sitofp %306 : i32 to f32
    %c8_i32_129 = arith.constant 8 : i32
    %308 = arith.muli %c1_i32_128, %c8_i32_129 : i32
    %309 = tpu.assume_multiple %308, 8 : i32
    %310 = arith.index_cast %309 : i32 to index
    %c0_130 = arith.constant 0 : index
    %311 = vector.load %arg18[%310, %c0_130] : memref<56x256xf32, #tpu.memory_space<vmem>>, vector<8x256xf32>
    %312 = vector.broadcast %307 : f32 to vector<8x256xf32>
    %313 = arith.mulf %312, %311 : vector<8x256xf32>
    %cst_131 = arith.constant 1.000000e+00 : f32
    %314 = arith.subf %cst_131, %307 : f32
    %c0_132 = arith.constant 0 : index
    %c0_133 = arith.constant 0 : index
    %315 = vector.load %arg19[%c0_132, %c0_133] : memref<8x256xf32, #tpu.memory_space<vmem>>, vector<8x256xf32>
    %316 = vector.broadcast %314 : f32 to vector<8x256xf32>
    %317 = arith.mulf %316, %315 : vector<8x256xf32>
    %318 = arith.addf %313, %317 : vector<8x256xf32>
    %319 = vector.extract_strided_slice %318 {offsets = [0, 0], sizes = [8, 128], strides = [1, 1]} : vector<8x256xf32> to vector<8x128xf32>
    %320 = arith.truncf %289 : vector<8x128xf32> to vector<8x128xbf16>
    %c0_134 = arith.constant 0 : index
    %c0_135 = arith.constant 0 : index
    %321 = vector.load %arg9[%c0_134, %c0_135] : memref<128x128xbf16, #tpu.memory_space<vmem>>, vector<128x128xbf16>
    %cst_136 = arith.constant dense<0.000000e+00> : vector<8x128xf32>
    %322 = tpu.matmul %320, %321, %cst_136 {dimension_numbers = #tpu.dot_dimension_numbers<[1], [0], [0], [1], [0, 0, 1, 1], [], []>} : vector<8x128xbf16>, vector<128x128xbf16>, vector<8x128xf32> -> vector<8x128xf32>
    %323 = arith.addf %319, %322 : vector<8x128xf32>
    %324 = arith.addf %323, %18 : vector<8x128xf32>
    %325 = arith.negf %324 : vector<8x128xf32>
    %326 = math.exp %325 : vector<8x128xf32>
    %cst_137 = arith.constant 1.000000e+00 : f32
    %327 = vector.broadcast %cst_137 : f32 to vector<8x128xf32>
    %328 = arith.addf %327, %326 : vector<8x128xf32>
    %329 = arith.divf %327, %328 : vector<8x128xf32>
    %330 = vector.extract_strided_slice %318 {offsets = [0, 128], sizes = [8, 128], strides = [1, 1]} : vector<8x256xf32> to vector<8x128xf32>
    %331 = arith.mulf %329, %289 : vector<8x128xf32>
    %332 = arith.truncf %331 : vector<8x128xf32> to vector<8x128xbf16>
    %c0_138 = arith.constant 0 : index
    %c0_139 = arith.constant 0 : index
    %333 = vector.load %arg10[%c0_138, %c0_139] : memref<128x128xbf16, #tpu.memory_space<vmem>>, vector<128x128xbf16>
    %cst_140 = arith.constant dense<0.000000e+00> : vector<8x128xf32>
    %334 = tpu.matmul %332, %333, %cst_140 {dimension_numbers = #tpu.dot_dimension_numbers<[1], [0], [0], [1], [0, 0, 1, 1], [], []>} : vector<8x128xbf16>, vector<128x128xbf16>, vector<8x128xf32> -> vector<8x128xf32>
    %335 = arith.addf %330, %334 : vector<8x128xf32>
    %336 = arith.addf %335, %21 : vector<8x128xf32>
    %337 = math.tanh %336 : vector<8x128xf32>
    %cst_141 = arith.constant 1.000000e+00 : f32
    %338 = vector.broadcast %cst_141 : f32 to vector<8x128xf32>
    %339 = arith.subf %338, %329 : vector<8x128xf32>
    %340 = arith.mulf %339, %289 : vector<8x128xf32>
    %341 = arith.mulf %329, %337 : vector<8x128xf32>
    %342 = arith.addf %340, %341 : vector<8x128xf32>
    %343 = arith.truncf %342 : vector<8x128xf32> to vector<8x128xbf16>
    %c0_142 = arith.constant 0 : index
    %c0_143 = arith.constant 0 : index
    %344 = vector.load %arg14[%c0_142, %c0_143] : memref<128x128xbf16, #tpu.memory_space<vmem>>, vector<128x128xbf16>
    %cst_144 = arith.constant dense<0.000000e+00> : vector<8x128xf32>
    %345 = tpu.matmul %343, %344, %cst_144 {dimension_numbers = #tpu.dot_dimension_numbers<[1], [0], [0], [1], [0, 0, 1, 1], [], []>} : vector<8x128xbf16>, vector<128x128xbf16>, vector<8x128xf32> -> vector<8x128xf32>
    %346 = vector.broadcast %22 : vector<1x128xf32> to vector<8x128xf32>
    %347 = arith.addf %345, %346 : vector<8x128xf32>
    %348 = arith.index_cast %c1_i32_128 : i32 to index
    %c0_145 = arith.constant 0 : index
    %c0_146 = arith.constant 0 : index
    %349 = vector.load %arg16[%348, %c0_145, %c0_146] : memref<7x8x128xf32, #tpu.memory_space<vmem>>, vector<1x8x128xf32>
    %350 = vector.shape_cast %349 : vector<1x8x128xf32> to vector<8x128xf32>
    %351 = vector.shape_cast %347 : vector<8x128xf32> to vector<1x8x128xf32>
    tpu.vector_store %arg16[%348, %c0_145, %c0_146], %351 {strides = array<i32>} : memref<7x8x128xf32, #tpu.memory_space<vmem>>, vector<1x8x128xf32>,
    %c1_i32_147 = arith.constant 1 : i32
    %352 = arith.addi %c1_i32_128, %c1_i32_147 : i32
    %353 = arith.index_cast %352 : i32 to index
    %354 = memref.load %arg0[%353] : memref<8xi32, #tpu.memory_space<smem>>
    %c0_i32_148 = arith.constant 0 : i32
    %355 = arith.cmpi eq, %354, %c0_i32_148 : i32
    %356 = arith.extui %355 : i1 to i32
    %c0_i32_149 = arith.constant 0 : i32
    %357 = arith.cmpi ne, %356, %c0_i32_149 : i32
    scf.if %357 {
      %cst_261 = arith.constant -1.000000e+30 : f32
      %623 = vector.broadcast %cst_261 : f32 to vector<8x128xf32>
      %624 = arith.select %26, %347, %623 : vector<8x128xi1>, vector<8x128xf32>
      %cst_262 = arith.constant dense<0xFF800000> : vector<8xf32>
      %625 = vector.multi_reduction <maximumf>, %624, %cst_262 [1] : vector<8x128xf32> to vector<8xf32>
      %626 = vector.shape_cast %625 : vector<8xf32> to vector<8x1xf32>
      %627 = vector.broadcast %626 : vector<8x1xf32> to vector<8x128xf32>
      %628 = arith.cmpf oeq, %624, %627 : vector<8x128xf32>
      %cst_263 = arith.constant 1.280000e+02 : f32
      %629 = vector.broadcast %cst_263 : f32 to vector<8x128xf32>
      %630 = arith.select %628, %24, %629 : vector<8x128xi1>, vector<8x128xf32>
      %cst_264 = arith.constant dense<0x7F800000> : vector<8xf32>
      %631 = vector.multi_reduction <minimumf>, %630, %cst_264 [1] : vector<8x128xf32> to vector<8xf32>
      %632 = vector.shape_cast %631 : vector<8xf32> to vector<8x1xf32>
      %633 = vector.broadcast %632 : vector<8x1xf32> to vector<8x128xf32>
      %634 = arith.cmpf oeq, %24, %633 : vector<8x128xf32>
      %cst_265 = arith.constant 1.000000e+00 : f32
      %cst_266 = arith.constant 0.000000e+00 : f32
      %635 = vector.broadcast %cst_265 : f32 to vector<8x128xf32>
      %636 = vector.broadcast %cst_266 : f32 to vector<8x128xf32>
      %637 = arith.select %634, %635, %636 : vector<8x128xi1>, vector<8x128xf32>
      %638 = arith.truncf %637 : vector<8x128xf32> to vector<8x128xbf16>
      %c0_267 = arith.constant 0 : index
      %c0_268 = arith.constant 0 : index
      %639 = vector.load %arg13[%c0_267, %c0_268] : memref<128x256xbf16, #tpu.memory_space<vmem>>, vector<128x256xbf16>
      %cst_269 = arith.constant dense<0.000000e+00> : vector<8x256xf32>
      %640 = tpu.matmul %638, %639, %cst_269 {dimension_numbers = #tpu.dot_dimension_numbers<[1], [0], [0], [1], [0, 0, 1, 1], [], []>} : vector<8x128xbf16>, vector<128x256xbf16>, vector<8x256xf32> -> vector<8x256xf32>
      %c0_270 = arith.constant 0 : index
      %c0_271 = arith.constant 0 : index
      %641 = vector.load %arg19[%c0_270, %c0_271] : memref<8x256xf32, #tpu.memory_space<vmem>>, vector<8x256xf32>
      tpu.vector_store %arg19[%c0_270, %c0_271], %640 {strides = array<i32>} : memref<8x256xf32, #tpu.memory_space<vmem>>, vector<8x256xf32>,
    } else {
    }
    %c2_i32_150 = arith.constant 2 : i32
    %358 = arith.index_cast %c2_i32_150 : i32 to index
    %359 = memref.load %arg0[%358] : memref<8xi32, #tpu.memory_space<smem>>
    %360 = arith.sitofp %359 : i32 to f32
    %c8_i32_151 = arith.constant 8 : i32
    %361 = arith.muli %c2_i32_150, %c8_i32_151 : i32
    %362 = tpu.assume_multiple %361, 8 : i32
    %363 = arith.index_cast %362 : i32 to index
    %c0_152 = arith.constant 0 : index
    %364 = vector.load %arg18[%363, %c0_152] : memref<56x256xf32, #tpu.memory_space<vmem>>, vector<8x256xf32>
    %365 = vector.broadcast %360 : f32 to vector<8x256xf32>
    %366 = arith.mulf %365, %364 : vector<8x256xf32>
    %cst_153 = arith.constant 1.000000e+00 : f32
    %367 = arith.subf %cst_153, %360 : f32
    %c0_154 = arith.constant 0 : index
    %c0_155 = arith.constant 0 : index
    %368 = vector.load %arg19[%c0_154, %c0_155] : memref<8x256xf32, #tpu.memory_space<vmem>>, vector<8x256xf32>
    %369 = vector.broadcast %367 : f32 to vector<8x256xf32>
    %370 = arith.mulf %369, %368 : vector<8x256xf32>
    %371 = arith.addf %366, %370 : vector<8x256xf32>
    %372 = vector.extract_strided_slice %371 {offsets = [0, 0], sizes = [8, 128], strides = [1, 1]} : vector<8x256xf32> to vector<8x128xf32>
    %373 = arith.truncf %342 : vector<8x128xf32> to vector<8x128xbf16>
    %c0_156 = arith.constant 0 : index
    %c0_157 = arith.constant 0 : index
    %374 = vector.load %arg9[%c0_156, %c0_157] : memref<128x128xbf16, #tpu.memory_space<vmem>>, vector<128x128xbf16>
    %cst_158 = arith.constant dense<0.000000e+00> : vector<8x128xf32>
    %375 = tpu.matmul %373, %374, %cst_158 {dimension_numbers = #tpu.dot_dimension_numbers<[1], [0], [0], [1], [0, 0, 1, 1], [], []>} : vector<8x128xbf16>, vector<128x128xbf16>, vector<8x128xf32> -> vector<8x128xf32>
    %376 = arith.addf %372, %375 : vector<8x128xf32>
    %377 = arith.addf %376, %18 : vector<8x128xf32>
    %378 = arith.negf %377 : vector<8x128xf32>
    %379 = math.exp %378 : vector<8x128xf32>
    %cst_159 = arith.constant 1.000000e+00 : f32
    %380 = vector.broadcast %cst_159 : f32 to vector<8x128xf32>
    %381 = arith.addf %380, %379 : vector<8x128xf32>
    %382 = arith.divf %380, %381 : vector<8x128xf32>
    %383 = vector.extract_strided_slice %371 {offsets = [0, 128], sizes = [8, 128], strides = [1, 1]} : vector<8x256xf32> to vector<8x128xf32>
    %384 = arith.mulf %382, %342 : vector<8x128xf32>
    %385 = arith.truncf %384 : vector<8x128xf32> to vector<8x128xbf16>
    %c0_160 = arith.constant 0 : index
    %c0_161 = arith.constant 0 : index
    %386 = vector.load %arg10[%c0_160, %c0_161] : memref<128x128xbf16, #tpu.memory_space<vmem>>, vector<128x128xbf16>
    %cst_162 = arith.constant dense<0.000000e+00> : vector<8x128xf32>
    %387 = tpu.matmul %385, %386, %cst_162 {dimension_numbers = #tpu.dot_dimension_numbers<[1], [0], [0], [1], [0, 0, 1, 1], [], []>} : vector<8x128xbf16>, vector<128x128xbf16>, vector<8x128xf32> -> vector<8x128xf32>
    %388 = arith.addf %383, %387 : vector<8x128xf32>
    %389 = arith.addf %388, %21 : vector<8x128xf32>
    %390 = math.tanh %389 : vector<8x128xf32>
    %cst_163 = arith.constant 1.000000e+00 : f32
    %391 = vector.broadcast %cst_163 : f32 to vector<8x128xf32>
    %392 = arith.subf %391, %382 : vector<8x128xf32>
    %393 = arith.mulf %392, %342 : vector<8x128xf32>
    %394 = arith.mulf %382, %390 : vector<8x128xf32>
    %395 = arith.addf %393, %394 : vector<8x128xf32>
    %396 = arith.truncf %395 : vector<8x128xf32> to vector<8x128xbf16>
    %c0_164 = arith.constant 0 : index
    %c0_165 = arith.constant 0 : index
    %397 = vector.load %arg14[%c0_164, %c0_165] : memref<128x128xbf16, #tpu.memory_space<vmem>>, vector<128x128xbf16>
    %cst_166 = arith.constant dense<0.000000e+00> : vector<8x128xf32>
    %398 = tpu.matmul %396, %397, %cst_166 {dimension_numbers = #tpu.dot_dimension_numbers<[1], [0], [0], [1], [0, 0, 1, 1], [], []>} : vector<8x128xbf16>, vector<128x128xbf16>, vector<8x128xf32> -> vector<8x128xf32>
    %399 = vector.broadcast %22 : vector<1x128xf32> to vector<8x128xf32>
    %400 = arith.addf %398, %399 : vector<8x128xf32>
    %401 = arith.index_cast %c2_i32_150 : i32 to index
    %c0_167 = arith.constant 0 : index
    %c0_168 = arith.constant 0 : index
    %402 = vector.load %arg16[%401, %c0_167, %c0_168] : memref<7x8x128xf32, #tpu.memory_space<vmem>>, vector<1x8x128xf32>
    %403 = vector.shape_cast %402 : vector<1x8x128xf32> to vector<8x128xf32>
    %404 = vector.shape_cast %400 : vector<8x128xf32> to vector<1x8x128xf32>
    tpu.vector_store %arg16[%401, %c0_167, %c0_168], %404 {strides = array<i32>} : memref<7x8x128xf32, #tpu.memory_space<vmem>>, vector<1x8x128xf32>,
    %c1_i32_169 = arith.constant 1 : i32
    %405 = arith.addi %c2_i32_150, %c1_i32_169 : i32
    %406 = arith.index_cast %405 : i32 to index
    %407 = memref.load %arg0[%406] : memref<8xi32, #tpu.memory_space<smem>>
    %c0_i32_170 = arith.constant 0 : i32
    %408 = arith.cmpi eq, %407, %c0_i32_170 : i32
    %409 = arith.extui %408 : i1 to i32
    %c0_i32_171 = arith.constant 0 : i32
    %410 = arith.cmpi ne, %409, %c0_i32_171 : i32
    scf.if %410 {
      %cst_261 = arith.constant -1.000000e+30 : f32
      %623 = vector.broadcast %cst_261 : f32 to vector<8x128xf32>
      %624 = arith.select %26, %400, %623 : vector<8x128xi1>, vector<8x128xf32>
      %cst_262 = arith.constant dense<0xFF800000> : vector<8xf32>
      %625 = vector.multi_reduction <maximumf>, %624, %cst_262 [1] : vector<8x128xf32> to vector<8xf32>
      %626 = vector.shape_cast %625 : vector<8xf32> to vector<8x1xf32>
      %627 = vector.broadcast %626 : vector<8x1xf32> to vector<8x128xf32>
      %628 = arith.cmpf oeq, %624, %627 : vector<8x128xf32>
      %cst_263 = arith.constant 1.280000e+02 : f32
      %629 = vector.broadcast %cst_263 : f32 to vector<8x128xf32>
      %630 = arith.select %628, %24, %629 : vector<8x128xi1>, vector<8x128xf32>
      %cst_264 = arith.constant dense<0x7F800000> : vector<8xf32>
      %631 = vector.multi_reduction <minimumf>, %630, %cst_264 [1] : vector<8x128xf32> to vector<8xf32>
      %632 = vector.shape_cast %631 : vector<8xf32> to vector<8x1xf32>
      %633 = vector.broadcast %632 : vector<8x1xf32> to vector<8x128xf32>
      %634 = arith.cmpf oeq, %24, %633 : vector<8x128xf32>
      %cst_265 = arith.constant 1.000000e+00 : f32
      %cst_266 = arith.constant 0.000000e+00 : f32
      %635 = vector.broadcast %cst_265 : f32 to vector<8x128xf32>
      %636 = vector.broadcast %cst_266 : f32 to vector<8x128xf32>
      %637 = arith.select %634, %635, %636 : vector<8x128xi1>, vector<8x128xf32>
      %638 = arith.truncf %637 : vector<8x128xf32> to vector<8x128xbf16>
      %c0_267 = arith.constant 0 : index
      %c0_268 = arith.constant 0 : index
      %639 = vector.load %arg13[%c0_267, %c0_268] : memref<128x256xbf16, #tpu.memory_space<vmem>>, vector<128x256xbf16>
      %cst_269 = arith.constant dense<0.000000e+00> : vector<8x256xf32>
      %640 = tpu.matmul %638, %639, %cst_269 {dimension_numbers = #tpu.dot_dimension_numbers<[1], [0], [0], [1], [0, 0, 1, 1], [], []>} : vector<8x128xbf16>, vector<128x256xbf16>, vector<8x256xf32> -> vector<8x256xf32>
      %c0_270 = arith.constant 0 : index
      %c0_271 = arith.constant 0 : index
      %641 = vector.load %arg19[%c0_270, %c0_271] : memref<8x256xf32, #tpu.memory_space<vmem>>, vector<8x256xf32>
      tpu.vector_store %arg19[%c0_270, %c0_271], %640 {strides = array<i32>} : memref<8x256xf32, #tpu.memory_space<vmem>>, vector<8x256xf32>,
    } else {
    }
    %c3_i32_172 = arith.constant 3 : i32
    %411 = arith.index_cast %c3_i32_172 : i32 to index
    %412 = memref.load %arg0[%411] : memref<8xi32, #tpu.memory_space<smem>>
    %413 = arith.sitofp %412 : i32 to f32
    %c8_i32_173 = arith.constant 8 : i32
    %414 = arith.muli %c3_i32_172, %c8_i32_173 : i32
    %415 = tpu.assume_multiple %414, 8 : i32
    %416 = arith.index_cast %415 : i32 to index
    %c0_174 = arith.constant 0 : index
    %417 = vector.load %arg18[%416, %c0_174] : memref<56x256xf32, #tpu.memory_space<vmem>>, vector<8x256xf32>
    %418 = vector.broadcast %413 : f32 to vector<8x256xf32>
    %419 = arith.mulf %418, %417 : vector<8x256xf32>
    %cst_175 = arith.constant 1.000000e+00 : f32
    %420 = arith.subf %cst_175, %413 : f32
    %c0_176 = arith.constant 0 : index
    %c0_177 = arith.constant 0 : index
    %421 = vector.load %arg19[%c0_176, %c0_177] : memref<8x256xf32, #tpu.memory_space<vmem>>, vector<8x256xf32>
    %422 = vector.broadcast %420 : f32 to vector<8x256xf32>
    %423 = arith.mulf %422, %421 : vector<8x256xf32>
    %424 = arith.addf %419, %423 : vector<8x256xf32>
    %425 = vector.extract_strided_slice %424 {offsets = [0, 0], sizes = [8, 128], strides = [1, 1]} : vector<8x256xf32> to vector<8x128xf32>
    %426 = arith.truncf %395 : vector<8x128xf32> to vector<8x128xbf16>
    %c0_178 = arith.constant 0 : index
    %c0_179 = arith.constant 0 : index
    %427 = vector.load %arg9[%c0_178, %c0_179] : memref<128x128xbf16, #tpu.memory_space<vmem>>, vector<128x128xbf16>
    %cst_180 = arith.constant dense<0.000000e+00> : vector<8x128xf32>
    %428 = tpu.matmul %426, %427, %cst_180 {dimension_numbers = #tpu.dot_dimension_numbers<[1], [0], [0], [1], [0, 0, 1, 1], [], []>} : vector<8x128xbf16>, vector<128x128xbf16>, vector<8x128xf32> -> vector<8x128xf32>
    %429 = arith.addf %425, %428 : vector<8x128xf32>
    %430 = arith.addf %429, %18 : vector<8x128xf32>
    %431 = arith.negf %430 : vector<8x128xf32>
    %432 = math.exp %431 : vector<8x128xf32>
    %cst_181 = arith.constant 1.000000e+00 : f32
    %433 = vector.broadcast %cst_181 : f32 to vector<8x128xf32>
    %434 = arith.addf %433, %432 : vector<8x128xf32>
    %435 = arith.divf %433, %434 : vector<8x128xf32>
    %436 = vector.extract_strided_slice %424 {offsets = [0, 128], sizes = [8, 128], strides = [1, 1]} : vector<8x256xf32> to vector<8x128xf32>
    %437 = arith.mulf %435, %395 : vector<8x128xf32>
    %438 = arith.truncf %437 : vector<8x128xf32> to vector<8x128xbf16>
    %c0_182 = arith.constant 0 : index
    %c0_183 = arith.constant 0 : index
    %439 = vector.load %arg10[%c0_182, %c0_183] : memref<128x128xbf16, #tpu.memory_space<vmem>>, vector<128x128xbf16>
    %cst_184 = arith.constant dense<0.000000e+00> : vector<8x128xf32>
    %440 = tpu.matmul %438, %439, %cst_184 {dimension_numbers = #tpu.dot_dimension_numbers<[1], [0], [0], [1], [0, 0, 1, 1], [], []>} : vector<8x128xbf16>, vector<128x128xbf16>, vector<8x128xf32> -> vector<8x128xf32>
    %441 = arith.addf %436, %440 : vector<8x128xf32>
    %442 = arith.addf %441, %21 : vector<8x128xf32>
    %443 = math.tanh %442 : vector<8x128xf32>
    %cst_185 = arith.constant 1.000000e+00 : f32
    %444 = vector.broadcast %cst_185 : f32 to vector<8x128xf32>
    %445 = arith.subf %444, %435 : vector<8x128xf32>
    %446 = arith.mulf %445, %395 : vector<8x128xf32>
    %447 = arith.mulf %435, %443 : vector<8x128xf32>
    %448 = arith.addf %446, %447 : vector<8x128xf32>
    %449 = arith.truncf %448 : vector<8x128xf32> to vector<8x128xbf16>
    %c0_186 = arith.constant 0 : index
    %c0_187 = arith.constant 0 : index
    %450 = vector.load %arg14[%c0_186, %c0_187] : memref<128x128xbf16, #tpu.memory_space<vmem>>, vector<128x128xbf16>
    %cst_188 = arith.constant dense<0.000000e+00> : vector<8x128xf32>
    %451 = tpu.matmul %449, %450, %cst_188 {dimension_numbers = #tpu.dot_dimension_numbers<[1], [0], [0], [1], [0, 0, 1, 1], [], []>} : vector<8x128xbf16>, vector<128x128xbf16>, vector<8x128xf32> -> vector<8x128xf32>
    %452 = vector.broadcast %22 : vector<1x128xf32> to vector<8x128xf32>
    %453 = arith.addf %451, %452 : vector<8x128xf32>
    %454 = arith.index_cast %c3_i32_172 : i32 to index
    %c0_189 = arith.constant 0 : index
    %c0_190 = arith.constant 0 : index
    %455 = vector.load %arg16[%454, %c0_189, %c0_190] : memref<7x8x128xf32, #tpu.memory_space<vmem>>, vector<1x8x128xf32>
    %456 = vector.shape_cast %455 : vector<1x8x128xf32> to vector<8x128xf32>
    %457 = vector.shape_cast %453 : vector<8x128xf32> to vector<1x8x128xf32>
    tpu.vector_store %arg16[%454, %c0_189, %c0_190], %457 {strides = array<i32>} : memref<7x8x128xf32, #tpu.memory_space<vmem>>, vector<1x8x128xf32>,
    %c1_i32_191 = arith.constant 1 : i32
    %458 = arith.addi %c3_i32_172, %c1_i32_191 : i32
    %459 = arith.index_cast %458 : i32 to index
    %460 = memref.load %arg0[%459] : memref<8xi32, #tpu.memory_space<smem>>
    %c0_i32_192 = arith.constant 0 : i32
    %461 = arith.cmpi eq, %460, %c0_i32_192 : i32
    %462 = arith.extui %461 : i1 to i32
    %c0_i32_193 = arith.constant 0 : i32
    %463 = arith.cmpi ne, %462, %c0_i32_193 : i32
    scf.if %463 {
      %cst_261 = arith.constant -1.000000e+30 : f32
      %623 = vector.broadcast %cst_261 : f32 to vector<8x128xf32>
      %624 = arith.select %26, %453, %623 : vector<8x128xi1>, vector<8x128xf32>
      %cst_262 = arith.constant dense<0xFF800000> : vector<8xf32>
      %625 = vector.multi_reduction <maximumf>, %624, %cst_262 [1] : vector<8x128xf32> to vector<8xf32>
      %626 = vector.shape_cast %625 : vector<8xf32> to vector<8x1xf32>
      %627 = vector.broadcast %626 : vector<8x1xf32> to vector<8x128xf32>
      %628 = arith.cmpf oeq, %624, %627 : vector<8x128xf32>
      %cst_263 = arith.constant 1.280000e+02 : f32
      %629 = vector.broadcast %cst_263 : f32 to vector<8x128xf32>
      %630 = arith.select %628, %24, %629 : vector<8x128xi1>, vector<8x128xf32>
      %cst_264 = arith.constant dense<0x7F800000> : vector<8xf32>
      %631 = vector.multi_reduction <minimumf>, %630, %cst_264 [1] : vector<8x128xf32> to vector<8xf32>
      %632 = vector.shape_cast %631 : vector<8xf32> to vector<8x1xf32>
      %633 = vector.broadcast %632 : vector<8x1xf32> to vector<8x128xf32>
      %634 = arith.cmpf oeq, %24, %633 : vector<8x128xf32>
      %cst_265 = arith.constant 1.000000e+00 : f32
      %cst_266 = arith.constant 0.000000e+00 : f32
      %635 = vector.broadcast %cst_265 : f32 to vector<8x128xf32>
      %636 = vector.broadcast %cst_266 : f32 to vector<8x128xf32>
      %637 = arith.select %634, %635, %636 : vector<8x128xi1>, vector<8x128xf32>
      %638 = arith.truncf %637 : vector<8x128xf32> to vector<8x128xbf16>
      %c0_267 = arith.constant 0 : index
      %c0_268 = arith.constant 0 : index
      %639 = vector.load %arg13[%c0_267, %c0_268] : memref<128x256xbf16, #tpu.memory_space<vmem>>, vector<128x256xbf16>
      %cst_269 = arith.constant dense<0.000000e+00> : vector<8x256xf32>
      %640 = tpu.matmul %638, %639, %cst_269 {dimension_numbers = #tpu.dot_dimension_numbers<[1], [0], [0], [1], [0, 0, 1, 1], [], []>} : vector<8x128xbf16>, vector<128x256xbf16>, vector<8x256xf32> -> vector<8x256xf32>
      %c0_270 = arith.constant 0 : index
      %c0_271 = arith.constant 0 : index
      %641 = vector.load %arg19[%c0_270, %c0_271] : memref<8x256xf32, #tpu.memory_space<vmem>>, vector<8x256xf32>
      tpu.vector_store %arg19[%c0_270, %c0_271], %640 {strides = array<i32>} : memref<8x256xf32, #tpu.memory_space<vmem>>, vector<8x256xf32>,
    } else {
    }
    %c4_i32_194 = arith.constant 4 : i32
    %464 = arith.index_cast %c4_i32_194 : i32 to index
    %465 = memref.load %arg0[%464] : memref<8xi32, #tpu.memory_space<smem>>
    %466 = arith.sitofp %465 : i32 to f32
    %c8_i32_195 = arith.constant 8 : i32
    %467 = arith.muli %c4_i32_194, %c8_i32_195 : i32
    %468 = tpu.assume_multiple %467, 8 : i32
    %469 = arith.index_cast %468 : i32 to index
    %c0_196 = arith.constant 0 : index
    %470 = vector.load %arg18[%469, %c0_196] : memref<56x256xf32, #tpu.memory_space<vmem>>, vector<8x256xf32>
    %471 = vector.broadcast %466 : f32 to vector<8x256xf32>
    %472 = arith.mulf %471, %470 : vector<8x256xf32>
    %cst_197 = arith.constant 1.000000e+00 : f32
    %473 = arith.subf %cst_197, %466 : f32
    %c0_198 = arith.constant 0 : index
    %c0_199 = arith.constant 0 : index
    %474 = vector.load %arg19[%c0_198, %c0_199] : memref<8x256xf32, #tpu.memory_space<vmem>>, vector<8x256xf32>
    %475 = vector.broadcast %473 : f32 to vector<8x256xf32>
    %476 = arith.mulf %475, %474 : vector<8x256xf32>
    %477 = arith.addf %472, %476 : vector<8x256xf32>
    %478 = vector.extract_strided_slice %477 {offsets = [0, 0], sizes = [8, 128], strides = [1, 1]} : vector<8x256xf32> to vector<8x128xf32>
    %479 = arith.truncf %448 : vector<8x128xf32> to vector<8x128xbf16>
    %c0_200 = arith.constant 0 : index
    %c0_201 = arith.constant 0 : index
    %480 = vector.load %arg9[%c0_200, %c0_201] : memref<128x128xbf16, #tpu.memory_space<vmem>>, vector<128x128xbf16>
    %cst_202 = arith.constant dense<0.000000e+00> : vector<8x128xf32>
    %481 = tpu.matmul %479, %480, %cst_202 {dimension_numbers = #tpu.dot_dimension_numbers<[1], [0], [0], [1], [0, 0, 1, 1], [], []>} : vector<8x128xbf16>, vector<128x128xbf16>, vector<8x128xf32> -> vector<8x128xf32>
    %482 = arith.addf %478, %481 : vector<8x128xf32>
    %483 = arith.addf %482, %18 : vector<8x128xf32>
    %484 = arith.negf %483 : vector<8x128xf32>
    %485 = math.exp %484 : vector<8x128xf32>
    %cst_203 = arith.constant 1.000000e+00 : f32
    %486 = vector.broadcast %cst_203 : f32 to vector<8x128xf32>
    %487 = arith.addf %486, %485 : vector<8x128xf32>
    %488 = arith.divf %486, %487 : vector<8x128xf32>
    %489 = vector.extract_strided_slice %477 {offsets = [0, 128], sizes = [8, 128], strides = [1, 1]} : vector<8x256xf32> to vector<8x128xf32>
    %490 = arith.mulf %488, %448 : vector<8x128xf32>
    %491 = arith.truncf %490 : vector<8x128xf32> to vector<8x128xbf16>
    %c0_204 = arith.constant 0 : index
    %c0_205 = arith.constant 0 : index
    %492 = vector.load %arg10[%c0_204, %c0_205] : memref<128x128xbf16, #tpu.memory_space<vmem>>, vector<128x128xbf16>
    %cst_206 = arith.constant dense<0.000000e+00> : vector<8x128xf32>
    %493 = tpu.matmul %491, %492, %cst_206 {dimension_numbers = #tpu.dot_dimension_numbers<[1], [0], [0], [1], [0, 0, 1, 1], [], []>} : vector<8x128xbf16>, vector<128x128xbf16>, vector<8x128xf32> -> vector<8x128xf32>
    %494 = arith.addf %489, %493 : vector<8x128xf32>
    %495 = arith.addf %494, %21 : vector<8x128xf32>
    %496 = math.tanh %495 : vector<8x128xf32>
    %cst_207 = arith.constant 1.000000e+00 : f32
    %497 = vector.broadcast %cst_207 : f32 to vector<8x128xf32>
    %498 = arith.subf %497, %488 : vector<8x128xf32>
    %499 = arith.mulf %498, %448 : vector<8x128xf32>
    %500 = arith.mulf %488, %496 : vector<8x128xf32>
    %501 = arith.addf %499, %500 : vector<8x128xf32>
    %502 = arith.truncf %501 : vector<8x128xf32> to vector<8x128xbf16>
    %c0_208 = arith.constant 0 : index
    %c0_209 = arith.constant 0 : index
    %503 = vector.load %arg14[%c0_208, %c0_209] : memref<128x128xbf16, #tpu.memory_space<vmem>>, vector<128x128xbf16>
    %cst_210 = arith.constant dense<0.000000e+00> : vector<8x128xf32>
    %504 = tpu.matmul %502, %503, %cst_210 {dimension_numbers = #tpu.dot_dimension_numbers<[1], [0], [0], [1], [0, 0, 1, 1], [], []>} : vector<8x128xbf16>, vector<128x128xbf16>, vector<8x128xf32> -> vector<8x128xf32>
    %505 = vector.broadcast %22 : vector<1x128xf32> to vector<8x128xf32>
    %506 = arith.addf %504, %505 : vector<8x128xf32>
    %507 = arith.index_cast %c4_i32_194 : i32 to index
    %c0_211 = arith.constant 0 : index
    %c0_212 = arith.constant 0 : index
    %508 = vector.load %arg16[%507, %c0_211, %c0_212] : memref<7x8x128xf32, #tpu.memory_space<vmem>>, vector<1x8x128xf32>
    %509 = vector.shape_cast %508 : vector<1x8x128xf32> to vector<8x128xf32>
    %510 = vector.shape_cast %506 : vector<8x128xf32> to vector<1x8x128xf32>
    tpu.vector_store %arg16[%507, %c0_211, %c0_212], %510 {strides = array<i32>} : memref<7x8x128xf32, #tpu.memory_space<vmem>>, vector<1x8x128xf32>,
    %c1_i32_213 = arith.constant 1 : i32
    %511 = arith.addi %c4_i32_194, %c1_i32_213 : i32
    %512 = arith.index_cast %511 : i32 to index
    %513 = memref.load %arg0[%512] : memref<8xi32, #tpu.memory_space<smem>>
    %c0_i32_214 = arith.constant 0 : i32
    %514 = arith.cmpi eq, %513, %c0_i32_214 : i32
    %515 = arith.extui %514 : i1 to i32
    %c0_i32_215 = arith.constant 0 : i32
    %516 = arith.cmpi ne, %515, %c0_i32_215 : i32
    scf.if %516 {
      %cst_261 = arith.constant -1.000000e+30 : f32
      %623 = vector.broadcast %cst_261 : f32 to vector<8x128xf32>
      %624 = arith.select %26, %506, %623 : vector<8x128xi1>, vector<8x128xf32>
      %cst_262 = arith.constant dense<0xFF800000> : vector<8xf32>
      %625 = vector.multi_reduction <maximumf>, %624, %cst_262 [1] : vector<8x128xf32> to vector<8xf32>
      %626 = vector.shape_cast %625 : vector<8xf32> to vector<8x1xf32>
      %627 = vector.broadcast %626 : vector<8x1xf32> to vector<8x128xf32>
      %628 = arith.cmpf oeq, %624, %627 : vector<8x128xf32>
      %cst_263 = arith.constant 1.280000e+02 : f32
      %629 = vector.broadcast %cst_263 : f32 to vector<8x128xf32>
      %630 = arith.select %628, %24, %629 : vector<8x128xi1>, vector<8x128xf32>
      %cst_264 = arith.constant dense<0x7F800000> : vector<8xf32>
      %631 = vector.multi_reduction <minimumf>, %630, %cst_264 [1] : vector<8x128xf32> to vector<8xf32>
      %632 = vector.shape_cast %631 : vector<8xf32> to vector<8x1xf32>
      %633 = vector.broadcast %632 : vector<8x1xf32> to vector<8x128xf32>
      %634 = arith.cmpf oeq, %24, %633 : vector<8x128xf32>
      %cst_265 = arith.constant 1.000000e+00 : f32
      %cst_266 = arith.constant 0.000000e+00 : f32
      %635 = vector.broadcast %cst_265 : f32 to vector<8x128xf32>
      %636 = vector.broadcast %cst_266 : f32 to vector<8x128xf32>
      %637 = arith.select %634, %635, %636 : vector<8x128xi1>, vector<8x128xf32>
      %638 = arith.truncf %637 : vector<8x128xf32> to vector<8x128xbf16>
      %c0_267 = arith.constant 0 : index
      %c0_268 = arith.constant 0 : index
      %639 = vector.load %arg13[%c0_267, %c0_268] : memref<128x256xbf16, #tpu.memory_space<vmem>>, vector<128x256xbf16>
      %cst_269 = arith.constant dense<0.000000e+00> : vector<8x256xf32>
      %640 = tpu.matmul %638, %639, %cst_269 {dimension_numbers = #tpu.dot_dimension_numbers<[1], [0], [0], [1], [0, 0, 1, 1], [], []>} : vector<8x128xbf16>, vector<128x256xbf16>, vector<8x256xf32> -> vector<8x256xf32>
      %c0_270 = arith.constant 0 : index
      %c0_271 = arith.constant 0 : index
      %641 = vector.load %arg19[%c0_270, %c0_271] : memref<8x256xf32, #tpu.memory_space<vmem>>, vector<8x256xf32>
      tpu.vector_store %arg19[%c0_270, %c0_271], %640 {strides = array<i32>} : memref<8x256xf32, #tpu.memory_space<vmem>>, vector<8x256xf32>,
    } else {
    }
    %c5_i32_216 = arith.constant 5 : i32
    %517 = arith.index_cast %c5_i32_216 : i32 to index
    %518 = memref.load %arg0[%517] : memref<8xi32, #tpu.memory_space<smem>>
    %519 = arith.sitofp %518 : i32 to f32
    %c8_i32_217 = arith.constant 8 : i32
    %520 = arith.muli %c5_i32_216, %c8_i32_217 : i32
    %521 = tpu.assume_multiple %520, 8 : i32
    %522 = arith.index_cast %521 : i32 to index
    %c0_218 = arith.constant 0 : index
    %523 = vector.load %arg18[%522, %c0_218] : memref<56x256xf32, #tpu.memory_space<vmem>>, vector<8x256xf32>
    %524 = vector.broadcast %519 : f32 to vector<8x256xf32>
    %525 = arith.mulf %524, %523 : vector<8x256xf32>
    %cst_219 = arith.constant 1.000000e+00 : f32
    %526 = arith.subf %cst_219, %519 : f32
    %c0_220 = arith.constant 0 : index
    %c0_221 = arith.constant 0 : index
    %527 = vector.load %arg19[%c0_220, %c0_221] : memref<8x256xf32, #tpu.memory_space<vmem>>, vector<8x256xf32>
    %528 = vector.broadcast %526 : f32 to vector<8x256xf32>
    %529 = arith.mulf %528, %527 : vector<8x256xf32>
    %530 = arith.addf %525, %529 : vector<8x256xf32>
    %531 = vector.extract_strided_slice %530 {offsets = [0, 0], sizes = [8, 128], strides = [1, 1]} : vector<8x256xf32> to vector<8x128xf32>
    %532 = arith.truncf %501 : vector<8x128xf32> to vector<8x128xbf16>
    %c0_222 = arith.constant 0 : index
    %c0_223 = arith.constant 0 : index
    %533 = vector.load %arg9[%c0_222, %c0_223] : memref<128x128xbf16, #tpu.memory_space<vmem>>, vector<128x128xbf16>
    %cst_224 = arith.constant dense<0.000000e+00> : vector<8x128xf32>
    %534 = tpu.matmul %532, %533, %cst_224 {dimension_numbers = #tpu.dot_dimension_numbers<[1], [0], [0], [1], [0, 0, 1, 1], [], []>} : vector<8x128xbf16>, vector<128x128xbf16>, vector<8x128xf32> -> vector<8x128xf32>
    %535 = arith.addf %531, %534 : vector<8x128xf32>
    %536 = arith.addf %535, %18 : vector<8x128xf32>
    %537 = arith.negf %536 : vector<8x128xf32>
    %538 = math.exp %537 : vector<8x128xf32>
    %cst_225 = arith.constant 1.000000e+00 : f32
    %539 = vector.broadcast %cst_225 : f32 to vector<8x128xf32>
    %540 = arith.addf %539, %538 : vector<8x128xf32>
    %541 = arith.divf %539, %540 : vector<8x128xf32>
    %542 = vector.extract_strided_slice %530 {offsets = [0, 128], sizes = [8, 128], strides = [1, 1]} : vector<8x256xf32> to vector<8x128xf32>
    %543 = arith.mulf %541, %501 : vector<8x128xf32>
    %544 = arith.truncf %543 : vector<8x128xf32> to vector<8x128xbf16>
    %c0_226 = arith.constant 0 : index
    %c0_227 = arith.constant 0 : index
    %545 = vector.load %arg10[%c0_226, %c0_227] : memref<128x128xbf16, #tpu.memory_space<vmem>>, vector<128x128xbf16>
    %cst_228 = arith.constant dense<0.000000e+00> : vector<8x128xf32>
    %546 = tpu.matmul %544, %545, %cst_228 {dimension_numbers = #tpu.dot_dimension_numbers<[1], [0], [0], [1], [0, 0, 1, 1], [], []>} : vector<8x128xbf16>, vector<128x128xbf16>, vector<8x128xf32> -> vector<8x128xf32>
    %547 = arith.addf %542, %546 : vector<8x128xf32>
    %548 = arith.addf %547, %21 : vector<8x128xf32>
    %549 = math.tanh %548 : vector<8x128xf32>
    %cst_229 = arith.constant 1.000000e+00 : f32
    %550 = vector.broadcast %cst_229 : f32 to vector<8x128xf32>
    %551 = arith.subf %550, %541 : vector<8x128xf32>
    %552 = arith.mulf %551, %501 : vector<8x128xf32>
    %553 = arith.mulf %541, %549 : vector<8x128xf32>
    %554 = arith.addf %552, %553 : vector<8x128xf32>
    %555 = arith.truncf %554 : vector<8x128xf32> to vector<8x128xbf16>
    %c0_230 = arith.constant 0 : index
    %c0_231 = arith.constant 0 : index
    %556 = vector.load %arg14[%c0_230, %c0_231] : memref<128x128xbf16, #tpu.memory_space<vmem>>, vector<128x128xbf16>
    %cst_232 = arith.constant dense<0.000000e+00> : vector<8x128xf32>
    %557 = tpu.matmul %555, %556, %cst_232 {dimension_numbers = #tpu.dot_dimension_numbers<[1], [0], [0], [1], [0, 0, 1, 1], [], []>} : vector<8x128xbf16>, vector<128x128xbf16>, vector<8x128xf32> -> vector<8x128xf32>
    %558 = vector.broadcast %22 : vector<1x128xf32> to vector<8x128xf32>
    %559 = arith.addf %557, %558 : vector<8x128xf32>
    %560 = arith.index_cast %c5_i32_216 : i32 to index
    %c0_233 = arith.constant 0 : index
    %c0_234 = arith.constant 0 : index
    %561 = vector.load %arg16[%560, %c0_233, %c0_234] : memref<7x8x128xf32, #tpu.memory_space<vmem>>, vector<1x8x128xf32>
    %562 = vector.shape_cast %561 : vector<1x8x128xf32> to vector<8x128xf32>
    %563 = vector.shape_cast %559 : vector<8x128xf32> to vector<1x8x128xf32>
    tpu.vector_store %arg16[%560, %c0_233, %c0_234], %563 {strides = array<i32>} : memref<7x8x128xf32, #tpu.memory_space<vmem>>, vector<1x8x128xf32>,
    %c1_i32_235 = arith.constant 1 : i32
    %564 = arith.addi %c5_i32_216, %c1_i32_235 : i32
    %565 = arith.index_cast %564 : i32 to index
    %566 = memref.load %arg0[%565] : memref<8xi32, #tpu.memory_space<smem>>
    %c0_i32_236 = arith.constant 0 : i32
    %567 = arith.cmpi eq, %566, %c0_i32_236 : i32
    %568 = arith.extui %567 : i1 to i32
    %c0_i32_237 = arith.constant 0 : i32
    %569 = arith.cmpi ne, %568, %c0_i32_237 : i32
    scf.if %569 {
      %cst_261 = arith.constant -1.000000e+30 : f32
      %623 = vector.broadcast %cst_261 : f32 to vector<8x128xf32>
      %624 = arith.select %26, %559, %623 : vector<8x128xi1>, vector<8x128xf32>
      %cst_262 = arith.constant dense<0xFF800000> : vector<8xf32>
      %625 = vector.multi_reduction <maximumf>, %624, %cst_262 [1] : vector<8x128xf32> to vector<8xf32>
      %626 = vector.shape_cast %625 : vector<8xf32> to vector<8x1xf32>
      %627 = vector.broadcast %626 : vector<8x1xf32> to vector<8x128xf32>
      %628 = arith.cmpf oeq, %624, %627 : vector<8x128xf32>
      %cst_263 = arith.constant 1.280000e+02 : f32
      %629 = vector.broadcast %cst_263 : f32 to vector<8x128xf32>
      %630 = arith.select %628, %24, %629 : vector<8x128xi1>, vector<8x128xf32>
      %cst_264 = arith.constant dense<0x7F800000> : vector<8xf32>
      %631 = vector.multi_reduction <minimumf>, %630, %cst_264 [1] : vector<8x128xf32> to vector<8xf32>
      %632 = vector.shape_cast %631 : vector<8xf32> to vector<8x1xf32>
      %633 = vector.broadcast %632 : vector<8x1xf32> to vector<8x128xf32>
      %634 = arith.cmpf oeq, %24, %633 : vector<8x128xf32>
      %cst_265 = arith.constant 1.000000e+00 : f32
      %cst_266 = arith.constant 0.000000e+00 : f32
      %635 = vector.broadcast %cst_265 : f32 to vector<8x128xf32>
      %636 = vector.broadcast %cst_266 : f32 to vector<8x128xf32>
      %637 = arith.select %634, %635, %636 : vector<8x128xi1>, vector<8x128xf32>
      %638 = arith.truncf %637 : vector<8x128xf32> to vector<8x128xbf16>
      %c0_267 = arith.constant 0 : index
      %c0_268 = arith.constant 0 : index
      %639 = vector.load %arg13[%c0_267, %c0_268] : memref<128x256xbf16, #tpu.memory_space<vmem>>, vector<128x256xbf16>
      %cst_269 = arith.constant dense<0.000000e+00> : vector<8x256xf32>
      %640 = tpu.matmul %638, %639, %cst_269 {dimension_numbers = #tpu.dot_dimension_numbers<[1], [0], [0], [1], [0, 0, 1, 1], [], []>} : vector<8x128xbf16>, vector<128x256xbf16>, vector<8x256xf32> -> vector<8x256xf32>
      %c0_270 = arith.constant 0 : index
      %c0_271 = arith.constant 0 : index
      %641 = vector.load %arg19[%c0_270, %c0_271] : memref<8x256xf32, #tpu.memory_space<vmem>>, vector<8x256xf32>
      tpu.vector_store %arg19[%c0_270, %c0_271], %640 {strides = array<i32>} : memref<8x256xf32, #tpu.memory_space<vmem>>, vector<8x256xf32>,
    } else {
    }
    %c6_i32_238 = arith.constant 6 : i32
    %570 = arith.index_cast %c6_i32_238 : i32 to index
    %571 = memref.load %arg0[%570] : memref<8xi32, #tpu.memory_space<smem>>
    %572 = arith.sitofp %571 : i32 to f32
    %c8_i32_239 = arith.constant 8 : i32
    %573 = arith.muli %c6_i32_238, %c8_i32_239 : i32
    %574 = tpu.assume_multiple %573, 8 : i32
    %575 = arith.index_cast %574 : i32 to index
    %c0_240 = arith.constant 0 : index
    %576 = vector.load %arg18[%575, %c0_240] : memref<56x256xf32, #tpu.memory_space<vmem>>, vector<8x256xf32>
    %577 = vector.broadcast %572 : f32 to vector<8x256xf32>
    %578 = arith.mulf %577, %576 : vector<8x256xf32>
    %cst_241 = arith.constant 1.000000e+00 : f32
    %579 = arith.subf %cst_241, %572 : f32
    %c0_242 = arith.constant 0 : index
    %c0_243 = arith.constant 0 : index
    %580 = vector.load %arg19[%c0_242, %c0_243] : memref<8x256xf32, #tpu.memory_space<vmem>>, vector<8x256xf32>
    %581 = vector.broadcast %579 : f32 to vector<8x256xf32>
    %582 = arith.mulf %581, %580 : vector<8x256xf32>
    %583 = arith.addf %578, %582 : vector<8x256xf32>
    %584 = vector.extract_strided_slice %583 {offsets = [0, 0], sizes = [8, 128], strides = [1, 1]} : vector<8x256xf32> to vector<8x128xf32>
    %585 = arith.truncf %554 : vector<8x128xf32> to vector<8x128xbf16>
    %c0_244 = arith.constant 0 : index
    %c0_245 = arith.constant 0 : index
    %586 = vector.load %arg9[%c0_244, %c0_245] : memref<128x128xbf16, #tpu.memory_space<vmem>>, vector<128x128xbf16>
    %cst_246 = arith.constant dense<0.000000e+00> : vector<8x128xf32>
    %587 = tpu.matmul %585, %586, %cst_246 {dimension_numbers = #tpu.dot_dimension_numbers<[1], [0], [0], [1], [0, 0, 1, 1], [], []>} : vector<8x128xbf16>, vector<128x128xbf16>, vector<8x128xf32> -> vector<8x128xf32>
    %588 = arith.addf %584, %587 : vector<8x128xf32>
    %589 = arith.addf %588, %18 : vector<8x128xf32>
    %590 = arith.negf %589 : vector<8x128xf32>
    %591 = math.exp %590 : vector<8x128xf32>
    %cst_247 = arith.constant 1.000000e+00 : f32
    %592 = vector.broadcast %cst_247 : f32 to vector<8x128xf32>
    %593 = arith.addf %592, %591 : vector<8x128xf32>
    %594 = arith.divf %592, %593 : vector<8x128xf32>
    %595 = vector.extract_strided_slice %583 {offsets = [0, 128], sizes = [8, 128], strides = [1, 1]} : vector<8x256xf32> to vector<8x128xf32>
    %596 = arith.mulf %594, %554 : vector<8x128xf32>
    %597 = arith.truncf %596 : vector<8x128xf32> to vector<8x128xbf16>
    %c0_248 = arith.constant 0 : index
    %c0_249 = arith.constant 0 : index
    %598 = vector.load %arg10[%c0_248, %c0_249] : memref<128x128xbf16, #tpu.memory_space<vmem>>, vector<128x128xbf16>
    %cst_250 = arith.constant dense<0.000000e+00> : vector<8x128xf32>
    %599 = tpu.matmul %597, %598, %cst_250 {dimension_numbers = #tpu.dot_dimension_numbers<[1], [0], [0], [1], [0, 0, 1, 1], [], []>} : vector<8x128xbf16>, vector<128x128xbf16>, vector<8x128xf32> -> vector<8x128xf32>
    %600 = arith.addf %595, %599 : vector<8x128xf32>
    %601 = arith.addf %600, %21 : vector<8x128xf32>
    %602 = math.tanh %601 : vector<8x128xf32>
    %cst_251 = arith.constant 1.000000e+00 : f32
    %603 = vector.broadcast %cst_251 : f32 to vector<8x128xf32>
    %604 = arith.subf %603, %594 : vector<8x128xf32>
    %605 = arith.mulf %604, %554 : vector<8x128xf32>
    %606 = arith.mulf %594, %602 : vector<8x128xf32>
    %607 = arith.addf %605, %606 : vector<8x128xf32>
    %608 = arith.truncf %607 : vector<8x128xf32> to vector<8x128xbf16>
    %c0_252 = arith.constant 0 : index
    %c0_253 = arith.constant 0 : index
    %609 = vector.load %arg14[%c0_252, %c0_253] : memref<128x128xbf16, #tpu.memory_space<vmem>>, vector<128x128xbf16>
    %cst_254 = arith.constant dense<0.000000e+00> : vector<8x128xf32>
    %610 = tpu.matmul %608, %609, %cst_254 {dimension_numbers = #tpu.dot_dimension_numbers<[1], [0], [0], [1], [0, 0, 1, 1], [], []>} : vector<8x128xbf16>, vector<128x128xbf16>, vector<8x128xf32> -> vector<8x128xf32>
    %611 = vector.broadcast %22 : vector<1x128xf32> to vector<8x128xf32>
    %612 = arith.addf %610, %611 : vector<8x128xf32>
    %613 = arith.index_cast %c6_i32_238 : i32 to index
    %c0_255 = arith.constant 0 : index
    %c0_256 = arith.constant 0 : index
    %614 = vector.load %arg16[%613, %c0_255, %c0_256] : memref<7x8x128xf32, #tpu.memory_space<vmem>>, vector<1x8x128xf32>
    %615 = vector.shape_cast %614 : vector<1x8x128xf32> to vector<8x128xf32>
    %616 = vector.shape_cast %612 : vector<8x128xf32> to vector<1x8x128xf32>
    tpu.vector_store %arg16[%613, %c0_255, %c0_256], %616 {strides = array<i32>} : memref<7x8x128xf32, #tpu.memory_space<vmem>>, vector<1x8x128xf32>,
    %c1_i32_257 = arith.constant 1 : i32
    %617 = arith.addi %c6_i32_238, %c1_i32_257 : i32
    %618 = arith.index_cast %617 : i32 to index
    %619 = memref.load %arg0[%618] : memref<8xi32, #tpu.memory_space<smem>>
    %c0_i32_258 = arith.constant 0 : i32
    %620 = arith.cmpi eq, %619, %c0_i32_258 : i32
    %621 = arith.extui %620 : i1 to i32
    %c0_i32_259 = arith.constant 0 : i32
    %622 = arith.cmpi ne, %621, %c0_i32_259 : i32
    scf.if %622 {
      %cst_261 = arith.constant -1.000000e+30 : f32
      %623 = vector.broadcast %cst_261 : f32 to vector<8x128xf32>
      %624 = arith.select %26, %612, %623 : vector<8x128xi1>, vector<8x128xf32>
      %cst_262 = arith.constant dense<0xFF800000> : vector<8xf32>
      %625 = vector.multi_reduction <maximumf>, %624, %cst_262 [1] : vector<8x128xf32> to vector<8xf32>
      %626 = vector.shape_cast %625 : vector<8xf32> to vector<8x1xf32>
      %627 = vector.broadcast %626 : vector<8x1xf32> to vector<8x128xf32>
      %628 = arith.cmpf oeq, %624, %627 : vector<8x128xf32>
      %cst_263 = arith.constant 1.280000e+02 : f32
      %629 = vector.broadcast %cst_263 : f32 to vector<8x128xf32>
      %630 = arith.select %628, %24, %629 : vector<8x128xi1>, vector<8x128xf32>
      %cst_264 = arith.constant dense<0x7F800000> : vector<8xf32>
      %631 = vector.multi_reduction <minimumf>, %630, %cst_264 [1] : vector<8x128xf32> to vector<8xf32>
      %632 = vector.shape_cast %631 : vector<8xf32> to vector<8x1xf32>
      %633 = vector.broadcast %632 : vector<8x1xf32> to vector<8x128xf32>
      %634 = arith.cmpf oeq, %24, %633 : vector<8x128xf32>
      %cst_265 = arith.constant 1.000000e+00 : f32
      %cst_266 = arith.constant 0.000000e+00 : f32
      %635 = vector.broadcast %cst_265 : f32 to vector<8x128xf32>
      %636 = vector.broadcast %cst_266 : f32 to vector<8x128xf32>
      %637 = arith.select %634, %635, %636 : vector<8x128xi1>, vector<8x128xf32>
      %638 = arith.truncf %637 : vector<8x128xf32> to vector<8x128xbf16>
      %c0_267 = arith.constant 0 : index
      %c0_268 = arith.constant 0 : index
      %639 = vector.load %arg13[%c0_267, %c0_268] : memref<128x256xbf16, #tpu.memory_space<vmem>>, vector<128x256xbf16>
      %cst_269 = arith.constant dense<0.000000e+00> : vector<8x256xf32>
      %640 = tpu.matmul %638, %639, %cst_269 {dimension_numbers = #tpu.dot_dimension_numbers<[1], [0], [0], [1], [0, 0, 1, 1], [], []>} : vector<8x128xbf16>, vector<128x256xbf16>, vector<8x256xf32> -> vector<8x256xf32>
      %c0_270 = arith.constant 0 : index
      %c0_271 = arith.constant 0 : index
      %641 = vector.load %arg19[%c0_270, %c0_271] : memref<8x256xf32, #tpu.memory_space<vmem>>, vector<8x256xf32>
      tpu.vector_store %arg19[%c0_270, %c0_271], %640 {strides = array<i32>} : memref<8x256xf32, #tpu.memory_space<vmem>>, vector<8x256xf32>,
    } else {
    }
    %c7_i32_260 = arith.constant 7 : i32
    return
  }
}

</mosaic_0001>

<bundles_post_ra>
// kernel: tpu_custom_call.1
= control target key start
LH: loop header
LB: loop body
LE: loop exit
PB: predicated region body
PF: predicated region fallthrough
CT: control target
= control target key end

     0   :  { %s8556_s0 = inlined_call_operand.hbm [shape: s32[8], index: 0, kind: input, shape index: {}]   ;;  %s8557_s1 = inlined_call_operand.hbm [shape: bf16[64,128], index: 1, kind: input, shape index: {}]   ;;  %s8558_s2 = inlined_call_operand.hbm [shape: bf16[56,128], index: 2, kind: input, shape index: {}]   ;;  %s8559_s3 = inlined_call_operand.hbm [shape: bf16[128,256], index: 3, kind: input, shape index: {}]   ;;  %s8560_s4 = inlined_call_operand.hbm [shape: bf16[128,128], index: 4, kind: input, shape index: {}]   ;;  %s8561_s5 = inlined_call_operand.hbm [shape: bf16[128,128], index: 5, kind: input, shape index: {}]   ;;  %s8562_s6 = inlined_call_operand.vmem [shape: f32[1,128], index: 6, kind: input, shape index: {}]   ;;  %s8563_s7 = inlined_call_operand.vmem [shape: f32[1,128], index: 7, kind: input, shape index: {}]   ;;  %s8564_s8 = inlined_call_operand.hbm [shape: bf16[128,256], index: 8, kind: input, shape index: {}]   ;;  %s8565_s9 = inlined_call_operand.hbm [shape: bf16[128,128], index: 9, kind: input, shape index: {}]   ;;  %s8566_s10 = inlined_call_operand.hbm [shape: bf16[128,128], index: 10, kind: input, shape index: {}]   ;;  %s8567_s11 = inlined_call_operand.vmem [shape: f32[1,128], index: 11, kind: input, shape index: {}]   ;;  %s8568_s12 = inlined_call_operand.vmem [shape: f32[1,128], index: 12, kind: input, shape index: {}]   ;;  %s8569_s13 = inlined_call_operand.hbm [shape: bf16[128,256], index: 13, kind: input, shape index: {}]   ;;  %s8570_s14 = inlined_call_operand.hbm [shape: bf16[128,128], index: 14, kind: input, shape index: {}]   ;;  %s8571_s15 = inlined_call_operand.vmem [shape: f32[1,128], index: 15, kind: input, shape index: {}]   ;;  %s8572_s16 = inlined_call_operand.hbm [shape: f32[7,8,128], index: 16, kind: output, shape index: {}]  }
   0x1   :  { %8576 = sst [smem:[#allocation33_spill]] %s8556_s0 }
   0x2   :  { %21 = vsyncpa [#allocation8], 0 }
   0x3   :  { %22 = vsyncpa [#allocation6], 0 }
   0x4   :  { %23 = vsyncpa [#allocation11], 0 }
   0x5   :  { %24 = vsyncpa [#allocation14], 0 }
   0x6   :  { %25 = vsyncpa [#allocation17], 0 }
   0x7   :  { %26 = vsyncpa [#allocation20], 0 }
   0x8   :  { %27 = vsyncpa [#allocation23], 0 }
   0x9   :  { %28 = vsyncpa [#allocation7], 0  ;;  %s7450_s21 = smov [#allocation10]   ;;  %s7451_s23 = smov [#allocation13]  }
   0xa   :  { %s54_s22 = sshll.u32 %s7450_s21, 4  ;;  %s78_s24 = sshll.u32 %s7451_s23, 4  ;;  %s55_s22 = int_to_ptr.vmem [resolvable:$true] %s54_s22  ;;  %s7568_s24 = int_to_ptr.vmem [resolvable:$true] %s78_s24 }
   0xb   :  { %s7182_s27 = scalar_lea.hbm %s8558_s2, 448 }
   0xc   :  { %p7183_p0 = scmp.ne.s32.totalorder %s8558_s2, %s7182_s27  ;;  %p7186_p1 = scmp.lt.u32.totalorder %s7182_s27, %s8558_s2 }
   0xe   :  { %p7188_p2 = pnand %p7186_p1, %p7183_p0 }
  0x10   :  { %7191 = shalt.err (!%p7188_p2)
}
  0x11   :  { %s7192_s17 = scalar_lea.vmem %s55_s22, 448  ;;  %p7197_p4 = scmp.lt.s32.totalorder %s55_s22, %s55_s22 }
  0x12   :  { %p7193_p3 = scmp.ne.s32.totalorder %s55_s22, %s7192_s17  ;;  %p7198_p5 = scmp.lt.s32.totalorder %s7192_s17, %s7192_s17 }
  0x14   :  { %p7199_p6 = por %p7198_p5, %p7197_p4 }
  0x16   :  { %p7200_p7 = pnand %p7199_p6, %p7193_p3 }
  0x18   :  { %7203 = shalt.err (!%p7200_p7)
}
  0x19   :  { %s7452_s18 = smov 64   ;;  %s7453_s19 = smov 4  }
  0x1a   :  { %60 = dma.hbm_to_vmem [thread:$0]  %s8558_s2, 448, %s55_s22, [#allocation11], %s7452_s18, %s7452_s18, %s7453_s19  }
  0x1b   :  { %s7204_s26 = scalar_lea.hbm %s8560_s4, 1024 }
  0x1c   :  { %p7205_p8 = scmp.ne.s32.totalorder %s8560_s4, %s7204_s26  ;;  %p7208_p9 = scmp.lt.u32.totalorder %s7204_s26, %s8560_s4 }
  0x1e   :  { %p7210_p10 = pnand %p7208_p9, %p7205_p8 }
  0x20   :  { %7213 = shalt.err (!%p7210_p10)
}
  0x21   :  { %s7214_s0 = scalar_lea.vmem %s7568_s24, 1024  ;;  %p7219_p12 = scmp.lt.s32.totalorder %s7568_s24, %s7568_s24 }
  0x22   :  { %p7215_p11 = scmp.ne.s32.totalorder %s7568_s24, %s7214_s0  ;;  %p7220_p13 = scmp.lt.s32.totalorder %s7214_s0, %s7214_s0 }
  0x24   :  { %p7221_p0 = por %p7220_p13, %p7219_p12 }
  0x26   :  { %p7222_p1 = pnand %p7221_p0, %p7215_p11 }
  0x28   :  { %7225 = shalt.err (!%p7222_p1)
}
  0x29   :  { %84 = dma.hbm_to_vmem [thread:$0]  %s8560_s4, 1024, %s7568_s24, [#allocation14], %s7452_s18, %s7452_s18, %s7453_s19  }
  0x2a   :  { %s7454_s17 = smov [#allocation16]   ;;  %s7455_s21 = smov [#allocation19]  }
  0x2b   :  { %s106_s20 = sshll.u32 %s7454_s17, 4  ;;  %s130_s23 = sshll.u32 %s7455_s21, 4  ;;  %s107_s20 = int_to_ptr.vmem [resolvable:$true] %s106_s20  ;;  %s7605_s23 = int_to_ptr.vmem [resolvable:$true] %s130_s23 }
  0x2c   :  { %s7226_s27 = scalar_lea.hbm %s8564_s8, 2048 }
  0x2d   :  { %p7227_p2 = scmp.ne.s32.totalorder %s8564_s8, %s7226_s27  ;;  %p7230_p3 = scmp.lt.u32.totalorder %s7226_s27, %s8564_s8 }
  0x2f   :  { %p7232_p4 = pnand %p7230_p3, %p7227_p2 }
  0x31   :  { %7235 = shalt.err (!%p7232_p4)
}
  0x32   :  { %s7236_s4 = scalar_lea.vmem %s107_s20, 2048  ;;  %p7241_p6 = scmp.lt.s32.totalorder %s107_s20, %s107_s20 }
  0x33   :  { %p7237_p5 = scmp.ne.s32.totalorder %s107_s20, %s7236_s4  ;;  %p7242_p7 = scmp.lt.s32.totalorder %s7236_s4, %s7236_s4 }
  0x35   :  { %p7243_p8 = por %p7242_p7, %p7241_p6 }
  0x37   :  { %p7244_p9 = pnand %p7243_p8, %p7237_p5 }
  0x39   :  { %7247 = shalt.err (!%p7244_p9)
}
  0x3a   :  { %s8574_s24 = smov 128   ;;  %s7457_s2 = smov 8  }
  0x3b   :  { %112 = dma.hbm_to_vmem [thread:$0]  %s8564_s8, 2048, %s107_s20, [#allocation17], %s8574_s24, %s8574_s24, %s7457_s2  }
  0x3c   :  { %s7248_s26 = scalar_lea.hbm %s8566_s10, 1024 }
  0x3d   :  { %p7249_p10 = scmp.ne.s32.totalorder %s8566_s10, %s7248_s26  ;;  %p7252_p11 = scmp.lt.u32.totalorder %s7248_s26, %s8566_s10 }
  0x3f   :  { %p7254_p12 = pnand %p7252_p11, %p7249_p10 }
  0x41   :  { %7257 = shalt.err (!%p7254_p12)
}
  0x42   :  { %s7258_s0 = scalar_lea.vmem %s7605_s23, 1024  ;;  %p7263_p0 = scmp.lt.s32.totalorder %s7605_s23, %s7605_s23 }
  0x43   :  { %p7259_p13 = scmp.ne.s32.totalorder %s7605_s23, %s7258_s0  ;;  %p7264_p1 = scmp.lt.s32.totalorder %s7258_s0, %s7258_s0 }
  0x45   :  { %p7265_p2 = por %p7264_p1, %p7263_p0 }
  0x47   :  { %p7266_p3 = pnand %p7265_p2, %p7259_p13 }
  0x49   :  { %7269 = shalt.err (!%p7266_p3)
}
  0x4a   :  { %136 = dma.hbm_to_vmem [thread:$0]  %s8566_s10, 1024, %s7605_s23, [#allocation20], %s7452_s18, %s7452_s18, %s7453_s19  }
  0x4b   :  { %s8577_s17 = sld [smem:[#allocation33_spill]] }
  0x51   :  { %s7270_s21 = scalar_lea.hbm %s8577_s17, 16 }
  0x52   :  { %p7271_p4 = scmp.ne.s32.totalorder %s8577_s17, %s7270_s21  ;;  %p7274_p5 = scmp.lt.u32.totalorder %s7270_s21, %s8577_s17 }
  0x54   :  { %p7276_p6 = pnand %p7274_p5, %p7271_p4 }
  0x56   :  { %7279 = shalt.err (!%p7276_p6)
}
  0x57   :  { %s7458_s29 = smov [#allocation5]   ;;  %s7459_s10 = smov [#allocation9]  }
  0x58   :  { %36 = dma.hbm_to_smem %s8577_s17, 16, %s7458_s29, [#allocation8]  }
  0x59   :  { %s42_s23 = sshll.u32 %s7459_s10, 4  ;;  %s7460_s8 = smov [#allocation12]   ;;  %s43_s23 = int_to_ptr.vmem [resolvable:$true] %s42_s23 }
  0x5a   :  { %s66_s20 = sshll.u32 %s7460_s8, 4  ;;  %s7280_s25 = scalar_lea.hbm %s8557_s1, 512  ;;  %s67_s20 = int_to_ptr.vmem [resolvable:$true] %s66_s20 }
  0x5b   :  { %p7281_p7 = scmp.ne.s32.totalorder %s8557_s1, %s7280_s25  ;;  %p7284_p8 = scmp.lt.u32.totalorder %s7280_s25, %s8557_s1 }
  0x5d   :  { %p7286_p9 = pnand %p7284_p8, %p7281_p7 }
  0x5f   :  { %7289 = shalt.err (!%p7286_p9)
}
  0x60   :  { %s7290_s17 = scalar_lea.vmem %s43_s23, 512  ;;  %p7295_p11 = scmp.lt.s32.totalorder %s43_s23, %s43_s23 }
  0x61   :  { %p7291_p10 = scmp.ne.s32.totalorder %s43_s23, %s7290_s17  ;;  %p7296_p12 = scmp.lt.s32.totalorder %s7290_s17, %s7290_s17 }
  0x63   :  { %p7297_p13 = por %p7296_p12, %p7295_p11 }
  0x65   :  { %p7298_p0 = pnand %p7297_p13, %p7291_p10 }
  0x67   :  { %7301 = shalt.err (!%p7298_p0)
}
  0x68   :  { %48 = dma.hbm_to_vmem [thread:$0]  %s8557_s1, 512, %s43_s23, [#allocation6], %s7452_s18, %s7452_s18, %s7453_s19  }
  0x69   :  { %s7302_s0 = scalar_lea.hbm %s8559_s3, 2048 }
  0x6a   :  { %p7303_p1 = scmp.ne.s32.totalorder %s8559_s3, %s7302_s0  ;;  %p7306_p2 = scmp.lt.u32.totalorder %s7302_s0, %s8559_s3 }
  0x6c   :  { %p7308_p3 = pnand %p7306_p2, %p7303_p1 }
  0x6e   :  { %7311 = shalt.err (!%p7308_p3)
}
  0x6f   :  { %s7312_s25 = scalar_lea.vmem %s67_s20, 2048  ;;  %p7317_p5 = scmp.lt.s32.totalorder %s67_s20, %s67_s20 }
  0x70   :  { %p7313_p4 = scmp.ne.s32.totalorder %s67_s20, %s7312_s25  ;;  %p7318_p6 = scmp.lt.s32.totalorder %s7312_s25, %s7312_s25 }
  0x72   :  { %p7319_p7 = por %p7318_p6, %p7317_p5 }
  0x74   :  { %p7320_p8 = pnand %p7319_p7, %p7313_p4 }
  0x76   :  { %7323 = shalt.err (!%p7320_p8)
}
  0x77   :  { %s8578_s1 = smov 128   ;;  %s7461_s21 = smov [#allocation15]  }
  0x78   :  { %72 = dma.hbm_to_vmem [thread:$0]  %s8559_s3, 2048, %s67_s20, [#allocation11], %s8578_s1, %s8578_s1, %s7457_s2  }
  0x79   :  { %s90_s27 = sshll.u32 %s7461_s21, 4  ;;  %s7462_s17 = smov [#allocation18]   ;;  %s91_s27 = int_to_ptr.vmem [resolvable:$true] %s90_s27 }
  0x7a   :  { %s118_s28 = sshll.u32 %s7462_s17, 4  ;;  %s7324_s30 = scalar_lea.hbm %s8561_s5, 1024  ;;  %s119_s28 = int_to_ptr.vmem [resolvable:$true] %s118_s28 }
  0x7b   :  { %p7325_p9 = scmp.ne.s32.totalorder %s8561_s5, %s7324_s30  ;;  %p7328_p10 = scmp.lt.u32.totalorder %s7324_s30, %s8561_s5 }
  0x7d   :  { %p7330_p11 = pnand %p7328_p10, %p7325_p9 }
  0x7f   :  { %7333 = shalt.err (!%p7330_p11)
}
  0x80   :  { %s7334_s3 = scalar_lea.vmem %s91_s27, 1024  ;;  %p7339_p13 = scmp.lt.s32.totalorder %s91_s27, %s91_s27 }
  0x81   :  { %p7335_p12 = scmp.ne.s32.totalorder %s91_s27, %s7334_s3  ;;  %p7340_p0 = scmp.lt.s32.totalorder %s7334_s3, %s7334_s3 }
  0x83   :  { %p7341_p1 = por %p7340_p0, %p7339_p13 }
  0x85   :  { %p7342_p2 = pnand %p7341_p1, %p7335_p12 }
  0x87   :  { %7345 = shalt.err (!%p7342_p2)
}
  0x88   :  { %96 = dma.hbm_to_vmem [thread:$0]  %s8561_s5, 1024, %s91_s27, [#allocation14], %s7452_s18, %s7452_s18, %s7453_s19  }
  0x89   :  { %s7346_s26 = scalar_lea.hbm %s8565_s9, 1024 }
  0x8a   :  { %p7347_p3 = scmp.ne.s32.totalorder %s8565_s9, %s7346_s26  ;;  %p7350_p4 = scmp.lt.u32.totalorder %s7346_s26, %s8565_s9 }
  0x8c   :  { %p7352_p5 = pnand %p7350_p4, %p7347_p3 }
  0x8e   :  { %7355 = shalt.err (!%p7352_p5)
}
  0x8f   :  { %s7356_s30 = scalar_lea.vmem %s119_s28, 1024  ;;  %p7361_p7 = scmp.lt.s32.totalorder %s119_s28, %s119_s28 }
  0x90   :  { %p7357_p6 = scmp.ne.s32.totalorder %s119_s28, %s7356_s30  ;;  %p7362_p8 = scmp.lt.s32.totalorder %s7356_s30, %s7356_s30 }
  0x92   :  { %p7363_p9 = por %p7362_p8, %p7361_p7 }
  0x94   :  { %p7364_p10 = pnand %p7363_p9, %p7357_p6 }
  0x96   :  { %7367 = shalt.err (!%p7364_p10)
}
  0x97   :  { %124 = dma.hbm_to_vmem [thread:$0]  %s8565_s9, 1024, %s119_s28, [#allocation17], %s7452_s18, %s7452_s18, %s7453_s19  }
  0x98   :  { %s7463_s0 = smov [#allocation21]   ;;  %s7464_s8 = smov [#allocation22]  }
  0x99   :  { %s146_s10 = sshll.u32 %s7463_s0, 4  ;;  %s158_s4 = sshll.u32 %s7464_s8, 4  ;;  %s147_s10 = int_to_ptr.vmem [resolvable:$true] %s146_s10  ;;  %s159_s4 = int_to_ptr.vmem [resolvable:$true] %s158_s4 }
  0x9a   :  { %s7368_s22 = scalar_lea.hbm %s8569_s13, 2048 }
  0x9b   :  { %p7369_p11 = scmp.ne.s32.totalorder %s8569_s13, %s7368_s22  ;;  %p7372_p12 = scmp.lt.u32.totalorder %s7368_s22, %s8569_s13 }
  0x9d   :  { %p7374_p13 = pnand %p7372_p12, %p7369_p11 }
  0x9f   :  { %7377 = shalt.err (!%p7374_p13)
}
  0xa0   :  { %s7378_s9 = scalar_lea.vmem %s147_s10, 2048  ;;  %p7383_p1 = scmp.lt.s32.totalorder %s147_s10, %s147_s10 }
  0xa1   :  { %p7379_p0 = scmp.ne.s32.totalorder %s147_s10, %s7378_s9  ;;  %p7384_p2 = scmp.lt.s32.totalorder %s7378_s9, %s7378_s9 }
  0xa3   :  { %p7385_p3 = por %p7384_p2, %p7383_p1 }
  0xa5   :  { %p7386_p4 = pnand %p7385_p3, %p7379_p0 }
  0xa7   :  { %7389 = shalt.err (!%p7386_p4)
}
  0xa8   :  { %152 = dma.hbm_to_vmem [thread:$0]  %s8569_s13, 2048, %s147_s10, [#allocation20], %s8578_s1, %s8578_s1, %s7457_s2  }
  0xa9   :  { %s7390_s30 = scalar_lea.hbm %s8570_s14, 1024 }
  0xaa   :  { %p7391_p5 = scmp.ne.s32.totalorder %s8570_s14, %s7390_s30  ;;  %p7394_p6 = scmp.lt.u32.totalorder %s7390_s30, %s8570_s14 }
  0xac   :  { %p7396_p7 = pnand %p7394_p6, %p7391_p5 }
  0xae   :  { %7399 = shalt.err (!%p7396_p7)
}
  0xaf   :  { %s7400_s3 = scalar_lea.vmem %s159_s4, 1024  ;;  %p7405_p9 = scmp.lt.s32.totalorder %s159_s4, %s159_s4 }
  0xb0   :  { %p7401_p8 = scmp.ne.s32.totalorder %s159_s4, %s7400_s3  ;;  %p7406_p10 = scmp.lt.s32.totalorder %s7400_s3, %s7400_s3 }
  0xb2   :  { %p7407_p11 = por %p7406_p10, %p7405_p9 }
  0xb4   :  { %p7408_p12 = pnand %p7407_p11, %p7401_p8 }
  0xb6   :  { %7411 = shalt.err (!%p7408_p12)
}
  0xb7   :  { %164 = dma.hbm_to_vmem [thread:$0]  %s8570_s14, 1024, %s159_s4, [#allocation23], %s7452_s18, %s7452_s18, %s7453_s19  }
  0xb8   :  { %7434 = dma.done.wait [#allocation8], 16  }
  0xb9   :  { %7435 = vsyncadd [#allocation8], 4294967280 }
  0xba   :  { %7436 = dma.done.wait [#allocation6], 512  }
  0xbb   :  { %7437 = vsyncadd [#allocation6], 4294966784 }
  0xbc   :  { %7438 = dma.done.wait [#allocation11], 2496  }
  0xbd   :  { %7439 = vsyncadd [#allocation11], 4294964800 }
  0xbe   :  { %7440 = dma.done.wait [#allocation14], 2048  }
  0xbf   :  { %7441 = vsyncadd [#allocation14], 4294965248 }
  0xc0   :  { %7442 = dma.done.wait [#allocation17], 3072  }
  0xc1   :  { %7443 = vsyncadd [#allocation17], 4294964224 }
  0xc2   :  { %7444 = dma.done.wait [#allocation20], 3072  }
  0xc3   :  { %7445 = vsyncadd [#allocation20], 4294964224 }
  0xc4   :  { %7446 = dma.done.wait [#allocation23], 1024  }
  0xc5   :  { %7447 = vsyncadd [#allocation23], 4294966272 }
  0xc6   :  { %200 = sfence }
  0xc7   :  { %v6674_v0 = vld [vmem:[#allocation12 + $0x4] ss:$8 sps:$4 sm:$0xff]   ;;  %v660_v1 = vlaneseq  ;;  %v6676_v2 = vld [vmem:[#allocation12] ss:$8 sps:$4 sm:$0xff]   ;;  %v7465_v3 = vmov 0   ;;  %v7466_v4 = vmov 0.0  }
  0xc8   :  { %362 = vmatprep.mubr.bf16.mxu0 %v7465_v3  ;;  %629 = vst [vmem:[#allocation4] sm:$0xff] %v7466_v4  ;;  %630 = vst [vmem:[#allocation4 + $0x8] sm:$0xff] %v7466_v4  ;;  %576 = vmatprep.mubr.bf16.mxu1 %v7465_v3  ;;  %v6677_v5 = vld [vmem:[#allocation12 + $0x14] ss:$8 sps:$4 sm:$0xff]   ;;  %v6679_v7 = vld [vmem:[#allocation12 + $0x10] ss:$8 sps:$4 sm:$0xff]  }
  0xc9   :  { %330 = vmatprep.subr.bf16.mxu0 %v6674_v0  ;;  %v7748_v6 = vand.u32 127, %v660_v1  ;;  %v6680_v8 = vld [vmem:[#allocation12 + $0x24] ss:$8 sps:$4 sm:$0xff]   ;;  %v6682_v10 = vld [vmem:[#allocation12 + $0x20] ss:$8 sps:$4 sm:$0xff]   ;;  %v7762_v25 = vld [vmem:[#allocation13 + $0x10] sm:$0xff]  }
  0xca   :  { %331 = vmatpush1.bf16.msra.mxu0 %v6676_v2  ;;  %v6683_v11 = vld [vmem:[#allocation12 + $0x34] ss:$8 sps:$4 sm:$0xff]   ;;  %v6685_v12 = vld [vmem:[#allocation12 + $0x30] ss:$8 sps:$4 sm:$0xff]   ;;  %v6686_v13 = vld [vmem:[#allocation12 + $0x44] ss:$8 sps:$4 sm:$0xff]  }
  0xcb   :  { %332 = vmatprep.subr.bf16.mxu0 %v6677_v5  ;;  %v7751_v9 = vcvt.s32.f32 %v7748_v6  ;;  %vm663_vm0 = vcmp.lt.s32.totalorder %v7748_v6, 16  ;;  %v6688_v14 = vld [vmem:[#allocation12 + $0x40] ss:$8 sps:$4 sm:$0xff]   ;;  %v6689_v15 = vld [vmem:[#allocation12 + $0x54] ss:$8 sps:$4 sm:$0xff]   ;;  %v6701_v24 = vld [vmem:[#allocation9 + $0x8] sm:$0xff]  }
  0xcc   :  { %v6691_v16 = vld [vmem:[#allocation12 + $0x50] ss:$8 sps:$4 sm:$0xff]   ;;  %v6692_v17 = vld [vmem:[#allocation12 + $0x64] ss:$8 sps:$4 sm:$0xff]   ;;  %v6694_v18 = vld [vmem:[#allocation12 + $0x60] ss:$8 sps:$4 sm:$0xff]  }
  0xcd   :  { %v6695_v19 = vld [vmem:[#allocation12 + $0x74] ss:$8 sps:$4 sm:$0xff]   ;;  %v6697_v20 = vld [vmem:[#allocation12 + $0x70] ss:$8 sps:$4 sm:$0xff]   ;;  %v6698_v21 = vld [vmem:[#allocation9] sm:$0xff]   ;;  %vm7467_vm1 = vmmov 0  }
  0xce   :  { %333 = vmatpush1.bf16.msra.mxu0 %v6679_v7  ;;  %v7754_v22 = vld [vmem:[#allocation13] sm:$0xff]   ;;  %v7757_v23 = vld [vmem:[#allocation13 + $0x8] sm:$0xff]   ;;  %v7766_v26 = vld [vmem:[#allocation13 + $0x18] sm:$0xff]  }
  0xcf   :  { %334 = vmatprep.subr.bf16.mxu0 %v6680_v8  ;;  %v6704_v27 = vld [vmem:[#allocation9 + $0x10] sm:$0xff]   ;;  %v7771_v28 = vld [vmem:[#allocation13 + $0x20] sm:$0xff]   ;;  %v7776_v29 = vld [vmem:[#allocation13 + $0x28] sm:$0xff]  }
  0xd0   :  { %v6707_v30 = vld [vmem:[#allocation9 + $0x18] sm:$0xff]   ;;  %v7781_v31 = vld [vmem:[#allocation13 + $0x30] sm:$0xff]   ;;  %v6710_v33 = vld [vmem:[#allocation16 + $0x4] ss:$8 sps:$4 sm:$0xff]  }
  0xd1   :  { %v7785_v32 = vld [vmem:[#allocation13 + $0x38] sm:$0xff]   ;;  %v6712_v34 = vld [vmem:[#allocation16] ss:$8 sps:$4 sm:$0xff]   ;;  %544 = vmatprep.subr.bf16.mxu1 %v6710_v33  ;;  %v6716_v37 = vld [vmem:[#allocation16 + $0x24] ss:$8 sps:$4 sm:$0xff]  }
  0xd2   :  { %335 = vmatpush1.bf16.msra.mxu0 %v6682_v10  ;;  %545 = vmatpush1.bf16.msra.mxu1 %v6712_v34  ;;  %v6713_v35 = vld [vmem:[#allocation16 + $0x14] ss:$8 sps:$4 sm:$0xff]   ;;  %v6715_v36 = vld [vmem:[#allocation16 + $0x10] ss:$8 sps:$4 sm:$0xff]   ;;  %v6718_v38 = vld [vmem:[#allocation16 + $0x20] ss:$8 sps:$4 sm:$0xff]  }
  0xd3   :  { %336 = vmatprep.subr.bf16.mxu0 %v6683_v11  ;;  %546 = vmatprep.subr.bf16.mxu1 %v6713_v35  ;;  %v6719_v39 = vld [vmem:[#allocation16 + $0x34] ss:$8 sps:$4 sm:$0xff]   ;;  %v6721_v40 = vld [vmem:[#allocation16 + $0x30] ss:$8 sps:$4 sm:$0xff]   ;;  %v6722_v41 = vld [vmem:[#allocation16 + $0x44] ss:$8 sps:$4 sm:$0xff]  }
  0xd4   :  { %v6724_v42 = vld [vmem:[#allocation16 + $0x40] ss:$8 sps:$4 sm:$0xff]   ;;  %v6725_v43 = vld [vmem:[#allocation16 + $0x54] ss:$8 sps:$4 sm:$0xff]   ;;  %v6727_v44 = vld [vmem:[#allocation16 + $0x50] ss:$8 sps:$4 sm:$0xff]  }
  0xd5   :  { %v6728_v45 = vld [vmem:[#allocation16 + $0x64] ss:$8 sps:$4 sm:$0xff]   ;;  %v6730_v46 = vld [vmem:[#allocation16 + $0x60] ss:$8 sps:$4 sm:$0xff]   ;;  %v6731_v47 = vld [vmem:[#allocation16 + $0x74] ss:$8 sps:$4 sm:$0xff]  }
  0xd6   :  { %337 = vmatpush1.bf16.msra.mxu0 %v6685_v12  ;;  %547 = vmatpush1.bf16.msra.mxu1 %v6715_v36  ;;  %v6733_v48 = vld [vmem:[#allocation16 + $0x70] ss:$8 sps:$4 sm:$0xff]   ;;  %v6734_v49 = vld [vmem:[#allocation10] sm:$0xff]   ;;  %v6743_v58 = vld [vmem:[#allocation10 + $0x18] ss:$0 sps:$4 sm:$0xff]  }
  0xd7   :  { %338 = vmatprep.subr.bf16.mxu0 %v6686_v13  ;;  %548 = vmatprep.subr.bf16.mxu1 %v6716_v37  ;;  %v7813_v50 = vld [vmem:[#allocation15] sm:$0xff]   ;;  %v7817_v51 = vld [vmem:[#allocation15 + $0x8] sm:$0xff]   ;;  %v7821_v53 = vld [vmem:[#allocation15 + $0x10] sm:$0xff]  }
  0xd8   :  { %v6737_v52 = vld [vmem:[#allocation10 + $0x8] sm:$0xff]   ;;  %v7826_v54 = vld [vmem:[#allocation15 + $0x18] sm:$0xff]   ;;  %v7830_v56 = vld [vmem:[#allocation15 + $0x20] sm:$0xff]  }
  0xd9   :  { %v6740_v55 = vld [vmem:[#allocation10 + $0x10] sm:$0xff]   ;;  %v7834_v57 = vld [vmem:[#allocation15 + $0x28] sm:$0xff]  }
  0xda   :  { %339 = vmatpush1.bf16.msra.mxu0 %v6688_v14  ;;  %549 = vmatpush1.bf16.msra.mxu1 %v6718_v38  ;;  %v7838_v59 = vld [vmem:[#allocation15 + $0x30] sm:$0xff]   ;;  %v7844_v60 = vld [vmem:[#allocation15 + $0x38] sm:$0xff]  }
  0xdb   :  { %340 = vmatprep.subr.bf16.mxu0 %v6689_v15  ;;  %550 = vmatprep.subr.bf16.mxu1 %v6719_v39 }
  0xde   :  { %341 = vmatpush1.bf16.msra.mxu0 %v6691_v16  ;;  %551 = vmatpush1.bf16.msra.mxu1 %v6721_v40  ;;  %v7882_v16 = vld [vmem:[%s8562_s6] ss:$0 sm:$0xff]  ;;  %s1615_s6 = sld [smem:[#allocation5]] }
  0xdf   :  { %342 = vmatprep.subr.bf16.mxu0 %v6692_v17  ;;  %552 = vmatprep.subr.bf16.mxu1 %v6722_v41 }
  0xe2   :  { %343 = vmatpush1.bf16.msra.mxu0 %v6694_v18  ;;  %553 = vmatpush1.bf16.msra.mxu1 %v6724_v42 }
  0xe3   :  { %344 = vmatprep.subr.bf16.mxu0 %v6695_v19  ;;  %554 = vmatprep.subr.bf16.mxu1 %v6725_v43 }
  0xe4   :  { %s1616_s19 = scvt.s32.f32 %s1615_s6 }
  0xe6   :  { %345 = vmatpush1.bf16.msra.mxu0 %v6697_v20  ;;  %555 = vmatpush1.bf16.msra.mxu1 %v6727_v44  ;;  %s1624_s10 = ssub.f32 1.0, %s1616_s19 }
  0xe7   :  { %5901 = vmatprep.subr.bf16.mxu0 %v7466_v4  ;;  %556 = vmatprep.subr.bf16.mxu1 %v6728_v45  ;;  %v7906_v45 = vstv %s1616_s19 }
  0xe8   :  { %v1627_v42 = vstv %s1624_s10 }
  0xe9   :  { %363 = vmatmul.mubr.bf16.vlgmr.msra.gmra.mrb[0].mxu0 %v6698_v21 }
  0xea   :  { %5902 = vmatpush3.bf16.msra.mxu0 %v7754_v22  ;;  %372 = vmatprep.mubr.bf16.mxu0 %v7465_v3 }
  0xeb   :  { %5903 = vmatprep.subr.bf16.mxu0 %v7466_v4  ;;  %557 = vmatpush1.bf16.msra.mxu1 %v6730_v46 }
  0xec   :  { %558 = vmatprep.subr.bf16.mxu1 %v6731_v47 }
  0xee   :  { %5904 = vmatpush3.bf16.msra.mxu0 %v7757_v23 }
  0xef   :  { %5905 = vmatprep.subr.bf16.mxu0 %v7466_v4  ;;  %559 = vmatpush1.bf16.msra.mxu1 %v6733_v48  ;;  %v7908_v48 = vmul.f32 0.0, %v1627_v42 }
  0xf0   :  { %5921 = vmatprep.subr.bf16.mxu1 %v7466_v4 }
  0xf1   :  { %373 = vmatmul.mubr.bf16.gmra.mrb[4].mxu0 %v6701_v24 }
  0xf2   :  { %5906 = vmatpush3.bf16.msra.mxu0 %v7762_v25  ;;  %382 = vmatprep.mubr.bf16.mxu0 %v7465_v3 }
  0xf3   :  { %5907 = vmatprep.subr.bf16.mxu0 %v7466_v4  ;;  %577 = vmatmul.mubr.bf16.vlgmr.msra.gmra.mrb[0].mxu1 %v6734_v49 }
  0xf4   :  { %586 = vmatprep.mubr.bf16.mxu1 %v7465_v3  ;;  %5922 = vmatpush3.bf16.msra.mxu1 %v7813_v50 }
  0xf5   :  { %5923 = vmatprep.subr.bf16.mxu1 %v7466_v4 }
  0xf6   :  { %5908 = vmatpush3.bf16.msra.mxu0 %v7766_v26 }
  0xf7   :  { %5909 = vmatprep.subr.bf16.mxu0 %v7466_v4 }
  0xf8   :  { %5924 = vmatpush3.bf16.msra.mxu1 %v7817_v51 }
  0xf9   :  { %383 = vmatmul.mubr.bf16.gmra.mrb[8].mxu0 %v6704_v27  ;;  %5925 = vmatprep.subr.bf16.mxu1 %v7466_v4 }
  0xfa   :  { %5910 = vmatpush3.bf16.msra.mxu0 %v7771_v28  ;;  %392 = vmatprep.mubr.bf16.mxu0 %v7465_v3 }
  0xfb   :  { %5911 = vmatprep.subr.bf16.mxu0 %v7466_v4  ;;  %587 = vmatmul.mubr.bf16.gmra.mrb[4].mxu1 %v6737_v52 }
  0xfc   :  { %596 = vmatprep.mubr.bf16.mxu1 %v7465_v3  ;;  %5926 = vmatpush3.bf16.msra.mxu1 %v7821_v53 }
  0xfd   :  { %5927 = vmatprep.subr.bf16.mxu1 %v7466_v4 }
  0xfe   :  { %5912 = vmatpush3.bf16.msra.mxu0 %v7776_v29 }
  0xff   :  { %5913 = vmatprep.subr.bf16.mxu0 %v7466_v4 }
 0x100   :  { %5928 = vmatpush3.bf16.msra.mxu1 %v7826_v54 }
 0x101   :  { %393 = vmatmul.mubr.bf16.gmra.mrb[12].mxu0 %v6707_v30  ;;  %5929 = vmatprep.subr.bf16.mxu1 %v7466_v4 }
 0x102   :  { %5914 = vmatpush3.bf16.msra.mxu0 %v7781_v31  ;;  %5917 = vmatprep.mubr.msk.bf16.mxu0 %vm7467_vm1, %v7466_v4 }
 0x103   :  { %5915 = vmatprep.subr.bf16.mxu0 %v7466_v4  ;;  %597 = vmatmul.mubr.bf16.gmra.mrb[8].mxu1 %v6740_v55 }
 0x104   :  { %606 = vmatprep.mubr.bf16.mxu1 %v7465_v3  ;;  %5930 = vmatpush3.bf16.msra.mxu1 %v7830_v56 }
 0x105   :  { %5931 = vmatprep.subr.bf16.mxu1 %v7466_v4 }
 0x106   :  { %5916 = vmatpush3.bf16.msra.mxu0 %v7785_v32 }
 0x107   :  { %5941 = vmatprep.subr.bf16.mxu0 %v7466_v4 }
 0x108   :  { %5932 = vmatpush3.bf16.msra.mxu1 %v7834_v57 }
 0x109   :  { %5918 = vmatmul.mubr.bf16.vlgmr.msra.gmra.mrb[16].mxu0 %v7465_v3  ;;  %5933 = vmatprep.subr.bf16.mxu1 %v7466_v4 }
 0x10a   :  { %5942 = vmatpush3.bf16.msra.mxu0 %v7754_v22  ;;  %5957 = vmatprep.mubr.msk.bf16.mxu0 %vm7467_vm1, %v7466_v4 }
 0x10b   :  { %5943 = vmatprep.subr.bf16.mxu0 %v7466_v4  ;;  %607 = vmatmul.mubr.bf16.gmra.mrb[12].mxu1 %v6743_v58 }
 0x10c   :  { %5937 = vmatprep.mubr.msk.bf16.mxu1 %vm7467_vm1, %v7466_v4  ;;  %5934 = vmatpush3.bf16.msra.mxu1 %v7838_v59 }
 0x10d   :  { %5935 = vmatprep.subr.bf16.mxu1 %v7466_v4 }
 0x10e   :  { %5944 = vmatpush3.bf16.msra.mxu0 %v7757_v23 }
 0x10f   :  { %5945 = vmatprep.subr.bf16.mxu0 %v7466_v4 }
 0x110   :  { %5936 = vmatpush3.bf16.msra.mxu1 %v7844_v60 }
 0x111   :  { %5961 = vmatprep.subr.bf16.mxu1 %v7466_v4 }
 0x112   :  { %5946 = vmatpush3.bf16.msra.mxu0 %v7762_v25 }
 0x113   :  { %5947 = vmatprep.subr.bf16.mxu0 %v7466_v4 }
 0x116   :  { %5948 = vmatpush3.bf16.msra.mxu0 %v7766_v26 }
 0x117   :  { %5949 = vmatprep.subr.bf16.mxu0 %v7466_v4 }
 0x11a   :  { %5950 = vmatpush3.bf16.msra.mxu0 %v7771_v28 }
 0x11b   :  { %5951 = vmatprep.subr.bf16.mxu0 %v7466_v4 }
 0x11e   :  { %5952 = vmatpush3.bf16.msra.mxu0 %v7776_v29 }
 0x11f   :  { %5953 = vmatprep.subr.bf16.mxu0 %v7466_v4 }
 0x122   :  { %5954 = vmatpush3.bf16.msra.mxu0 %v7781_v31 }
 0x123   :  { %5955 = vmatprep.subr.bf16.mxu0 %v7466_v4 }
 0x126   :  { %5956 = vmatpush3.bf16.msra.mxu0 %v7785_v32 }
 0x127   :  { %5981 = vmatprep.subr.bf16.mxu0 %v7466_v4 }
 0x1bc   :  { %v364_v61 = vpop.f32.mrb[0].mxu0 }
 0x1bd   :  { %v7849_v62 = vpop.f32.mrb[1].mxu0 }
 0x1be   :  { %v7851_v63 = vpop.f32.mrb[2].mxu0 }
 0x1bf   :  { %v7853_v0 = vpop.f32.mrb[3].mxu0 }
 0x1c4   :  { %v7855_v1 = vpop.f32.mrb[4].mxu0 }
 0x1c5   :  { %v7857_v2 = vpop.f32.mrb[5].mxu0 }
 0x1c6   :  { %v7859_v3 = vpop.f32.mrb[6].mxu0  ;;  %v578_v37 = vpop.f32.mrb[0].mxu1 }
 0x1c7   :  { %v7861_v5 = vpop.f32.mrb[7].mxu0  ;;  %615 = vst [vmem:[#allocation3] sm:$0xff] %v578_v37  ;;  %v580_v38 = vpop.f32.mrb[1].mxu1 }
 0x1c8   :  { %616 = vst [vmem:[#allocation3 + $0x8] sm:$0xff] %v580_v38  ;;  %v582_v39 = vpop.f32.mrb[2].mxu1 }
 0x1c9   :  { %617 = vst [vmem:[#allocation3 + $0x10] sm:$0xff] %v582_v39  ;;  %v584_v40 = vpop.f32.mrb[3].mxu1 }
 0x1ca   :  { %618 = vst [vmem:[#allocation3 + $0x18] sm:$0xff] %v584_v40 }
 0x1cc   :  { %v7863_v7 = vpop.f32.mrb[8].mxu0 }
 0x1cd   :  { %v7865_v8 = vpop.f32.mrb[9].mxu0 }
 0x1ce   :  { %v7867_v10 = vpop.f32.mrb[10].mxu0  ;;  %v588_v41 = vpop.f32.mrb[4].mxu1 }
 0x1cf   :  { %v7869_v11 = vpop.f32.mrb[11].mxu0  ;;  %619 = vst [vmem:[#allocation3 + $0x20] sm:$0xff] %v588_v41  ;;  %v590_v43 = vpop.f32.mrb[5].mxu1  ;;  %v1620_v46 = vld [vmem:[#allocation3 + $0x8] sm:$0xff] }
 0x1d0   :  { %620 = vst [vmem:[#allocation3 + $0x28] sm:$0xff] %v590_v43  ;;  %v592_v44 = vpop.f32.mrb[6].mxu1  ;;  %v1623_v49 = vmul.f32 %v7906_v45, %v1620_v46 }
 0x1d1   :  { %621 = vst [vmem:[#allocation3 + $0x30] sm:$0xff] %v592_v44  ;;  %v594_v47 = vpop.f32.mrb[7].mxu1 }
 0x1d2   :  { %622 = vst [vmem:[#allocation3 + $0x38] sm:$0xff] %v594_v47  ;;  %v7912_v52 = vadd.f32 %v7908_v48, %v1623_v49 }
 0x1d4   :  { %v7871_v12 = vpop.f32.mrb[12].mxu0 }
 0x1d5   :  { %v7873_v13 = vpop.f32.mrb[13].mxu0 }
 0x1d6   :  { %v7875_v14 = vpop.f32.mrb[14].mxu0  ;;  %v598_v55 = vpop.f32.mrb[8].mxu1 }
 0x1d7   :  { %v7877_v15 = vpop.f32.mrb[15].mxu0  ;;  %623 = vst [vmem:[#allocation3 + $0x40] sm:$0xff] %v598_v55  ;;  %v600_v58 = vpop.f32.mrb[9].mxu1 }
 0x1d8   :  { %624 = vst [vmem:[#allocation3 + $0x48] sm:$0xff] %v600_v58 }
 0x1dc   :  { %v767_v17 = vpop.f32.mrb[16].mxu0 }
 0x1dd   :  { %v773_v18 = vadd.f32 %v767_v17, %v364_v61  ;;  %v5919_v19 = vpop.f32.mrb[17].mxu0  ;;  %v602_v61 = vpop.f32.mrb[10].mxu1 }
 0x1de   :  { %v770_v20 = vpop.f32.mrb[18].mxu0  ;;  %625 = vst [vmem:[#allocation3 + $0x50] sm:$0xff] %v602_v61  ;;  %v604_v17 = vpop.f32.mrb[11].mxu1 }
 0x1df   :  { %v774_v21 = vadd.f32 %v7882_v16, %v773_v18  ;;  %v5920_v24 = vpop.f32.mrb[19].mxu0  ;;  %626 = vst [vmem:[#allocation3 + $0x58] sm:$0xff] %v604_v17  ;;  %v608_v18 = vpop.f32.mrb[12].mxu1 }
 0x1e0   :  { %627 = vst [vmem:[#allocation3 + $0x60] sm:$0xff] %v608_v18  ;;  %v610_v19 = vpop.f32.mrb[13].mxu1  ;;  %v7917_v24 = vld [vmem:[%s8563_s7] ss:$0 sm:$0xff] }
 0x1e1   :  { %v5230_v27 = vmul.f32 -1.442695, %v774_v21  ;;  %628 = vst [vmem:[#allocation3 + $0x68] sm:$0xff] %v610_v19  ;;  %v612_v20 = vpop.f32.mrb[14].mxu1 }
 0x1e2   :  { %v613_v21 = vpop.f32.mrb[15].mxu1 }
 0x1e3   :  { %6770 = vpow2.f32 %v5230_v27 }
 0x1ed   :  { %v6771_v30 = vpop.eup %6770 }
 0x1ee   :  { %v778_v33 = vadd.f32 1.0, %v6771_v30 }
 0x1f0   :  { %6772 = vrcp.f32 %v778_v33 }
 0x1fa   :  { %v7885_v34 = vpop.eup %6772 }
 0x1fb   :  { %v781_v35 = vmul.f32 0.0, %v7885_v34  ;;  %v890_v38 = vsub.f32 1.0, %v7885_v34 }
 0x1fd   :  { %v782_v36 = vpack.c.bf16 %v781_v35, %v781_v35  ;;  %v891_v40 = vmul.f32 0.0, %v890_v38 }
 0x1ff   :  { %5938 = vmatmul.mubr.bf16.vlgmr.msra.gmra.mrb[16].mxu1 %v782_v36 }
 0x200   :  { %5962 = vmatpush3.bf16.msra.mxu1 %v7813_v50  ;;  %5977 = vmatprep.mubr.msk.bf16.mxu1 %vm7467_vm1, %v7466_v4 }
 0x201   :  { %5963 = vmatprep.subr.bf16.mxu1 %v7466_v4 }
 0x204   :  { %5964 = vmatpush3.bf16.msra.mxu1 %v7817_v51 }
 0x205   :  { %5965 = vmatprep.subr.bf16.mxu1 %v7466_v4 }
 0x208   :  { %5966 = vmatpush3.bf16.msra.mxu1 %v7821_v53 }
 0x209   :  { %5967 = vmatprep.subr.bf16.mxu1 %v7466_v4 }
 0x20c   :  { %5968 = vmatpush3.bf16.msra.mxu1 %v7826_v54 }
 0x20d   :  { %5969 = vmatprep.subr.bf16.mxu1 %v7466_v4 }
 0x210   :  { %5970 = vmatpush3.bf16.msra.mxu1 %v7830_v56 }
 0x211   :  { %5971 = vmatprep.subr.bf16.mxu1 %v7466_v4 }
 0x214   :  { %5972 = vmatpush3.bf16.msra.mxu1 %v7834_v57 }
 0x215   :  { %5973 = vmatprep.subr.bf16.mxu1 %v7466_v4 }
 0x218   :  { %5974 = vmatpush3.bf16.msra.mxu1 %v7838_v59 }
 0x219   :  { %5975 = vmatprep.subr.bf16.mxu1 %v7466_v4 }
 0x21c   :  { %5976 = vmatpush3.bf16.msra.mxu1 %v7844_v60 }
 0x21d   :  { %6001 = vmatprep.subr.bf16.mxu1 %v7466_v4 }
 0x2d2   :  { %v881_v27 = vpop.f32.mrb[16].mxu1 }
 0x2d3   :  { %v887_v30 = vadd.f32 %v881_v27, %v7849_v62  ;;  %v5939_v33 = vpop.f32.mrb[17].mxu1 }
 0x2d4   :  { %v884_v35 = vpop.f32.mrb[18].mxu1 }
 0x2d5   :  { %v888_v36 = vadd.f32 %v7917_v24, %v887_v30  ;;  %v5940_v37 = vpop.f32.mrb[19].mxu1 }
 0x2d7   :  { %6774 = vtanh.f32 %v888_v36 }
 0x2e1   :  { %v6775_v39 = vpop.eup %6774 }
 0x2e2   :  { %v892_v41 = vmul.f32 %v6775_v39, %v7885_v34 }
 0x2e4   :  { %v893_v42 = vadd.f32 %v892_v41, %v891_v40 }
 0x2e6   :  { %v899_v43 = vpack.c.bf16 %v893_v42, %v893_v42 }
 0x2e8   :  { %5958 = vmatmul.mubr.bf16.vlgmr.msra.gmra.mrb[20].mxu0 %v899_v43 }
 0x2e9   :  { %5982 = vmatpush3.bf16.msra.mxu0 %v7754_v22  ;;  %5997 = vmatprep.mubr.msk.bf16.mxu0 %vm7467_vm1, %v7466_v4 }
 0x2ea   :  { %5983 = vmatprep.subr.bf16.mxu0 %v7466_v4 }
 0x2ed   :  { %5984 = vmatpush3.bf16.msra.mxu0 %v7757_v23 }
 0x2ee   :  { %5985 = vmatprep.subr.bf16.mxu0 %v7466_v4 }
 0x2f1   :  { %5986 = vmatpush3.bf16.msra.mxu0 %v7762_v25 }
 0x2f2   :  { %5987 = vmatprep.subr.bf16.mxu0 %v7466_v4 }
 0x2f5   :  { %5988 = vmatpush3.bf16.msra.mxu0 %v7766_v26 }
 0x2f6   :  { %5989 = vmatprep.subr.bf16.mxu0 %v7466_v4 }
 0x2f9   :  { %5990 = vmatpush3.bf16.msra.mxu0 %v7771_v28 }
 0x2fa   :  { %5991 = vmatprep.subr.bf16.mxu0 %v7466_v4 }
 0x2fd   :  { %5992 = vmatpush3.bf16.msra.mxu0 %v7776_v29 }
 0x2fe   :  { %5993 = vmatprep.subr.bf16.mxu0 %v7466_v4 }
 0x301   :  { %5994 = vmatpush3.bf16.msra.mxu0 %v7781_v31 }
 0x302   :  { %5995 = vmatprep.subr.bf16.mxu0 %v7466_v4 }
 0x305   :  { %5996 = vmatpush3.bf16.msra.mxu0 %v7785_v32 }
 0x306   :  { %6021 = vmatprep.subr.bf16.mxu0 %v7466_v4 }
 0x3bb   :  { %v934_v62 = vpop.f32.mrb[20].mxu0 }
 0x3bc   :  { %v940_v34 = vadd.f32 %v934_v62, %v7851_v63  ;;  %v5959_v44 = vpop.f32.mrb[21].mxu0 }
 0x3bd   :  { %v937_v46 = vpop.f32.mrb[22].mxu0 }
 0x3be   :  { %v941_v47 = vadd.f32 %v7882_v16, %v940_v34  ;;  %v5960_v49 = vpop.f32.mrb[23].mxu0 }
 0x3c0   :  { %v5239_v55 = vmul.f32 -1.442695, %v941_v47 }
 0x3c2   :  { %6776 = vpow2.f32 %v5239_v55 }
 0x3cc   :  { %v6777_v58 = vpop.eup %6776 }
 0x3cd   :  { %v945_v61 = vadd.f32 1.0, %v6777_v58 }
 0x3cf   :  { %6778 = vrcp.f32 %v945_v61 }
 0x3d9   :  { %v6779_v17 = vpop.eup %6778 }
 0x3da   :  { %v948_v18 = vmul.f32 %v6779_v17, %v893_v42  ;;  %v993_v35 = vsub.f32 1.0, %v6779_v17 }
 0x3dc   :  { %v949_v19 = vpack.c.bf16 %v948_v18, %v948_v18  ;;  %v994_v37 = vmul.f32 %v993_v35, %v893_v42 }
 0x3de   :  { %5978 = vmatmul.mubr.bf16.vlgmr.msra.gmra.mrb[20].mxu1 %v949_v19 }
 0x3df   :  { %6002 = vmatpush3.bf16.msra.mxu1 %v7813_v50  ;;  %6017 = vmatprep.mubr.msk.bf16.mxu1 %vm7467_vm1, %v7466_v4 }
 0x3e0   :  { %6003 = vmatprep.subr.bf16.mxu1 %v7466_v4 }
 0x3e3   :  { %6004 = vmatpush3.bf16.msra.mxu1 %v7817_v51 }
 0x3e4   :  { %6005 = vmatprep.subr.bf16.mxu1 %v7466_v4 }
 0x3e7   :  { %6006 = vmatpush3.bf16.msra.mxu1 %v7821_v53 }
 0x3e8   :  { %6007 = vmatprep.subr.bf16.mxu1 %v7466_v4 }
 0x3eb   :  { %6008 = vmatpush3.bf16.msra.mxu1 %v7826_v54 }
 0x3ec   :  { %6009 = vmatprep.subr.bf16.mxu1 %v7466_v4 }
 0x3ef   :  { %6010 = vmatpush3.bf16.msra.mxu1 %v7830_v56 }
 0x3f0   :  { %6011 = vmatprep.subr.bf16.mxu1 %v7466_v4 }
 0x3f3   :  { %6012 = vmatpush3.bf16.msra.mxu1 %v7834_v57 }
 0x3f4   :  { %6013 = vmatprep.subr.bf16.mxu1 %v7466_v4 }
 0x3f7   :  { %6014 = vmatpush3.bf16.msra.mxu1 %v7838_v59 }
 0x3f8   :  { %6015 = vmatprep.subr.bf16.mxu1 %v7466_v4 }
 0x3fb   :  { %6016 = vmatpush3.bf16.msra.mxu1 %v7844_v60 }
 0x3fc   :  { %6041 = vmatprep.subr.bf16.mxu1 %v7466_v4 }
 0x4b1   :  { %v984_v63 = vpop.f32.mrb[20].mxu1 }
 0x4b2   :  { %v990_v20 = vadd.f32 %v984_v63, %v7853_v0  ;;  %v5979_v21 = vpop.f32.mrb[21].mxu1 }
 0x4b3   :  { %v987_v27 = vpop.f32.mrb[22].mxu1 }
 0x4b4   :  { %v991_v30 = vadd.f32 %v7917_v24, %v990_v20  ;;  %v5980_v33 = vpop.f32.mrb[23].mxu1 }
 0x4b6   :  { %6780 = vtanh.f32 %v991_v30 }
 0x4c0   :  { %v6781_v36 = vpop.eup %6780 }
 0x4c1   :  { %v995_v38 = vmul.f32 %v6781_v36, %v6779_v17  ;;  %v8004_v36 = vld [vmem:[#allocation4] sm:$0xff] }
 0x4c3   :  { %v996_v39 = vadd.f32 %v995_v38, %v994_v37 }
 0x4c5   :  { %v1002_v40 = vpack.c.bf16 %v996_v39, %v996_v39 }
 0x4c7   :  { %5998 = vmatmul.mubr.bf16.vlgmr.msra.gmra.mrb[24].mxu0 %v1002_v40 }
 0x4c8   :  { %6022 = vmatpush3.bf16.msra.mxu0 %v7754_v22  ;;  %6037 = vmatprep.mubr.msk.bf16.mxu0 %vm7467_vm1, %v7466_v4 }
 0x4c9   :  { %6023 = vmatprep.subr.bf16.mxu0 %v7466_v4 }
 0x4cc   :  { %6024 = vmatpush3.bf16.msra.mxu0 %v7757_v23 }
 0x4cd   :  { %6025 = vmatprep.subr.bf16.mxu0 %v7466_v4 }
 0x4d0   :  { %6026 = vmatpush3.bf16.msra.mxu0 %v7762_v25 }
 0x4d1   :  { %6027 = vmatprep.subr.bf16.mxu0 %v7466_v4 }
 0x4d4   :  { %6028 = vmatpush3.bf16.msra.mxu0 %v7766_v26 }
 0x4d5   :  { %6029 = vmatprep.subr.bf16.mxu0 %v7466_v4 }
 0x4d8   :  { %6030 = vmatpush3.bf16.msra.mxu0 %v7771_v28 }
 0x4d9   :  { %6031 = vmatprep.subr.bf16.mxu0 %v7466_v4 }
 0x4dc   :  { %6032 = vmatpush3.bf16.msra.mxu0 %v7776_v29 }
 0x4dd   :  { %6033 = vmatprep.subr.bf16.mxu0 %v7466_v4 }
 0x4e0   :  { %6034 = vmatpush3.bf16.msra.mxu0 %v7781_v31 }
 0x4e1   :  { %6035 = vmatprep.subr.bf16.mxu0 %v7466_v4 }
 0x4e4   :  { %6036 = vmatpush3.bf16.msra.mxu0 %v7785_v32 }
 0x4e5   :  { %6061 = vmatprep.subr.bf16.mxu0 %v7466_v4 }
 0x59a   :  { %v1037_v0 = vpop.f32.mrb[24].mxu0 }
 0x59b   :  { %v1043_v41 = vadd.f32 %v1037_v0, %v7855_v1  ;;  %v5999_v42 = vpop.f32.mrb[25].mxu0 }
 0x59c   :  { %v1040_v43 = vpop.f32.mrb[26].mxu0 }
 0x59d   :  { %v1044_v62 = vadd.f32 %v7882_v16, %v1043_v41  ;;  %v6000_v34 = vpop.f32.mrb[27].mxu0 }
 0x59f   :  { %v5240_v44 = vmul.f32 -1.442695, %v1044_v62 }
 0x5a1   :  { %6782 = vpow2.f32 %v5240_v44 }
 0x5ab   :  { %v6783_v46 = vpop.eup %6782 }
 0x5ac   :  { %v1048_v47 = vadd.f32 1.0, %v6783_v46 }
 0x5ae   :  { %6784 = vrcp.f32 %v1048_v47 }
 0x5b8   :  { %v6785_v49 = vpop.eup %6784 }
 0x5b9   :  { %v1051_v55 = vmul.f32 %v6785_v49, %v996_v39  ;;  %v1096_v20 = vsub.f32 1.0, %v6785_v49 }
 0x5bb   :  { %v1052_v58 = vpack.c.bf16 %v1051_v55, %v1051_v55  ;;  %v1097_v27 = vmul.f32 %v1096_v20, %v996_v39 }
 0x5bd   :  { %6018 = vmatmul.mubr.bf16.vlgmr.msra.gmra.mrb[24].mxu1 %v1052_v58 }
 0x5be   :  { %6042 = vmatpush3.bf16.msra.mxu1 %v7813_v50  ;;  %6057 = vmatprep.mubr.msk.bf16.mxu1 %vm7467_vm1, %v7466_v4 }
 0x5bf   :  { %6043 = vmatprep.subr.bf16.mxu1 %v7466_v4 }
 0x5c2   :  { %6044 = vmatpush3.bf16.msra.mxu1 %v7817_v51 }
 0x5c3   :  { %6045 = vmatprep.subr.bf16.mxu1 %v7466_v4 }
 0x5c6   :  { %6046 = vmatpush3.bf16.msra.mxu1 %v7821_v53 }
 0x5c7   :  { %6047 = vmatprep.subr.bf16.mxu1 %v7466_v4 }
 0x5ca   :  { %6048 = vmatpush3.bf16.msra.mxu1 %v7826_v54 }
 0x5cb   :  { %6049 = vmatprep.subr.bf16.mxu1 %v7466_v4 }
 0x5ce   :  { %6050 = vmatpush3.bf16.msra.mxu1 %v7830_v56 }
 0x5cf   :  { %6051 = vmatprep.subr.bf16.mxu1 %v7466_v4 }
 0x5d2   :  { %6052 = vmatpush3.bf16.msra.mxu1 %v7834_v57 }
 0x5d3   :  { %6053 = vmatprep.subr.bf16.mxu1 %v7466_v4 }
 0x5d6   :  { %6054 = vmatpush3.bf16.msra.mxu1 %v7838_v59 }
 0x5d7   :  { %6055 = vmatprep.subr.bf16.mxu1 %v7466_v4 }
 0x5da   :  { %6056 = vmatpush3.bf16.msra.mxu1 %v7844_v60 }
 0x5db   :  { %6081 = vmatprep.subr.bf16.mxu1 %v7466_v4 }
 0x690   :  { %v1087_v1 = vpop.f32.mrb[24].mxu1 }
 0x691   :  { %v1093_v61 = vadd.f32 %v1087_v1, %v7857_v2  ;;  %v6019_v17 = vpop.f32.mrb[25].mxu1 }
 0x692   :  { %v1090_v18 = vpop.f32.mrb[26].mxu1 }
 0x693   :  { %v1094_v19 = vadd.f32 %v7917_v24, %v1093_v61  ;;  %v6020_v63 = vpop.f32.mrb[27].mxu1 }
 0x695   :  { %6786 = vtanh.f32 %v1094_v19 }
 0x69f   :  { %v6787_v21 = vpop.eup %6786 }
 0x6a0   :  { %v1098_v30 = vmul.f32 %v6787_v21, %v6785_v49 }
 0x6a2   :  { %v1099_v33 = vadd.f32 %v1098_v30, %v1097_v27 }
 0x6a4   :  { %v1105_v35 = vpack.c.bf16 %v1099_v33, %v1099_v33 }
 0x6a6   :  { %6038 = vmatmul.mubr.bf16.vlgmr.msra.gmra.mrb[28].mxu0 %v1105_v35 }
 0x6a7   :  { %6062 = vmatpush3.bf16.msra.mxu0 %v7754_v22  ;;  %6077 = vmatprep.mubr.msk.bf16.mxu0 %vm7467_vm1, %v8004_v36 }
 0x6a8   :  { %6063 = vmatprep.subr.bf16.mxu0 %v8004_v36 }
 0x6ab   :  { %6064 = vmatpush3.bf16.msra.mxu0 %v7757_v23 }
 0x6ac   :  { %6065 = vmatprep.subr.bf16.mxu0 %v8004_v36 }
 0x6af   :  { %6066 = vmatpush3.bf16.msra.mxu0 %v7762_v25 }
 0x6b0   :  { %6067 = vmatprep.subr.bf16.mxu0 %v8004_v36 }
 0x6b3   :  { %6068 = vmatpush3.bf16.msra.mxu0 %v7766_v26 }
 0x6b4   :  { %6069 = vmatprep.subr.bf16.mxu0 %v8004_v36 }
 0x6b7   :  { %6070 = vmatpush3.bf16.msra.mxu0 %v7771_v28 }
 0x6b8   :  { %6071 = vmatprep.subr.bf16.mxu0 %v8004_v36 }
 0x6bb   :  { %6072 = vmatpush3.bf16.msra.mxu0 %v7776_v29 }
 0x6bc   :  { %6073 = vmatprep.subr.bf16.mxu0 %v8004_v36 }
 0x6bf   :  { %6074 = vmatpush3.bf16.msra.mxu0 %v7781_v31 }
 0x6c0   :  { %6075 = vmatprep.subr.bf16.mxu0 %v8004_v36 }
 0x6c3   :  { %6076 = vmatpush3.bf16.msra.mxu0 %v7785_v32 }
 0x6c4   :  { %6101 = vmatprep.subr.bf16.mxu0 %v8004_v36 }
 0x779   :  { %v1140_v2 = vpop.f32.mrb[28].mxu0 }
 0x77a   :  { %v1146_v37 = vadd.f32 %v1140_v2, %v7859_v3  ;;  %v6039_v38 = vpop.f32.mrb[29].mxu0 }
 0x77b   :  { %v1143_v39 = vpop.f32.mrb[30].mxu0 }
 0x77c   :  { %v1147_v40 = vadd.f32 %v7882_v16, %v1146_v37  ;;  %v6040_v0 = vpop.f32.mrb[31].mxu0 }
 0x77e   :  { %v5241_v41 = vmul.f32 -1.442695, %v1147_v40 }
 0x780   :  { %6788 = vpow2.f32 %v5241_v41 }
 0x78a   :  { %v6789_v42 = vpop.eup %6788 }
 0x78b   :  { %v1151_v43 = vadd.f32 1.0, %v6789_v42 }
 0x78d   :  { %6790 = vrcp.f32 %v1151_v43 }
 0x797   :  { %v6791_v62 = vpop.eup %6790 }
 0x798   :  { %v1154_v34 = vmul.f32 %v6791_v62, %v1099_v33  ;;  %v1199_v1 = vsub.f32 1.0, %v6791_v62 }
 0x79a   :  { %v1155_v44 = vpack.c.bf16 %v1154_v34, %v1154_v34  ;;  %v1200_v17 = vmul.f32 %v1199_v1, %v1099_v33 }
 0x79c   :  { %6058 = vmatmul.mubr.bf16.vlgmr.msra.gmra.mrb[28].mxu1 %v1155_v44 }
 0x79d   :  { %6082 = vmatpush3.bf16.msra.mxu1 %v7813_v50  ;;  %6097 = vmatprep.mubr.msk.bf16.mxu1 %vm7467_vm1, %v8004_v36 }
 0x79e   :  { %6083 = vmatprep.subr.bf16.mxu1 %v8004_v36 }
 0x7a1   :  { %6084 = vmatpush3.bf16.msra.mxu1 %v7817_v51 }
 0x7a2   :  { %6085 = vmatprep.subr.bf16.mxu1 %v8004_v36 }
 0x7a5   :  { %6086 = vmatpush3.bf16.msra.mxu1 %v7821_v53 }
 0x7a6   :  { %6087 = vmatprep.subr.bf16.mxu1 %v8004_v36 }
 0x7a9   :  { %6088 = vmatpush3.bf16.msra.mxu1 %v7826_v54 }
 0x7aa   :  { %6089 = vmatprep.subr.bf16.mxu1 %v8004_v36 }
 0x7ad   :  { %6090 = vmatpush3.bf16.msra.mxu1 %v7830_v56 }
 0x7ae   :  { %6091 = vmatprep.subr.bf16.mxu1 %v8004_v36 }
 0x7b1   :  { %6092 = vmatpush3.bf16.msra.mxu1 %v7834_v57 }
 0x7b2   :  { %6093 = vmatprep.subr.bf16.mxu1 %v8004_v36 }
 0x7b5   :  { %6094 = vmatpush3.bf16.msra.mxu1 %v7838_v59 }
 0x7b6   :  { %6095 = vmatprep.subr.bf16.mxu1 %v8004_v36 }
 0x7b9   :  { %6096 = vmatpush3.bf16.msra.mxu1 %v7844_v60 }
 0x7ba   :  { %6121 = vmatprep.subr.bf16.mxu1 %v8004_v36 }
 0x86f   :  { %v1190_v3 = vpop.f32.mrb[28].mxu1 }
 0x870   :  { %v1196_v46 = vadd.f32 %v1190_v3, %v7861_v5  ;;  %v6059_v47 = vpop.f32.mrb[29].mxu1 }
 0x871   :  { %v1193_v49 = vpop.f32.mrb[30].mxu1  ;;  %v8099_v47 = vld [vmem:[#allocation13 + $0x10] sm:$0xff]  }
 0x872   :  { %v1197_v55 = vadd.f32 %v7917_v24, %v1196_v46  ;;  %v6060_v58 = vpop.f32.mrb[31].mxu1  ;;  %v8089_v46 = vld [vmem:[#allocation13] sm:$0xff]  }
 0x874   :  { %6792 = vtanh.f32 %v1197_v55 }
 0x87e   :  { %v6793_v61 = vpop.eup %6792 }
 0x87f   :  { %v1201_v18 = vmul.f32 %v6793_v61, %v6791_v62 }
 0x881   :  { %v1202_v19 = vadd.f32 %v1201_v18, %v1200_v17 }
 0x883   :  { %v1208_v63 = vpack.c.bf16 %v1202_v19, %v1202_v19 }
 0x885   :  { %6078 = vmatmul.mubr.bf16.vlgmr.msra.gmra.mrb[32].mxu0 %v1208_v63 }
 0x886   :  { %6102 = vmatpush3.bf16.msra.mxu0 %v7754_v22  ;;  %6117 = vmatprep.mubr.msk.bf16.mxu0 %vm7467_vm1, %v8004_v36 }
 0x887   :  { %6103 = vmatprep.subr.bf16.mxu0 %v8004_v36 }
 0x88a   :  { %6104 = vmatpush3.bf16.msra.mxu0 %v7757_v23 }
 0x88b   :  { %6105 = vmatprep.subr.bf16.mxu0 %v8004_v36 }
 0x88e   :  { %6106 = vmatpush3.bf16.msra.mxu0 %v7762_v25 }
 0x88f   :  { %6107 = vmatprep.subr.bf16.mxu0 %v8004_v36 }
 0x892   :  { %6108 = vmatpush3.bf16.msra.mxu0 %v7766_v26 }
 0x893   :  { %6109 = vmatprep.subr.bf16.mxu0 %v8004_v36 }
 0x896   :  { %6110 = vmatpush3.bf16.msra.mxu0 %v7771_v28 }
 0x897   :  { %6111 = vmatprep.subr.bf16.mxu0 %v8004_v36 }
 0x89a   :  { %6112 = vmatpush3.bf16.msra.mxu0 %v7776_v29 }
 0x89b   :  { %6113 = vmatprep.subr.bf16.mxu0 %v8004_v36 }
 0x89e   :  { %6114 = vmatpush3.bf16.msra.mxu0 %v7781_v31 }
 0x89f   :  { %6115 = vmatprep.subr.bf16.mxu0 %v8004_v36 }
 0x8a2   :  { %6116 = vmatpush3.bf16.msra.mxu0 %v7785_v32 }
 0x8a3   :  { %6141 = vmatprep.subr.bf16.mxu0 %v8004_v36 }
 0x958   :  { %v1243_v22 = vpop.f32.mrb[32].mxu0 }
 0x959   :  { %v1249_v23 = vadd.f32 %v1243_v22, %v7863_v7  ;;  %v6079_v25 = vpop.f32.mrb[33].mxu0 }
 0x95a   :  { %v1246_v5 = vpop.f32.mrb[34].mxu0 }
 0x95b   :  { %v1250_v20 = vadd.f32 %v7882_v16, %v1249_v23  ;;  %v6080_v21 = vpop.f32.mrb[35].mxu0 }
 0x95d   :  { %v5242_v27 = vmul.f32 -1.442695, %v1250_v20 }
 0x95f   :  { %6794 = vpow2.f32 %v5242_v27 }
 0x969   :  { %v6795_v30 = vpop.eup %6794 }
 0x96a   :  { %v1254_v33 = vadd.f32 1.0, %v6795_v30 }
 0x96c   :  { %6796 = vrcp.f32 %v1254_v33 }
 0x976   :  { %v6797_v35 = vpop.eup %6796 }
 0x977   :  { %v1257_v2 = vmul.f32 %v6797_v35, %v1202_v19  ;;  %v1302_v42 = vsub.f32 1.0, %v6797_v35 }
 0x979   :  { %v1258_v37 = vpack.c.bf16 %v1257_v2, %v1257_v2  ;;  %v1303_v62 = vmul.f32 %v1302_v42, %v1202_v19  ;;  %v6830_v2 = vld [vmem:[#allocation13 + $0x28] sm:$0xff]  }
 0x97b   :  { %6098 = vmatmul.mubr.bf16.vlgmr.msra.gmra.mrb[32].mxu1 %v1258_v37  ;;  %v6831_v37 = vld [vmem:[#allocation13 + $0x30] sm:$0xff]  }
 0x97c   :  { %6122 = vmatpush3.bf16.msra.mxu1 %v7813_v50  ;;  %6137 = vmatprep.mubr.msk.bf16.mxu1 %vm7467_vm1, %v8004_v36 }
 0x97d   :  { %6123 = vmatprep.subr.bf16.mxu1 %v8004_v36 }
 0x980   :  { %6124 = vmatpush3.bf16.msra.mxu1 %v7817_v51 }
 0x981   :  { %6125 = vmatprep.subr.bf16.mxu1 %v8004_v36 }
 0x984   :  { %6126 = vmatpush3.bf16.msra.mxu1 %v7821_v53 }
 0x985   :  { %6127 = vmatprep.subr.bf16.mxu1 %v8004_v36 }
 0x988   :  { %6128 = vmatpush3.bf16.msra.mxu1 %v7826_v54 }
 0x989   :  { %6129 = vmatprep.subr.bf16.mxu1 %v8004_v36 }
 0x98c   :  { %6130 = vmatpush3.bf16.msra.mxu1 %v7830_v56 }
 0x98d   :  { %6131 = vmatprep.subr.bf16.mxu1 %v8004_v36 }
 0x990   :  { %6132 = vmatpush3.bf16.msra.mxu1 %v7834_v57 }
 0x991   :  { %6133 = vmatprep.subr.bf16.mxu1 %v8004_v36 }
 0x994   :  { %6134 = vmatpush3.bf16.msra.mxu1 %v7838_v59 }
 0x995   :  { %6135 = vmatprep.subr.bf16.mxu1 %v8004_v36 }
 0x998   :  { %6136 = vmatpush3.bf16.msra.mxu1 %v7844_v60 }
 0x999   :  { %6161 = vmatprep.subr.bf16.mxu1 %v8004_v36 }
 0xa4e   :  { %v1293_v7 = vpop.f32.mrb[32].mxu1 }
 0xa4f   :  { %v1299_v38 = vadd.f32 %v1293_v7, %v7865_v8  ;;  %v6099_v39 = vpop.f32.mrb[33].mxu1  ;;  %v8095_v8 = vld [vmem:[#allocation13 + $0x8] sm:$0xff]   ;;  %v6832_v7 = vld [vmem:[#allocation13 + $0x38] sm:$0xff]  }
 0xa50   :  { %v1296_v40 = vpop.f32.mrb[34].mxu1 }
 0xa51   :  { %v1300_v0 = vadd.f32 %v7917_v24, %v1299_v38  ;;  %v6100_v41 = vpop.f32.mrb[35].mxu1 }
 0xa53   :  { %6798 = vtanh.f32 %v1300_v0 }
 0xa5d   :  { %v6799_v43 = vpop.eup %6798 }
 0xa5e   :  { %v1304_v34 = vmul.f32 %v6799_v43, %v6797_v35  ;;  %v6829_v35 = vld [vmem:[#allocation13 + $0x20] sm:$0xff]  }
 0xa60   :  { %v8085_v44 = vadd.f32 %v1304_v34, %v1303_v62 }
 0xa62   :  { %v1311_v3 = vpack.c.bf16 %v8085_v44, %v8085_v44 }
 0xa64   :  { %6118 = vmatmul.mubr.bf16.vlgmr.msra.gmra.mrb[36].mxu0 %v1311_v3 }
 0xa65   :  { %6142 = vmatpush3.bf16.msra.mxu0 %v8089_v46  ;;  %6157 = vmatprep.mubr.msk.bf16.mxu0 %vm7467_vm1, %v8004_v36 }
 0xa66   :  { %6143 = vmatprep.subr.bf16.mxu0 %v8004_v36 }
 0xa69   :  { %6144 = vmatpush3.bf16.msra.mxu0 %v8095_v8 }
 0xa6a   :  { %6145 = vmatprep.subr.bf16.mxu0 %v8004_v36 }
 0xa6d   :  { %6146 = vmatpush3.bf16.msra.mxu0 %v8099_v47 }
 0xa6e   :  { %6147 = vmatprep.subr.bf16.mxu0 %v8004_v36 }
 0xa71   :  { %6148 = vmatpush3.bf16.msra.mxu0 %v7766_v26 }
 0xa72   :  { %6149 = vmatprep.subr.bf16.mxu0 %v8004_v36 }
 0xa75   :  { %6150 = vmatpush3.bf16.msra.mxu0 %v7771_v28 }
 0xa76   :  { %6151 = vmatprep.subr.bf16.mxu0 %v8004_v36 }
 0xa79   :  { %6152 = vmatpush3.bf16.msra.mxu0 %v7776_v29 }
 0xa7a   :  { %6153 = vmatprep.subr.bf16.mxu0 %v8004_v36 }
 0xa7d   :  { %6154 = vmatpush3.bf16.msra.mxu0 %v7781_v31 }
 0xa7e   :  { %6155 = vmatprep.subr.bf16.mxu0 %v8004_v36 }
 0xa81   :  { %6156 = vmatpush3.bf16.msra.mxu0 %v7785_v32 }
 0xa82   :  { %6181 = vmatprep.subr.bf16.mxu0 %v8004_v36 }
 0xb37   :  { %v1346_v49 = vpop.f32.mrb[36].mxu0 }
 0xb38   :  { %v1352_v26 = vadd.f32 %v1346_v49, %v7867_v10  ;;  %v6119_v55 = vpop.f32.mrb[37].mxu0 }
 0xb39   :  { %v1349_v58 = vpop.f32.mrb[38].mxu0  ;;  %v6748_v55 = vld [vmem:[#allocation18 + $0x10] sm:$0xff]  }
 0xb3a   :  { %v1353_v28 = vadd.f32 %v7882_v16, %v1352_v26  ;;  %v6120_v1 = vpop.f32.mrb[39].mxu0 }
 0xb3c   :  { %v5243_v61 = vmul.f32 -1.442695, %v1353_v28 }
 0xb3e   :  { %6800 = vpow2.f32 %v5243_v61 }
 0xb48   :  { %v6801_v29 = vpop.eup %6800 }
 0xb49   :  { %v1357_v17 = vadd.f32 1.0, %v6801_v29 }
 0xb4b   :  { %6802 = vrcp.f32 %v1357_v17 }
 0xb55   :  { %v6803_v31 = vpop.eup %6802 }
 0xb56   :  { %v1360_v18 = vmul.f32 %v6803_v31, %v8085_v44  ;;  %v1405_v5 = vsub.f32 1.0, %v6803_v31 }
 0xb58   :  { %v1361_v19 = vpack.c.bf16 %v1360_v18, %v1360_v18  ;;  %v1406_v21 = vmul.f32 %v1405_v5, %v8085_v44 }
 0xb5a   :  { %6138 = vmatmul.mubr.bf16.vlgmr.msra.gmra.mrb[36].mxu1 %v1361_v19 }
 0xb5b   :  { %6162 = vmatpush3.bf16.msra.mxu1 %v7813_v50  ;;  %6177 = vmatprep.mubr.msk.bf16.mxu1 %vm7467_vm1, %v8004_v36 }
 0xb5c   :  { %6163 = vmatprep.subr.bf16.mxu1 %v8004_v36 }
 0xb5f   :  { %6164 = vmatpush3.bf16.msra.mxu1 %v7817_v51 }
 0xb60   :  { %6165 = vmatprep.subr.bf16.mxu1 %v8004_v36 }
 0xb63   :  { %6166 = vmatpush3.bf16.msra.mxu1 %v7821_v53 }
 0xb64   :  { %6167 = vmatprep.subr.bf16.mxu1 %v8004_v36 }
 0xb67   :  { %6168 = vmatpush3.bf16.msra.mxu1 %v7826_v54 }
 0xb68   :  { %6169 = vmatprep.subr.bf16.mxu1 %v8004_v36 }
 0xb6b   :  { %6170 = vmatpush3.bf16.msra.mxu1 %v7830_v56 }
 0xb6c   :  { %6171 = vmatprep.subr.bf16.mxu1 %v8004_v36 }
 0xb6f   :  { %6172 = vmatpush3.bf16.msra.mxu1 %v7834_v57 }
 0xb70   :  { %6173 = vmatprep.subr.bf16.mxu1 %v8004_v36 }
 0xb73   :  { %6174 = vmatpush3.bf16.msra.mxu1 %v7838_v59 }
 0xb74   :  { %6175 = vmatprep.subr.bf16.mxu1 %v8004_v36 }
 0xb77   :  { %6176 = vmatpush3.bf16.msra.mxu1 %v7844_v60 }
 0xb78   :  { %6201 = vmatprep.subr.bf16.mxu1 %v8004_v36 }
 0xc2d   :  { %v1396_v32 = vpop.f32.mrb[36].mxu1 }
 0xc2e   :  { %v1402_v10 = vadd.f32 %v1396_v32, %v7869_v11  ;;  %v6139_v63 = vpop.f32.mrb[37].mxu1  ;;  %v6828_v11 = vld [vmem:[#allocation13 + $0x18] sm:$0xff]  }
 0xc2f   :  { %v1399_v22 = vpop.f32.mrb[38].mxu1 }
 0xc30   :  { %v1403_v23 = vadd.f32 %v7917_v24, %v1402_v10  ;;  %v6140_v25 = vpop.f32.mrb[39].mxu1  ;;  %v6749_v22 = vld [vmem:[#allocation18 + $0x18] sm:$0xff]  }
 0xc31   :  { %v6753_v25 = vld [vmem:[#allocation18 + $0x38] sm:$0xff]  }
 0xc32   :  { %6804 = vtanh.f32 %v1403_v23  ;;  %v6752_v23 = vld [vmem:[#allocation18 + $0x30] sm:$0xff]  }
 0xc3c   :  { %v6805_v20 = vpop.eup %6804 }
 0xc3d   :  { %v1407_v27 = vmul.f32 %v6805_v20, %v6803_v31 }
 0xc3f   :  { %v8137_v30 = vadd.f32 %v1407_v27, %v1406_v21 }
 0xc41   :  { %v1414_v33 = vpack.c.bf16 %v8137_v30, %v8137_v30 }
 0xc43   :  { %6158 = vmatmul.mubr.bf16.vlgmr.msra.gmra.mrb[40].mxu0 %v1414_v33 }
 0xc44   :  { %6182 = vmatpush3.bf16.msra.mxu0 %v8089_v46  ;;  %6197 = vmatprep.mubr.msk.bf16.mxu0 %vm7467_vm1, %v8004_v36 }
 0xc45   :  { %6183 = vmatprep.subr.bf16.mxu0 %v8004_v36 }
 0xc48   :  { %6184 = vmatpush3.bf16.msra.mxu0 %v8095_v8 }
 0xc49   :  { %6185 = vmatprep.subr.bf16.mxu0 %v8004_v36 }
 0xc4c   :  { %6186 = vmatpush3.bf16.msra.mxu0 %v8099_v47 }
 0xc4d   :  { %6187 = vmatprep.subr.bf16.mxu0 %v8004_v36 }
 0xc50   :  { %6188 = vmatpush3.bf16.msra.mxu0 %v6828_v11 }
 0xc51   :  { %6189 = vmatprep.subr.bf16.mxu0 %v8004_v36 }
 0xc54   :  { %6190 = vmatpush3.bf16.msra.mxu0 %v6829_v35 }
 0xc55   :  { %6191 = vmatprep.subr.bf16.mxu0 %v8004_v36 }
 0xc58   :  { %6192 = vmatpush3.bf16.msra.mxu0 %v6830_v2 }
 0xc59   :  { %6193 = vmatprep.subr.bf16.mxu0 %v8004_v36 }
 0xc5c   :  { %6194 = vmatpush3.bf16.msra.mxu0 %v6831_v37 }
 0xc5d   :  { %6195 = vmatprep.subr.bf16.mxu0 %v8004_v36 }
 0xc60   :  { %6196 = vmatpush3.bf16.msra.mxu0 %v6832_v7 }
 0xc61   :  { %6221 = vmatprep.subr.bf16.mxu0 %v8004_v36 }
 0xd16   :  { %v1449_v38 = vpop.f32.mrb[40].mxu0 }
 0xd17   :  { %v1455_v39 = vadd.f32 %v1449_v38, %v7871_v12  ;;  %v6159_v40 = vpop.f32.mrb[41].mxu0 }
 0xd18   :  { %v1452_v0 = vpop.f32.mrb[42].mxu0  ;;  %v6757_v40 = vld [vmem:[#allocation19 + $0x18] sm:$0xff]  }
 0xd19   :  { %v1456_v41 = vadd.f32 %v7882_v16, %v1455_v39  ;;  %v6160_v42 = vpop.f32.mrb[43].mxu0  ;;  %v6756_v39 = vld [vmem:[#allocation19 + $0x10] sm:$0xff]   ;;  %v6758_v0 = vld [vmem:[#allocation19 + $0x20] sm:$0xff]  }
 0xd1a   :  { %v6760_v42 = vld [vmem:[#allocation19 + $0x30] sm:$0xff]  }
 0xd1b   :  { %v5244_v43 = vmul.f32 -1.442695, %v1456_v41  ;;  %v6759_v41 = vld [vmem:[#allocation19 + $0x28] sm:$0xff]  }
 0xd1d   :  { %6806 = vpow2.f32 %v5244_v43  ;;  %v6761_v43 = vld [vmem:[#allocation19 + $0x38] sm:$0xff]  }
 0xd27   :  { %v6807_v62 = vpop.eup %6806 }
 0xd28   :  { %v1460_v34 = vadd.f32 1.0, %v6807_v62  ;;  %v6762_v62 = vld [vmem:[#allocation22] sm:$0xff]  }
 0xd2a   :  { %6808 = vrcp.f32 %v1460_v34  ;;  %v6763_v34 = vld [vmem:[#allocation22 + $0x8] sm:$0xff]  }
 0xd34   :  { %v6809_v44 = vpop.eup %6808 }
 0xd35   :  { %v1463_v3 = vmul.f32 %v6809_v44, %v8137_v30 }
 0xd37   :  { %v1464_v46 = vpack.c.bf16 %v1463_v3, %v1463_v3  ;;  %v6833_v3 = vld [vmem:[#allocation3] sm:$0xff] }
 0xd39   :  { %6178 = vmatmul.mubr.bf16.vlgmr.msra.gmra.mrb[40].mxu1 %v1464_v46  ;;  %v1622_v46 = vmul.f32 %v6833_v3, %v7906_v45 }
 0xd3a   :  { %6202 = vmatpush3.bf16.msra.mxu1 %v7813_v50  ;;  %6217 = vmatprep.mubr.msk.bf16.mxu1 %vm7467_vm1, %v8004_v36 }
 0xd3b   :  { %6203 = vmatprep.subr.bf16.mxu1 %v8004_v36 }
 0xd3e   :  { %6204 = vmatpush3.bf16.msra.mxu1 %v7817_v51 }
 0xd3f   :  { %6205 = vmatprep.subr.bf16.mxu1 %v8004_v36 }
 0xd42   :  { %6206 = vmatpush3.bf16.msra.mxu1 %v7821_v53 }
 0xd43   :  { %6207 = vmatprep.subr.bf16.mxu1 %v8004_v36 }
 0xd46   :  { %6208 = vmatpush3.bf16.msra.mxu1 %v7826_v54 }
 0xd47   :  { %6209 = vmatprep.subr.bf16.mxu1 %v8004_v36 }
 0xd4a   :  { %6210 = vmatpush3.bf16.msra.mxu1 %v7830_v56 }
 0xd4b   :  { %6211 = vmatprep.subr.bf16.mxu1 %v8004_v36 }
 0xd4e   :  { %6212 = vmatpush3.bf16.msra.mxu1 %v7834_v57  ;;  %v1508_v57 = vsub.f32 1.0, %v6809_v44 }
 0xd4f   :  { %6213 = vmatprep.subr.bf16.mxu1 %v8004_v36 }
 0xd50   :  { %v1509_v47 = vmul.f32 %v1508_v57, %v8137_v30 }
 0xd52   :  { %6214 = vmatpush3.bf16.msra.mxu1 %v7838_v59 }
 0xd53   :  { %6215 = vmatprep.subr.bf16.mxu1 %v8004_v36 }
 0xd56   :  { %6216 = vmatpush3.bf16.msra.mxu1 %v7844_v60  ;;  %v6746_v60 = vld [vmem:[#allocation18] sm:$0xff]  }
 0xd57   :  { %6241 = vmatprep.subr.bf16.mxu1 %v8004_v36 }
 0xe0c   :  { %v1499_v50 = vpop.f32.mrb[40].mxu1 }
 0xe0d   :  { %v1505_v51 = vadd.f32 %v1499_v50, %v7873_v13  ;;  %v6179_v53 = vpop.f32.mrb[41].mxu1  ;;  %v6747_v13 = vld [vmem:[#allocation18 + $0x8] sm:$0xff]   ;;  %v1630_v50 = vadd.f32 %v7908_v48, %v1622_v46 }
 0xe0e   :  { %v1502_v54 = vpop.f32.mrb[42].mxu1 }
 0xe0f   :  { %v1506_v56 = vadd.f32 %v7917_v24, %v1505_v51  ;;  %v6180_v12 = vpop.f32.mrb[43].mxu1  ;;  %v8215_v51 = vld [vmem:[%s8567_s11] ss:$0 sm:$0xff] }
 0xe11   :  { %6810 = vtanh.f32 %v1506_v56 }
 0xe1b   :  { %v6811_v8 = vpop.eup %6810 }
 0xe1c   :  { %v1510_v59 = vmul.f32 %v6811_v8, %v6809_v44  ;;  %v6764_v44 = vld [vmem:[#allocation22 + $0x10] sm:$0xff]  }
 0xe1e   :  { %v1511_v49 = vadd.f32 %v1510_v59, %v1509_v47 }
 0xe20   :  { %v1517_v26 = vpack.c.bf16 %v1511_v49, %v1511_v49 }
 0xe22   :  { %6198 = vmatmul.mubr.bf16.vlgmr.msra.gmra.mrb[44].mxu0 %v1517_v26 }
 0xe23   :  { %6237 = vmatprep.mubr.msk.bf16.mxu0 %vm7467_vm1, %v8004_v36  ;;  %6222 = vmatpush3.bf16.msra.mxu0 %v6746_v60  ;;  %v6765_v60 = vld [vmem:[#allocation22 + $0x18] sm:$0xff]  }
 0xe24   :  { %6223 = vmatprep.subr.bf16.mxu0 %v8004_v36 }
 0xe27   :  { %6224 = vmatpush3.bf16.msra.mxu0 %v6747_v13  ;;  %v6766_v13 = vld [vmem:[#allocation22 + $0x20] sm:$0xff]  }
 0xe28   :  { %6225 = vmatprep.subr.bf16.mxu0 %v8004_v36 }
 0xe2b   :  { %6226 = vmatpush3.bf16.msra.mxu0 %v6748_v55  ;;  %v6767_v55 = vld [vmem:[#allocation22 + $0x28] sm:$0xff]  }
 0xe2c   :  { %6227 = vmatprep.subr.bf16.mxu0 %v8004_v36 }
 0xe2f   :  { %6228 = vmatpush3.bf16.msra.mxu0 %v6749_v22 }
 0xe30   :  { %6229 = vmatprep.subr.bf16.mxu0 %v8004_v36 }
 0xef5   :  { %v1552_v58 = vpop.f32.mrb[44].mxu0 }
 0xef6   :  { %v1558_v28 = vadd.f32 %v1552_v58, %v7875_v14  ;;  %v6199_v1 = vpop.f32.mrb[45].mxu0  ;;  %v6750_v14 = vld [vmem:[#allocation18 + $0x20] sm:$0xff]   ;;  %v6768_v58 = vld [vmem:[#allocation22 + $0x30] sm:$0xff]  }
 0xef7   :  { %v1555_v61 = vpop.f32.mrb[46].mxu0  ;;  %6230 = vmatpush3.bf16.msra.mxu0 %v6750_v14  ;;  %v8226_v1 = vld [vmem:[%s8568_s12] ss:$0 sm:$0xff]  ;;  %s5272_s12 = sld [smem:[#allocation5 + $0x1]] }
 0xef8   :  { %v1559_v29 = vadd.f32 %v7882_v16, %v1558_v28  ;;  %v6200_v17 = vpop.f32.mrb[47].mxu0  ;;  %v6751_v16 = vld [vmem:[#allocation18 + $0x28] sm:$0xff]   ;;  %6231 = vmatprep.subr.bf16.mxu0 %v8004_v36  ;;  %v6769_v28 = vld [vmem:[#allocation22 + $0x38] sm:$0xff]  }
 0xefa   :  { %v5245_v31 = vmul.f32 -1.442695, %v1559_v29 }
 0xefb   :  { %6232 = vmatpush3.bf16.msra.mxu0 %v6751_v16 }
 0xefc   :  { %6812 = vpow2.f32 %v5245_v31  ;;  %6233 = vmatprep.subr.bf16.mxu0 %v8004_v36 }
 0xefd   :  { %p5273_p13 = scmp.ne.s32.totalorder %s5272_s12, 0 }
 0xefe   :  { %v7469_v3 = vmov (!%p5273_p13), 1.0|1.0  }
 0xeff   :  { %6234 = vmatpush3.bf16.msra.mxu0 %v6752_v23 }
 0xf00   :  { %6235 = vmatprep.subr.bf16.mxu0 %v8004_v36 }
 0xf03   :  { %6236 = vmatpush3.bf16.msra.mxu0 %v6753_v25 }
 0xf04   :  { %6261 = vmatprep.subr.bf16.mxu0 %v8004_v36 }
 0xf06   :  { %v6813_v18 = vpop.eup %6812 }
 0xf07   :  { %v1563_v19 = vadd.f32 1.0, %v6813_v18 }
 0xf09   :  { %6814 = vrcp.f32 %v1563_v19 }
 0xf13   :  { %v6815_v32 = vpop.eup %6814 }
 0xf14   :  { %v1566_v10 = vmul.f32 %v6815_v32, %v1511_v49  ;;  %v1611_v11 = vsub.f32 1.0, %v6815_v32 }
 0xf16   :  { %v1567_v63 = vpack.c.bf16 %v1566_v10, %v1566_v10  ;;  %v1612_v2 = vmul.f32 %v1611_v11, %v1511_v49  ;;  %v6839_v11 = vld [vmem:[#allocation21 + $0x10] ss:$8 sps:$4 sm:$0xff] (!%p5273_p13)  }
 0xf18   :  { %6218 = vmatmul.mubr.bf16.vlgmr.msra.gmra.mrb[44].mxu1 %v1567_v63 }
 0xf19   :  { %6257 = vmatprep.mubr.msk.bf16.mxu1 %vm7467_vm1, %v8004_v36 }
 0xfeb   :  { %v1602_v5 = vpop.f32.mrb[44].mxu1 }
 0xfec   :  { %v1608_v20 = vadd.f32 %v1602_v5, %v7877_v15  ;;  %v6219_v21 = vpop.f32.mrb[45].mxu1  ;;  %v6754_v15 = vld [vmem:[#allocation19] sm:$0xff]  }
 0xfed   :  { %v1605_v27 = vpop.f32.mrb[46].mxu1  ;;  %6242 = vmatpush3.bf16.msra.mxu1 %v6754_v15  ;;  %v6848_v15 = vld [vmem:[#allocation21 + $0x40] ss:$8 sps:$4 sm:$0xff] (!%p5273_p13)  }
 0xfee   :  { %v1609_v30 = vadd.f32 %v7917_v24, %v1608_v20  ;;  %v6220_v33 = vpop.f32.mrb[47].mxu1  ;;  %6243 = vmatprep.subr.bf16.mxu1 %v8004_v36  ;;  %v6755_v24 = vld [vmem:[#allocation19 + $0x8] sm:$0xff]  }
 0xfef   :  { %v6834_v27 = vld [vmem:[#allocation21 + $0x4] ss:$8 sps:$4 sm:$0xff] (!%p5273_p13)   ;;  %v6837_v33 = vld [vmem:[#allocation21 + $0x14] ss:$8 sps:$4 sm:$0xff] (!%p5273_p13)  }
 0xff0   :  { %6816 = vtanh.f32 %v1609_v30  ;;  %v6836_v30 = vld [vmem:[#allocation21] ss:$8 sps:$4 sm:$0xff] (!%p5273_p13)  }
 0xff1   :  { %6244 = vmatpush3.bf16.msra.mxu1 %v6755_v24  ;;  %v6849_v24 = vld [vmem:[#allocation21 + $0x54] ss:$8 sps:$4 sm:$0xff] (!%p5273_p13)  }
 0xff2   :  { %6245 = vmatprep.subr.bf16.mxu1 %v8004_v36 }
 0xff5   :  { %6246 = vmatpush3.bf16.msra.mxu1 %v6756_v39  ;;  %v6851_v39 = vld [vmem:[#allocation21 + $0x50] ss:$8 sps:$4 sm:$0xff] (!%p5273_p13)  }
 0xff6   :  { %6247 = vmatprep.subr.bf16.mxu1 %v8004_v36 }
 0xff9   :  { %6248 = vmatpush3.bf16.msra.mxu1 %v6757_v40  ;;  %v6852_v40 = vld [vmem:[#allocation21 + $0x64] ss:$8 sps:$4 sm:$0xff] (!%p5273_p13)  }
 0xffa   :  { %v6817_v35 = vpop.eup %6816  ;;  %6249 = vmatprep.subr.bf16.mxu1 %v8004_v36 }
 0xffb   :  { %v1613_v37 = vmul.f32 %v6817_v35, %v6815_v32  ;;  %v6840_v35 = vld [vmem:[#allocation21 + $0x24] ss:$8 sps:$4 sm:$0xff] (!%p5273_p13)  }
 0xffd   :  { %v8194_v7 = vadd.f32 %v1613_v37, %v1612_v2  ;;  %6250 = vmatpush3.bf16.msra.mxu1 %v6758_v0  ;;  %v6842_v2 = vld [vmem:[#allocation21 + $0x20] ss:$8 sps:$4 sm:$0xff] (!%p5273_p13)   ;;  %v6843_v37 = vld [vmem:[#allocation21 + $0x34] ss:$8 sps:$4 sm:$0xff] (!%p5273_p13)  }
 0xffe   :  { %6251 = vmatprep.subr.bf16.mxu1 %v8004_v36  ;;  %v6854_v0 = vld [vmem:[#allocation21 + $0x60] ss:$8 sps:$4 sm:$0xff] (!%p5273_p13)  }
 0xfff   :  { %v1632_v38 = vpack.c.bf16 %v8194_v7, %v8194_v7 }
0x1001   :  { %6238 = vmatmul.mubr.bf16.vlgmr.msra.gmra.mrb[48].mxu0 %v1632_v38  ;;  %6252 = vmatpush3.bf16.msra.mxu1 %v6759_v41  ;;  %v6846_v38 = vld [vmem:[#allocation21 + $0x44] ss:$8 sps:$4 sm:$0xff] (!%p5273_p13)   ;;  %v6855_v41 = vld [vmem:[#allocation21 + $0x74] ss:$8 sps:$4 sm:$0xff] (!%p5273_p13)  }
0x1002   :  { %6277 = vmatprep.mubr.msk.bf16.mxu0 %vm7467_vm1, %v8004_v36  ;;  %6253 = vmatprep.subr.bf16.mxu1 %v8004_v36 }
0x1003   :  { %6262 = vmatpush3.bf16.msra.mxu0 %v6762_v62 }
0x1004   :  { %6263 = vmatprep.subr.bf16.mxu0 %v8004_v36 }
0x1005   :  { %6254 = vmatpush3.bf16.msra.mxu1 %v6760_v42  ;;  %v6857_v42 = vld [vmem:[#allocation21 + $0x70] ss:$8 sps:$4 sm:$0xff] (!%p5273_p13)  }
0x1006   :  { %6255 = vmatprep.subr.bf16.mxu1 %v8004_v36 }
0x1007   :  { %6264 = vmatpush3.bf16.msra.mxu0 %v6763_v34  ;;  %v7468_v34 = vmov (!%p5273_p13), 0  }
0x1008   :  { %6265 = vmatprep.subr.bf16.mxu0 %v8004_v36 }
0x1009   :  { %6256 = vmatpush3.bf16.msra.mxu1 %v6761_v43 }
0x100b   :  { %6266 = vmatpush3.bf16.msra.mxu0 %v6764_v44 }
0x100c   :  { %6267 = vmatprep.subr.bf16.mxu0 %v8004_v36 }
0x100f   :  { %6268 = vmatpush3.bf16.msra.mxu0 %v6765_v60 }
0x1010   :  { %6269 = vmatprep.subr.bf16.mxu0 %v8004_v36 }
0x1013   :  { %6270 = vmatpush3.bf16.msra.mxu0 %v6766_v13 }
0x1014   :  { %6271 = vmatprep.subr.bf16.mxu0 %v8004_v36 }
0x1017   :  { %6272 = vmatpush3.bf16.msra.mxu0 %v6767_v55 }
0x1018   :  { %6273 = vmatprep.subr.bf16.mxu0 %v8004_v36 }
0x101b   :  { %6274 = vmatpush3.bf16.msra.mxu0 %v6768_v58 }
0x101c   :  { %6275 = vmatprep.subr.bf16.mxu0 %v8004_v36 }
0x101f   :  { %6276 = vmatpush3.bf16.msra.mxu0 %v6769_v28 }
0x1020   :  { %2081 = vmatprep.subr.bf16.mxu0 (!%p5273_p13), %v6834_v27 }
0x10d4   :  { %v1731_v53 = vpop.f32.mrb[48].mxu0 }
0x10d5   :  { %v1737_v54 = vadd.f32 %v1731_v53, %v1630_v50  ;;  %v6239_v56 = vpop.f32.mrb[49].mxu0 }
0x10d6   :  { %v1734_v12 = vpop.f32.mrb[50].mxu0 }
0x10d7   :  { %v1738_v57 = vadd.f32 %v8215_v51, %v1737_v54  ;;  %v6240_v8 = vpop.f32.mrb[51].mxu0 }
0x10d9   :  { %v5254_v47 = vmul.f32 -1.442695, %v1738_v57 }
0x10db   :  { %6818 = vpow2.f32 %v5254_v47 }
0x10e5   :  { %v6819_v59 = vpop.eup %6818 }
0x10e6   :  { %v1742_v49 = vadd.f32 1.0, %v6819_v59 }
0x10e8   :  { %6820 = vrcp.f32 %v1742_v49 }
0x10f2   :  { %v6821_v45 = vpop.eup %6820 }
0x10f3   :  { %v1745_v48 = vmul.f32 %v6821_v45, %v8194_v7  ;;  %v1854_v32 = vsub.f32 1.0, %v6821_v45 }
0x10f5   :  { %v1746_v26 = vpack.c.bf16 %v1745_v48, %v1745_v48  ;;  %v1855_v63 = vmul.f32 %v1854_v32, %v8194_v7  ;;  %v6845_v7 = vld [vmem:[#allocation21 + $0x30] ss:$8 sps:$4 sm:$0xff] (!%p5273_p13)  }
0x10f7   :  { %6258 = vmatmul.mubr.bf16.vlgmr.msra.gmra.mrb[48].mxu1 %v1746_v26 }
0x11ca   :  { %v1845_v61 = vpop.f32.mrb[48].mxu1 }
0x11cb   :  { %v1851_v29 = vadd.f32 %v1845_v61, %v7912_v52  ;;  %v6259_v17 = vpop.f32.mrb[49].mxu1  ;;  %v8241_v52 = vld [vmem:[%s8571_s15] ss:$0 sm:$0xff] }
0x11cc   :  { %v1848_v31 = vpop.f32.mrb[50].mxu1 }
0x11cd   :  { %v1852_v18 = vadd.f32 %v8226_v1, %v1851_v29  ;;  %v6260_v19 = vpop.f32.mrb[51].mxu1 }
0x11cf   :  { %6822 = vtanh.f32 %v1852_v18 }
0x11d9   :  { %v6823_v10 = vpop.eup %6822 }
0x11da   :  { %v1856_v36 = vmul.f32 %v6823_v10, %v6821_v45 }
0x11dc   :  { %v8231_v22 = vadd.f32 %v1856_v36, %v1855_v63 }
0x11de   :  { %v8235_v14 = vpack.c.bf16 %v8231_v22, %v8231_v22 }
0x11e0   :  { %6278 = vmatmul.mubr.bf16.vlgmr.msra.gmra.mrb[52].mxu0 %v8235_v14 }
0x11e1   :  { %2082 = vmatpush1.bf16.msra.mxu0 (!%p5273_p13), %v6836_v30  ;;  %2113 = vmatprep.mubr.bf16.mxu0 (!%p5273_p13), %v7468_v34 }
0x11e2   :  { %2083 = vmatprep.subr.bf16.mxu0 (!%p5273_p13), %v6837_v33 }
0x11e5   :  { %2084 = vmatpush1.bf16.msra.mxu0 (!%p5273_p13), %v6839_v11 }
0x11e6   :  { %2085 = vmatprep.subr.bf16.mxu0 (!%p5273_p13), %v6840_v35 }
0x11e9   :  { %2086 = vmatpush1.bf16.msra.mxu0 (!%p5273_p13), %v6842_v2 }
0x11ea   :  { %2087 = vmatprep.subr.bf16.mxu0 (!%p5273_p13), %v6843_v37 }
0x11ed   :  { %2088 = vmatpush1.bf16.msra.mxu0 (!%p5273_p13), %v6845_v7 }
0x11ee   :  { %2089 = vmatprep.subr.bf16.mxu0 (!%p5273_p13), %v6846_v38 }
0x11f1   :  { %2090 = vmatpush1.bf16.msra.mxu0 (!%p5273_p13), %v6848_v15 }
0x11f2   :  { %2091 = vmatprep.subr.bf16.mxu0 (!%p5273_p13), %v6849_v24 }
0x11f5   :  { %2092 = vmatpush1.bf16.msra.mxu0 (!%p5273_p13), %v6851_v39 }
0x11f6   :  { %2093 = vmatprep.subr.bf16.mxu0 (!%p5273_p13), %v6852_v40 }
0x11f9   :  { %2094 = vmatpush1.bf16.msra.mxu0 (!%p5273_p13), %v6854_v0 }
0x11fa   :  { %2095 = vmatprep.subr.bf16.mxu0 (!%p5273_p13), %v6855_v41 }
0x11fd   :  { %2096 = vmatpush1.bf16.msra.mxu0 (!%p5273_p13), %v6857_v42 }
0x12b0   :  { %1974 = sbr.rel (%p5273_p13) target bundleno = 5294 (0x14ae), region = 113 }
0x12b3   :  { %v1963_v16 = vpop.f32.mrb[52].mxu0 }
0x12b4   :  { %v1964_v23 = vadd.f32 %v8241_v52, %v1963_v16  ;;  %v6279_v25 = vpop.f32.mrb[53].mxu0 }
0x12b5   :  { %v1966_v5 = vpop.f32.mrb[54].mxu0 }
0x12b6   :  { %1969 = vst [vmem:[#allocation24] sm:$0xff] %v1964_v23  ;;  %v6280_v20 = vpop.f32.mrb[55].mxu0  ;;  %v1975_v21 = vsel (!%p5273_p13), %vm663_vm0, %v1964_v23, -1e+30 }
0x12b7   :  { %1976 = vmax.xlane.f32.xlu0 %v1975_v21 }
0x1344   :  { %v1977_v43 = vpop.xlane.xlu0 %1976 }
0x1345   :  { %vm1978_vm2 = vcmp.eq.f32.partialorder %v1975_v21, %v1977_v43 }
0x1346   :  { %v1979_v62 = vsel %vm1978_vm2, %v7751_v9, 128.0 }
0x1347   :  { %1980 = vmin.xlane.f32.xlu0 %v1979_v62 }
0x13d4   :  { %v1981_v44 = vpop.xlane.xlu0 %1980 }
0x13d5   :  { %vm1982_vm3 = vcmp.eq.f32.partialorder %v7751_v9, %v1981_v44 }
0x13d6   :  { %vm5290_vm4 = vmpackc.low %vm1982_vm3, %vm1982_vm3 }
0x13d7   :  { %5291 = vmatmul.mubr.msk.bf16.vlgmr.msra.gmra.mrb[0].mxu0 %vm5290_vm4, %v7469_v3 }
0x14aa   :  { %v2115_v46 = vpop.f32.mrb[0].mxu0 }
0x14ab   :  { %2122 = vst [vmem:[#allocation4] sm:$0xff] %v2115_v46  ;;  %v2117_v50 = vpop.f32.mrb[1].mxu0 }
0x14ac   :  { %2123 = vst [vmem:[#allocation4 + $0x8] sm:$0xff] %v2117_v50  ;;  %v2119_v53 = vpop.f32.mrb[2].mxu0 }
0x14ad   :  { %v2120_v54 = vpop.f32.mrb[3].mxu0 }
0x14ae PF:  { %6281 = vmatprep.subr.bf16.mxu0 %v7466_v4  ;;  %v6858_v56 = vld [vmem:[#allocation18] sm:$0xff]   ;;  %6297 = vmatprep.mubr.msk.bf16.mxu0 %vm7467_vm1, %v7466_v4  ;;  %v6859_v12 = vld [vmem:[#allocation18 + $0x8] sm:$0xff]   ;;  %v6860_v57 = vld [vmem:[#allocation18 + $0x10] sm:$0xff]   ;;  %s5292_s15 = sld [smem:[#allocation5 + $0x1]]  ;;  %s5318_s28 = sld [smem:[#allocation5 + $0x2]] }
0x14af   :  { %6301 = vmatprep.subr.bf16.mxu1 %v7466_v4  ;;  %6317 = vmatprep.mubr.msk.bf16.mxu1 %vm7467_vm1, %v7466_v4  ;;  %v6861_v8 = vld [vmem:[#allocation18 + $0x18] sm:$0xff]   ;;  %v6862_v47 = vld [vmem:[#allocation18 + $0x20] sm:$0xff]   ;;  %v6863_v59 = vld [vmem:[#allocation18 + $0x28] sm:$0xff]  }
0x14b0   :  { %6282 = vmatpush3.bf16.msra.mxu0 %v6858_v56  ;;  %v6864_v49 = vld [vmem:[#allocation18 + $0x30] sm:$0xff]   ;;  %v6865_v45 = vld [vmem:[#allocation18 + $0x38] sm:$0xff]   ;;  %v6866_v48 = vld [vmem:[#allocation19] sm:$0xff]  }
0x14b1   :  { %6283 = vmatprep.subr.bf16.mxu0 %v7466_v4  ;;  %6302 = vmatpush3.bf16.msra.mxu1 %v6866_v48  ;;  %v6867_v26 = vld [vmem:[#allocation19 + $0x8] sm:$0xff]   ;;  %v6868_v60 = vld [vmem:[#allocation19 + $0x10] sm:$0xff]   ;;  %v6869_v13 = vld [vmem:[#allocation19 + $0x18] sm:$0xff]  }
0x14b2   :  { %6303 = vmatprep.subr.bf16.mxu1 %v7466_v4  ;;  %v6870_v55 = vld [vmem:[#allocation19 + $0x20] sm:$0xff]   ;;  %v6871_v58 = vld [vmem:[#allocation19 + $0x28] sm:$0xff]   ;;  %v6872_v28 = vld [vmem:[#allocation19 + $0x30] sm:$0xff]  }
0x14b3   :  { %v6873_v61 = vld [vmem:[#allocation19 + $0x38] sm:$0xff]   ;;  %v6874_v29 = vld [vmem:[#allocation22] sm:$0xff]   ;;  %v6875_v17 = vld [vmem:[#allocation22 + $0x8] sm:$0xff]  }
0x14b4   :  { %6284 = vmatpush3.bf16.msra.mxu0 %v6859_v12  ;;  %v6876_v31 = vld [vmem:[#allocation22 + $0x10] sm:$0xff]   ;;  %s2125_s21 = scvt.s32.f32 %s5292_s15  ;;  %v6877_v37 = vld [vmem:[#allocation22 + $0x18] sm:$0xff]   ;;  %v6878_v7 = vld [vmem:[#allocation22 + $0x20] sm:$0xff]   ;;  %p5319_p0 = scmp.ne.s32.totalorder %s5318_s28, 0 }
0x14b5   :  { %6285 = vmatprep.subr.bf16.mxu0 %v7466_v4  ;;  %6304 = vmatpush3.bf16.msra.mxu1 %v6867_v26  ;;  %v2128_v18 = vld [vmem:[#allocation3 + $0x10] sm:$0xff]  ;;  %v6879_v38 = vld [vmem:[#allocation22 + $0x28] sm:$0xff]   ;;  %v2129_v39 = vld [vmem:[#allocation3 + $0x18] sm:$0xff] }
0x14b6   :  { %6305 = vmatprep.subr.bf16.mxu1 %v7466_v4  ;;  %s8275_s9 = ssub.f32 1.0, %s2125_s21  ;;  %v2130_v19 = vstv %s2125_s21  ;;  %v2134_v32 = vld [vmem:[#allocation4] sm:$0xff]  ;;  %v2135_v40 = vld [vmem:[#allocation4 + $0x8] sm:$0xff]  ;;  %v6888_v48 = vld [vmem:[#allocation21 + $0x4] ss:$8 sps:$4 sm:$0xff] (!%p5319_p0)  }
0x14b7   :  { %v2131_v63 = vmul.f32 %v2130_v19, %v2128_v18  ;;  %v6880_v15 = vld [vmem:[#allocation22 + $0x30] sm:$0xff]   ;;  %v6881_v24 = vld [vmem:[#allocation22 + $0x38] sm:$0xff]   ;;  %v2132_v0 = vmul.f32 %v2130_v19, %v2129_v39  ;;  %v6890_v26 = vld [vmem:[#allocation21] ss:$8 sps:$4 sm:$0xff] (!%p5319_p0)  }
0x14b8   :  { %6286 = vmatpush3.bf16.msra.mxu0 %v6860_v57  ;;  %v2136_v10 = vstv %s8275_s9  ;;  %v6905_v18 = vld [vmem:[#allocation21 + $0x50] ss:$8 sps:$4 sm:$0xff] (!%p5319_p0)   ;;  %v6906_v19 = vld [vmem:[#allocation21 + $0x64] ss:$8 sps:$4 sm:$0xff] (!%p5319_p0)  }
0x14b9   :  { %6287 = vmatprep.subr.bf16.mxu0 %v7466_v4  ;;  %6306 = vmatpush3.bf16.msra.mxu1 %v6868_v60  ;;  %v2137_v36 = vmul.f32 %v2136_v10, %v2134_v32  ;;  %v2138_v41 = vmul.f32 %v2136_v10, %v2135_v40  ;;  %v6891_v60 = vld [vmem:[#allocation21 + $0x14] ss:$8 sps:$4 sm:$0xff] (!%p5319_p0)   ;;  %v6908_v32 = vld [vmem:[#allocation21 + $0x60] ss:$8 sps:$4 sm:$0xff] (!%p5319_p0)  }
0x14ba   :  { %6307 = vmatprep.subr.bf16.mxu1 %v7466_v4  ;;  %v6909_v10 = vld [vmem:[#allocation21 + $0x74] ss:$8 sps:$4 sm:$0xff] (!%p5319_p0)  }
0x14bb   :  { %v2140_v42 = vadd.f32 %v2138_v41, %v2132_v0 }
0x14bc   :  { %6288 = vmatpush3.bf16.msra.mxu0 %v6861_v8 }
0x14bd   :  { %6289 = vmatprep.subr.bf16.mxu0 %v7466_v4  ;;  %6308 = vmatpush3.bf16.msra.mxu1 %v6869_v13  ;;  %v6893_v13 = vld [vmem:[#allocation21 + $0x10] ss:$8 sps:$4 sm:$0xff] (!%p5319_p0)  }
0x14be   :  { %6309 = vmatprep.subr.bf16.mxu1 %v7466_v4 }
0x14c0   :  { %6290 = vmatpush3.bf16.msra.mxu0 %v6862_v47 }
0x14c1   :  { %6291 = vmatprep.subr.bf16.mxu0 %v7466_v4  ;;  %6310 = vmatpush3.bf16.msra.mxu1 %v6870_v55  ;;  %v6894_v55 = vld [vmem:[#allocation21 + $0x24] ss:$8 sps:$4 sm:$0xff] (!%p5319_p0)  }
0x14c2   :  { %6311 = vmatprep.subr.bf16.mxu1 %v7466_v4 }
0x14c4   :  { %6292 = vmatpush3.bf16.msra.mxu0 %v6863_v59 }
0x14c5   :  { %6293 = vmatprep.subr.bf16.mxu0 %v7466_v4  ;;  %6312 = vmatpush3.bf16.msra.mxu1 %v6871_v58  ;;  %v6896_v58 = vld [vmem:[#allocation21 + $0x20] ss:$8 sps:$4 sm:$0xff] (!%p5319_p0)  }
0x14c6   :  { %6313 = vmatprep.subr.bf16.mxu1 %v7466_v4 }
0x14c8   :  { %6294 = vmatpush3.bf16.msra.mxu0 %v6864_v49 }
0x14c9   :  { %6295 = vmatprep.subr.bf16.mxu0 %v7466_v4  ;;  %6314 = vmatpush3.bf16.msra.mxu1 %v6872_v28  ;;  %v6897_v28 = vld [vmem:[#allocation21 + $0x34] ss:$8 sps:$4 sm:$0xff] (!%p5319_p0)  }
0x14ca   :  { %6315 = vmatprep.subr.bf16.mxu1 %v7466_v4 }
0x14cc   :  { %6296 = vmatpush3.bf16.msra.mxu0 %v6865_v45 }
0x14cd   :  { %6321 = vmatprep.subr.bf16.mxu0 %v7466_v4  ;;  %6316 = vmatpush3.bf16.msra.mxu1 %v6873_v61  ;;  %v6899_v61 = vld [vmem:[#allocation21 + $0x30] ss:$8 sps:$4 sm:$0xff] (!%p5319_p0)  }
0x14cf   :  { %6298 = vmatmul.mubr.bf16.vlgmr.msra.gmra.mrb[0].mxu0 %v8235_v14  ;;  %v2139_v14 = vadd.f32 %v2137_v36, %v2131_v63  ;;  %v6911_v63 = vld [vmem:[#allocation21 + $0x70] ss:$8 sps:$4 sm:$0xff] (!%p5319_p0)  }
0x14d0   :  { %6337 = vmatprep.mubr.msk.bf16.mxu0 %vm7467_vm1, %v7466_v4  ;;  %6322 = vmatpush3.bf16.msra.mxu0 %v6874_v29  ;;  %v6900_v29 = vld [vmem:[#allocation21 + $0x44] ss:$8 sps:$4 sm:$0xff] (!%p5319_p0)  }
0x14d1   :  { %6323 = vmatprep.subr.bf16.mxu0 %v7466_v4 }
0x14d4   :  { %6324 = vmatpush3.bf16.msra.mxu0 %v6875_v17  ;;  %v6902_v17 = vld [vmem:[#allocation21 + $0x40] ss:$8 sps:$4 sm:$0xff] (!%p5319_p0)  }
0x14d5   :  { %6325 = vmatprep.subr.bf16.mxu0 %v7466_v4 }
0x14d8   :  { %6326 = vmatpush3.bf16.msra.mxu0 %v6876_v31  ;;  %v6903_v31 = vld [vmem:[#allocation21 + $0x54] ss:$8 sps:$4 sm:$0xff] (!%p5319_p0)  }
0x14d9   :  { %6327 = vmatprep.subr.bf16.mxu0 %v7466_v4 }
0x14dc   :  { %6328 = vmatpush3.bf16.msra.mxu0 %v6877_v37 }
0x14dd   :  { %6329 = vmatprep.subr.bf16.mxu0 %v7466_v4 }
0x14e0   :  { %6330 = vmatpush3.bf16.msra.mxu0 %v6878_v7 }
0x14e1   :  { %6331 = vmatprep.subr.bf16.mxu0 %v7466_v4 }
0x14e4   :  { %6332 = vmatpush3.bf16.msra.mxu0 %v6879_v38 }
0x14e5   :  { %6333 = vmatprep.subr.bf16.mxu0 %v7466_v4 }
0x14e8   :  { %6334 = vmatpush3.bf16.msra.mxu0 %v6880_v15 }
0x14e9   :  { %6335 = vmatprep.subr.bf16.mxu0 %v7466_v4 }
0x14ec   :  { %6336 = vmatpush3.bf16.msra.mxu0 %v6881_v24 }
0x14ed   :  { %2584 = vmatprep.subr.bf16.mxu0 (!%p5319_p0), %v6888_v48 }
0x15a2   :  { %v2239_v16 = vpop.f32.mrb[0].mxu0 }
0x15a3   :  { %v2245_v23 = vadd.f32 %v2239_v16, %v2139_v14  ;;  %v6299_v25 = vpop.f32.mrb[1].mxu0  ;;  %v7470_v16 = vmov (!%p5319_p0), 0  }
0x15a4   :  { %v2242_v5 = vpop.f32.mrb[2].mxu0  ;;  %v7471_v25 = vmov (!%p5319_p0), 1.0|1.0  }
0x15a5   :  { %v2246_v20 = vadd.f32 %v8215_v51, %v2245_v23  ;;  %v6300_v21 = vpop.f32.mrb[3].mxu0 }
0x15a7   :  { %v5301_v27 = vmul.f32 -1.442695, %v2246_v20 }
0x15a9   :  { %6882 = vpow2.f32 %v5301_v27 }
0x15b3   :  { %v6883_v30 = vpop.eup %6882 }
0x15b4   :  { %v2250_v33 = vadd.f32 1.0, %v6883_v30 }
0x15b6   :  { %6884 = vrcp.f32 %v2250_v33 }
0x15c0   :  { %v6885_v11 = vpop.eup %6884 }
0x15c1   :  { %v2253_v35 = vmul.f32 %v6885_v11, %v8231_v22  ;;  %v2362_v50 = vsub.f32 1.0, %v6885_v11 }
0x15c3   :  { %v2254_v2 = vpack.c.bf16 %v2253_v35, %v2253_v35  ;;  %v2363_v54 = vmul.f32 %v2362_v50, %v8231_v22 }
0x15c5   :  { %6318 = vmatmul.mubr.bf16.vlgmr.msra.gmra.mrb[0].mxu1 %v2254_v2 }
0x1698   :  { %v2353_v43 = vpop.f32.mrb[0].mxu1 }
0x1699   :  { %v2359_v62 = vadd.f32 %v2353_v43, %v2140_v42  ;;  %v6319_v34 = vpop.f32.mrb[1].mxu1 }
0x169a   :  { %v2356_v44 = vpop.f32.mrb[2].mxu1 }
0x169b   :  { %v2360_v3 = vadd.f32 %v8226_v1, %v2359_v62  ;;  %v6320_v46 = vpop.f32.mrb[3].mxu1 }
0x169d   :  { %6886 = vtanh.f32 %v2360_v3 }
0x16a7   :  { %v6887_v53 = vpop.eup %6886 }
0x16a8   :  { %v2364_v56 = vmul.f32 %v6887_v53, %v6885_v11 }
0x16aa   :  { %v8286_v12 = vadd.f32 %v2364_v56, %v2363_v54 }
0x16ac   :  { %v8290_v57 = vpack.c.bf16 %v8286_v12, %v8286_v12 }
0x16ae   :  { %6338 = vmatmul.mubr.bf16.vlgmr.msra.gmra.mrb[4].mxu0 %v8290_v57 }
0x16af   :  { %2585 = vmatpush1.bf16.msra.mxu0 (!%p5319_p0), %v6890_v26  ;;  %2616 = vmatprep.mubr.bf16.mxu0 (!%p5319_p0), %v7470_v16 }
0x16b0   :  { %2586 = vmatprep.subr.bf16.mxu0 (!%p5319_p0), %v6891_v60 }
0x16b3   :  { %2587 = vmatpush1.bf16.msra.mxu0 (!%p5319_p0), %v6893_v13 }
0x16b4   :  { %2588 = vmatprep.subr.bf16.mxu0 (!%p5319_p0), %v6894_v55 }
0x16b7   :  { %2589 = vmatpush1.bf16.msra.mxu0 (!%p5319_p0), %v6896_v58 }
0x16b8   :  { %2590 = vmatprep.subr.bf16.mxu0 (!%p5319_p0), %v6897_v28 }
0x16bb   :  { %2591 = vmatpush1.bf16.msra.mxu0 (!%p5319_p0), %v6899_v61 }
0x16bc   :  { %2592 = vmatprep.subr.bf16.mxu0 (!%p5319_p0), %v6900_v29 }
0x16bf   :  { %2593 = vmatpush1.bf16.msra.mxu0 (!%p5319_p0), %v6902_v17 }
0x16c0   :  { %2594 = vmatprep.subr.bf16.mxu0 (!%p5319_p0), %v6903_v31 }
0x16c3   :  { %2595 = vmatpush1.bf16.msra.mxu0 (!%p5319_p0), %v6905_v18 }
0x16c4   :  { %2596 = vmatprep.subr.bf16.mxu0 (!%p5319_p0), %v6906_v19 }
0x16c7   :  { %2597 = vmatpush1.bf16.msra.mxu0 (!%p5319_p0), %v6908_v32 }
0x16c8   :  { %2598 = vmatprep.subr.bf16.mxu0 (!%p5319_p0), %v6909_v10 }
0x16cb   :  { %2599 = vmatpush1.bf16.msra.mxu0 (!%p5319_p0), %v6911_v63 }
0x177e   :  { %2477 = sbr.rel (%p5319_p0) target bundleno = 6524 (0x197c), region = 117 }
0x1781   :  { %v2465_v8 = vpop.f32.mrb[4].mxu0 }
0x1782   :  { %v2466_v47 = vadd.f32 %v8241_v52, %v2465_v8  ;;  %v6339_v59 = vpop.f32.mrb[5].mxu0 }
0x1783   :  { %v2468_v49 = vpop.f32.mrb[6].mxu0 }
0x1784   :  { %2472 = vst [vmem:[#allocation24 + $0x8] sm:$0xff] %v2466_v47  ;;  %v6340_v45 = vpop.f32.mrb[7].mxu0  ;;  %v2478_v22 = vsel (!%p5319_p0), %vm663_vm0, %v2466_v47, -1e+30 }
0x1785   :  { %2479 = vmax.xlane.f32.xlu0 %v2478_v22 }
0x1812   :  { %v2480_v36 = vpop.xlane.xlu0 %2479 }
0x1813   :  { %vm2481_vm5 = vcmp.eq.f32.partialorder %v2478_v22, %v2480_v36 }
0x1814   :  { %v2482_v14 = vsel %vm2481_vm5, %v7751_v9, 128.0 }
0x1815   :  { %2483 = vmin.xlane.f32.xlu0 %v2482_v14 }
0x18a2   :  { %v2484_v23 = vpop.xlane.xlu0 %2483 }
0x18a3   :  { %vm2485_vm6 = vcmp.eq.f32.partialorder %v7751_v9, %v2484_v23 }
0x18a4   :  { %vm5336_vm7 = vmpackc.low %vm2485_vm6, %vm2485_vm6 }
0x18a5   :  { %5337 = vmatmul.mubr.msk.bf16.vlgmr.msra.gmra.mrb[0].mxu0 %vm5336_vm7, %v7471_v25 }
0x1978   :  { %v2618_v5 = vpop.f32.mrb[0].mxu0 }
0x1979   :  { %2625 = vst [vmem:[#allocation4] sm:$0xff] %v2618_v5  ;;  %v2620_v20 = vpop.f32.mrb[1].mxu0 }
0x197a   :  { %2626 = vst [vmem:[#allocation4 + $0x8] sm:$0xff] %v2620_v20  ;;  %v2622_v21 = vpop.f32.mrb[2].mxu0 }
0x197b   :  { %v2623_v27 = vpop.f32.mrb[3].mxu0 }
0x197c PF:  { %6341 = vmatprep.subr.bf16.mxu0 %v7466_v4  ;;  %v6912_v30 = vld [vmem:[#allocation18] sm:$0xff]   ;;  %6357 = vmatprep.mubr.msk.bf16.mxu0 %vm7467_vm1, %v7466_v4  ;;  %v6913_v33 = vld [vmem:[#allocation18 + $0x8] sm:$0xff]   ;;  %v6914_v11 = vld [vmem:[#allocation18 + $0x10] sm:$0xff]   ;;  %s5338_s17 = sld [smem:[#allocation5 + $0x2]]  ;;  %s5364_s30 = sld [smem:[#allocation5 + $0x3]] }
0x197d   :  { %6361 = vmatprep.subr.bf16.mxu1 %v7466_v4  ;;  %6377 = vmatprep.mubr.msk.bf16.mxu1 %vm7467_vm1, %v7466_v4  ;;  %v6915_v35 = vld [vmem:[#allocation18 + $0x18] sm:$0xff]   ;;  %v6916_v2 = vld [vmem:[#allocation18 + $0x20] sm:$0xff]   ;;  %v6917_v37 = vld [vmem:[#allocation18 + $0x28] sm:$0xff]  }
0x197e   :  { %6342 = vmatpush3.bf16.msra.mxu0 %v6912_v30  ;;  %v6918_v7 = vld [vmem:[#allocation18 + $0x30] sm:$0xff]   ;;  %v6919_v38 = vld [vmem:[#allocation18 + $0x38] sm:$0xff]   ;;  %v6920_v15 = vld [vmem:[#allocation19] sm:$0xff]  }
0x197f   :  { %6343 = vmatprep.subr.bf16.mxu0 %v7466_v4  ;;  %6362 = vmatpush3.bf16.msra.mxu1 %v6920_v15  ;;  %v6921_v24 = vld [vmem:[#allocation19 + $0x8] sm:$0xff]   ;;  %v6922_v39 = vld [vmem:[#allocation19 + $0x10] sm:$0xff]   ;;  %v6923_v40 = vld [vmem:[#allocation19 + $0x18] sm:$0xff]  }
0x1980   :  { %6363 = vmatprep.subr.bf16.mxu1 %v7466_v4  ;;  %v6924_v0 = vld [vmem:[#allocation19 + $0x20] sm:$0xff]   ;;  %v6925_v41 = vld [vmem:[#allocation19 + $0x28] sm:$0xff]   ;;  %v6926_v42 = vld [vmem:[#allocation19 + $0x30] sm:$0xff]  }
0x1981   :  { %v6927_v43 = vld [vmem:[#allocation19 + $0x38] sm:$0xff]   ;;  %v6928_v62 = vld [vmem:[#allocation22] sm:$0xff]   ;;  %v6929_v34 = vld [vmem:[#allocation22 + $0x8] sm:$0xff]  }
0x1982   :  { %6344 = vmatpush3.bf16.msra.mxu0 %v6913_v33  ;;  %v6930_v44 = vld [vmem:[#allocation22 + $0x10] sm:$0xff]   ;;  %s2628_s29 = scvt.s32.f32 %s5338_s17  ;;  %v2631_v3 = vld [vmem:[#allocation3 + $0x20] sm:$0xff]  ;;  %v6931_v28 = vld [vmem:[#allocation22 + $0x18] sm:$0xff]   ;;  %p5365_p1 = scmp.ne.s32.totalorder %s5364_s30, 0 }
0x1983   :  { %6345 = vmatprep.subr.bf16.mxu0 %v7466_v4  ;;  %6364 = vmatpush3.bf16.msra.mxu1 %v6921_v24  ;;  %v2637_v50 = vld [vmem:[#allocation4] sm:$0xff]  ;;  %v6932_v61 = vld [vmem:[#allocation22 + $0x20] sm:$0xff]   ;;  %v6933_v29 = vld [vmem:[#allocation22 + $0x28] sm:$0xff]  }
0x1984   :  { %6365 = vmatprep.subr.bf16.mxu1 %v7466_v4  ;;  %s8325_s24 = ssub.f32 1.0, %s2628_s29  ;;  %v2633_v46 = vstv %s2628_s29  ;;  %v6934_v17 = vld [vmem:[#allocation22 + $0x30] sm:$0xff]   ;;  %v6935_v31 = vld [vmem:[#allocation22 + $0x38] sm:$0xff]   ;;  %v6942_v15 = vld [vmem:[#allocation21 + $0x4] ss:$8 sps:$4 sm:$0xff] (!%p5365_p1)  }
0x1985   :  { %v2634_v54 = vmul.f32 %v2633_v46, %v2631_v3  ;;  %v2632_v18 = vld [vmem:[#allocation3 + $0x28] sm:$0xff]  ;;  %v2638_v19 = vld [vmem:[#allocation4 + $0x8] sm:$0xff] }
0x1986   :  { %6346 = vmatpush3.bf16.msra.mxu0 %v6914_v11  ;;  %v2639_v53 = vstv %s8325_s24  ;;  %v2635_v32 = vmul.f32 %v2633_v46, %v2632_v18  ;;  %v6944_v24 = vld [vmem:[#allocation21] ss:$8 sps:$4 sm:$0xff] (!%p5365_p1)   ;;  %v6959_v3 = vld [vmem:[#allocation21 + $0x50] ss:$8 sps:$4 sm:$0xff] (!%p5365_p1)   ;;  %v6960_v46 = vld [vmem:[#allocation21 + $0x64] ss:$8 sps:$4 sm:$0xff] (!%p5365_p1)  }
0x1987   :  { %6347 = vmatprep.subr.bf16.mxu0 %v7466_v4  ;;  %6366 = vmatpush3.bf16.msra.mxu1 %v6922_v39  ;;  %v2640_v56 = vmul.f32 %v2639_v53, %v2637_v50  ;;  %v2641_v10 = vmul.f32 %v2639_v53, %v2638_v19  ;;  %v6945_v39 = vld [vmem:[#allocation21 + $0x14] ss:$8 sps:$4 sm:$0xff] (!%p5365_p1)   ;;  %v6962_v50 = vld [vmem:[#allocation21 + $0x60] ss:$8 sps:$4 sm:$0xff] (!%p5365_p1)  }
0x1988   :  { %6367 = vmatprep.subr.bf16.mxu1 %v7466_v4  ;;  %v6963_v53 = vld [vmem:[#allocation21 + $0x74] ss:$8 sps:$4 sm:$0xff] (!%p5365_p1)  }
0x1989   :  { %v2643_v63 = vadd.f32 %v2641_v10, %v2635_v32 }
0x198a   :  { %6348 = vmatpush3.bf16.msra.mxu0 %v6915_v35 }
0x198b   :  { %6349 = vmatprep.subr.bf16.mxu0 %v7466_v4  ;;  %6368 = vmatpush3.bf16.msra.mxu1 %v6923_v40  ;;  %v6947_v40 = vld [vmem:[#allocation21 + $0x10] ss:$8 sps:$4 sm:$0xff] (!%p5365_p1)  }
0x198c   :  { %6369 = vmatprep.subr.bf16.mxu1 %v7466_v4 }
0x198e   :  { %6350 = vmatpush3.bf16.msra.mxu0 %v6916_v2 }
0x198f   :  { %6351 = vmatprep.subr.bf16.mxu0 %v7466_v4  ;;  %6370 = vmatpush3.bf16.msra.mxu1 %v6924_v0  ;;  %v6948_v0 = vld [vmem:[#allocation21 + $0x24] ss:$8 sps:$4 sm:$0xff] (!%p5365_p1)  }
0x1990   :  { %6371 = vmatprep.subr.bf16.mxu1 %v7466_v4 }
0x1992   :  { %6352 = vmatpush3.bf16.msra.mxu0 %v6917_v37 }
0x1993   :  { %6353 = vmatprep.subr.bf16.mxu0 %v7466_v4  ;;  %6372 = vmatpush3.bf16.msra.mxu1 %v6925_v41  ;;  %v6950_v41 = vld [vmem:[#allocation21 + $0x20] ss:$8 sps:$4 sm:$0xff] (!%p5365_p1)  }
0x1994   :  { %6373 = vmatprep.subr.bf16.mxu1 %v7466_v4 }
0x1996   :  { %6354 = vmatpush3.bf16.msra.mxu0 %v6918_v7 }
0x1997   :  { %6355 = vmatprep.subr.bf16.mxu0 %v7466_v4  ;;  %6374 = vmatpush3.bf16.msra.mxu1 %v6926_v42  ;;  %v6951_v42 = vld [vmem:[#allocation21 + $0x34] ss:$8 sps:$4 sm:$0xff] (!%p5365_p1)  }
0x1998   :  { %6375 = vmatprep.subr.bf16.mxu1 %v7466_v4 }
0x199a   :  { %6356 = vmatpush3.bf16.msra.mxu0 %v6919_v38 }
0x199b   :  { %6381 = vmatprep.subr.bf16.mxu0 %v7466_v4  ;;  %6376 = vmatpush3.bf16.msra.mxu1 %v6927_v43  ;;  %v6953_v43 = vld [vmem:[#allocation21 + $0x30] ss:$8 sps:$4 sm:$0xff] (!%p5365_p1)  }
0x199d   :  { %6358 = vmatmul.mubr.bf16.vlgmr.msra.gmra.mrb[0].mxu0 %v8290_v57  ;;  %v2642_v57 = vadd.f32 %v2640_v56, %v2634_v54  ;;  %v6965_v54 = vld [vmem:[#allocation21 + $0x70] ss:$8 sps:$4 sm:$0xff] (!%p5365_p1)  }
0x199e   :  { %6397 = vmatprep.mubr.msk.bf16.mxu0 %vm7467_vm1, %v7466_v4  ;;  %6382 = vmatpush3.bf16.msra.mxu0 %v6928_v62  ;;  %v6954_v62 = vld [vmem:[#allocation21 + $0x44] ss:$8 sps:$4 sm:$0xff] (!%p5365_p1)  }
0x199f   :  { %6383 = vmatprep.subr.bf16.mxu0 %v7466_v4 }
0x19a2   :  { %6384 = vmatpush3.bf16.msra.mxu0 %v6929_v34  ;;  %v6956_v34 = vld [vmem:[#allocation21 + $0x40] ss:$8 sps:$4 sm:$0xff] (!%p5365_p1)  }
0x19a3   :  { %6385 = vmatprep.subr.bf16.mxu0 %v7466_v4 }
0x19a6   :  { %6386 = vmatpush3.bf16.msra.mxu0 %v6930_v44  ;;  %v6957_v44 = vld [vmem:[#allocation21 + $0x54] ss:$8 sps:$4 sm:$0xff] (!%p5365_p1)  }
0x19a7   :  { %6387 = vmatprep.subr.bf16.mxu0 %v7466_v4 }
0x19aa   :  { %6388 = vmatpush3.bf16.msra.mxu0 %v6931_v28 }
0x19ab   :  { %6389 = vmatprep.subr.bf16.mxu0 %v7466_v4 }
0x19ae   :  { %6390 = vmatpush3.bf16.msra.mxu0 %v6932_v61 }
0x19af   :  { %6391 = vmatprep.subr.bf16.mxu0 %v7466_v4 }
0x19b2   :  { %6392 = vmatpush3.bf16.msra.mxu0 %v6933_v29 }
0x19b3   :  { %6393 = vmatprep.subr.bf16.mxu0 %v7466_v4 }
0x19b6   :  { %6394 = vmatpush3.bf16.msra.mxu0 %v6934_v17 }
0x19b7   :  { %6395 = vmatprep.subr.bf16.mxu0 %v7466_v4 }
0x19ba   :  { %6396 = vmatpush3.bf16.msra.mxu0 %v6935_v31 }
0x19bb   :  { %3087 = vmatprep.subr.bf16.mxu0 (!%p5365_p1), %v6942_v15 }
0x1a70   :  { %v2742_v8 = vpop.f32.mrb[0].mxu0 }
0x1a71   :  { %v2748_v47 = vadd.f32 %v2742_v8, %v2642_v57  ;;  %v6359_v59 = vpop.f32.mrb[1].mxu0  ;;  %v7472_v8 = vmov (!%p5365_p1), 0  }
0x1a72   :  { %v2745_v49 = vpop.f32.mrb[2].mxu0  ;;  %v7473_v59 = vmov (!%p5365_p1), 1.0|1.0  }
0x1a73   :  { %v2749_v45 = vadd.f32 %v8215_v51, %v2748_v47  ;;  %v6360_v22 = vpop.f32.mrb[3].mxu0 }
0x1a75   :  { %v5347_v48 = vmul.f32 -1.442695, %v2749_v45 }
0x1a77   :  { %6936 = vpow2.f32 %v5347_v48 }
0x1a81   :  { %v6937_v26 = vpop.eup %6936 }
0x1a82   :  { %v2753_v60 = vadd.f32 1.0, %v6937_v26 }
0x1a84   :  { %6938 = vrcp.f32 %v2753_v60 }
0x1a8e   :  { %v6939_v13 = vpop.eup %6938 }
0x1a8f   :  { %v2756_v55 = vmul.f32 %v6939_v13, %v8286_v12  ;;  %v2865_v20 = vsub.f32 1.0, %v6939_v13 }
0x1a91   :  { %v2757_v58 = vpack.c.bf16 %v2756_v55, %v2756_v55  ;;  %v2866_v27 = vmul.f32 %v2865_v20, %v8286_v12 }
0x1a93   :  { %6378 = vmatmul.mubr.bf16.vlgmr.msra.gmra.mrb[0].mxu1 %v2757_v58 }
0x1b66   :  { %v2856_v36 = vpop.f32.mrb[0].mxu1 }
0x1b67   :  { %v2862_v14 = vadd.f32 %v2856_v36, %v2643_v63  ;;  %v6379_v16 = vpop.f32.mrb[1].mxu1 }
0x1b68   :  { %v2859_v23 = vpop.f32.mrb[2].mxu1 }
0x1b69   :  { %v2863_v25 = vadd.f32 %v8226_v1, %v2862_v14  ;;  %v6380_v5 = vpop.f32.mrb[3].mxu1 }
0x1b6b   :  { %6940 = vtanh.f32 %v2863_v25 }
0x1b75   :  { %v6941_v21 = vpop.eup %6940 }
0x1b76   :  { %v2867_v30 = vmul.f32 %v6941_v21, %v6939_v13 }
0x1b78   :  { %v8336_v33 = vadd.f32 %v2867_v30, %v2866_v27 }
0x1b7a   :  { %v8340_v11 = vpack.c.bf16 %v8336_v33, %v8336_v33 }
0x1b7c   :  { %6398 = vmatmul.mubr.bf16.vlgmr.msra.gmra.mrb[4].mxu0 %v8340_v11 }
0x1b7d   :  { %3088 = vmatpush1.bf16.msra.mxu0 (!%p5365_p1), %v6944_v24  ;;  %3119 = vmatprep.mubr.bf16.mxu0 (!%p5365_p1), %v7472_v8 }
0x1b7e   :  { %3089 = vmatprep.subr.bf16.mxu0 (!%p5365_p1), %v6945_v39 }
0x1b81   :  { %3090 = vmatpush1.bf16.msra.mxu0 (!%p5365_p1), %v6947_v40 }
0x1b82   :  { %3091 = vmatprep.subr.bf16.mxu0 (!%p5365_p1), %v6948_v0 }
0x1b85   :  { %3092 = vmatpush1.bf16.msra.mxu0 (!%p5365_p1), %v6950_v41 }
0x1b86   :  { %3093 = vmatprep.subr.bf16.mxu0 (!%p5365_p1), %v6951_v42 }
0x1b89   :  { %3094 = vmatpush1.bf16.msra.mxu0 (!%p5365_p1), %v6953_v43 }
0x1b8a   :  { %3095 = vmatprep.subr.bf16.mxu0 (!%p5365_p1), %v6954_v62 }
0x1b8d   :  { %3096 = vmatpush1.bf16.msra.mxu0 (!%p5365_p1), %v6956_v34 }
0x1b8e   :  { %3097 = vmatprep.subr.bf16.mxu0 (!%p5365_p1), %v6957_v44 }
0x1b91   :  { %3098 = vmatpush1.bf16.msra.mxu0 (!%p5365_p1), %v6959_v3 }
0x1b92   :  { %3099 = vmatprep.subr.bf16.mxu0 (!%p5365_p1), %v6960_v46 }
0x1b95   :  { %3100 = vmatpush1.bf16.msra.mxu0 (!%p5365_p1), %v6962_v50 }
0x1b96   :  { %3101 = vmatprep.subr.bf16.mxu0 (!%p5365_p1), %v6963_v53 }
0x1b99   :  { %3102 = vmatpush1.bf16.msra.mxu0 (!%p5365_p1), %v6965_v54 }
0x1c4c   :  { %2980 = sbr.rel (%p5365_p1) target bundleno = 7754 (0x1e4a), region = 121 }
0x1c4f   :  { %v2968_v35 = vpop.f32.mrb[4].mxu0 }
0x1c50   :  { %v2969_v2 = vadd.f32 %v8241_v52, %v2968_v35  ;;  %v6399_v37 = vpop.f32.mrb[5].mxu0 }
0x1c51   :  { %v2971_v7 = vpop.f32.mrb[6].mxu0 }
0x1c52   :  { %2975 = vst [vmem:[#allocation24 + $0x10] sm:$0xff] %v2969_v2  ;;  %v6400_v38 = vpop.f32.mrb[7].mxu0  ;;  %v2981_v12 = vsel (!%p5365_p1), %vm663_vm0, %v2969_v2, -1e+30 }
0x1c53   :  { %2982 = vmax.xlane.f32.xlu0 %v2981_v12 }
0x1ce0   :  { %v2983_v56 = vpop.xlane.xlu0 %2982 }
0x1ce1   :  { %vm2984_vm8 = vcmp.eq.f32.partialorder %v2981_v12, %v2983_v56 }
0x1ce2   :  { %v2985_v57 = vsel %vm2984_vm8, %v7751_v9, 128.0 }
0x1ce3   :  { %2986 = vmin.xlane.f32.xlu0 %v2985_v57 }
0x1d70   :  { %v2987_v47 = vpop.xlane.xlu0 %2986 }
0x1d71   :  { %vm2988_vm9 = vcmp.eq.f32.partialorder %v7751_v9, %v2987_v47 }
0x1d72   :  { %vm5382_vm10 = vmpackc.low %vm2988_vm9, %vm2988_vm9 }
0x1d73   :  { %5383 = vmatmul.mubr.msk.bf16.vlgmr.msra.gmra.mrb[0].mxu0 %vm5382_vm10, %v7473_v59 }
0x1e46   :  { %v3121_v49 = vpop.f32.mrb[0].mxu0 }
0x1e47   :  { %3128 = vst [vmem:[#allocation4] sm:$0xff] %v3121_v49  ;;  %v3123_v45 = vpop.f32.mrb[1].mxu0 }
0x1e48   :  { %3129 = vst [vmem:[#allocation4 + $0x8] sm:$0xff] %v3123_v45  ;;  %v3125_v22 = vpop.f32.mrb[2].mxu0 }
0x1e49   :  { %v3126_v48 = vpop.f32.mrb[3].mxu0 }
0x1e4a PF:  { %6401 = vmatprep.subr.bf16.mxu0 %v7466_v4  ;;  %v6966_v26 = vld [vmem:[#allocation18] sm:$0xff]   ;;  %6417 = vmatprep.mubr.msk.bf16.mxu0 %vm7467_vm1, %v7466_v4  ;;  %v6967_v60 = vld [vmem:[#allocation18 + $0x8] sm:$0xff]   ;;  %v6968_v13 = vld [vmem:[#allocation18 + $0x10] sm:$0xff]   ;;  %s5384_s5 = sld [smem:[#allocation5 + $0x3]]  ;;  %s5410_s8 = sld [smem:[#allocation5 + $0x4]] }
0x1e4b   :  { %6421 = vmatprep.subr.bf16.mxu1 %v7466_v4  ;;  %6437 = vmatprep.mubr.msk.bf16.mxu1 %vm7467_vm1, %v7466_v4  ;;  %v6969_v55 = vld [vmem:[#allocation18 + $0x18] sm:$0xff]   ;;  %v6970_v58 = vld [vmem:[#allocation18 + $0x20] sm:$0xff]   ;;  %v6971_v28 = vld [vmem:[#allocation18 + $0x28] sm:$0xff]  }
0x1e4c   :  { %6402 = vmatpush3.bf16.msra.mxu0 %v6966_v26  ;;  %v6972_v61 = vld [vmem:[#allocation18 + $0x30] sm:$0xff]   ;;  %v6973_v29 = vld [vmem:[#allocation18 + $0x38] sm:$0xff]   ;;  %v6974_v17 = vld [vmem:[#allocation19] sm:$0xff]  }
0x1e4d   :  { %6403 = vmatprep.subr.bf16.mxu0 %v7466_v4  ;;  %6422 = vmatpush3.bf16.msra.mxu1 %v6974_v17  ;;  %v6975_v31 = vld [vmem:[#allocation19 + $0x8] sm:$0xff]   ;;  %v6976_v18 = vld [vmem:[#allocation19 + $0x10] sm:$0xff]   ;;  %v6977_v19 = vld [vmem:[#allocation19 + $0x18] sm:$0xff]  }
0x1e4e   :  { %6423 = vmatprep.subr.bf16.mxu1 %v7466_v4  ;;  %v6978_v32 = vld [vmem:[#allocation19 + $0x20] sm:$0xff]   ;;  %v6979_v10 = vld [vmem:[#allocation19 + $0x28] sm:$0xff]   ;;  %v6980_v63 = vld [vmem:[#allocation19 + $0x30] sm:$0xff]  }
0x1e4f   :  { %v6981_v36 = vld [vmem:[#allocation19 + $0x38] sm:$0xff]   ;;  %v6982_v14 = vld [vmem:[#allocation22] sm:$0xff]   ;;  %v6983_v16 = vld [vmem:[#allocation22 + $0x8] sm:$0xff]  }
0x1e50   :  { %6404 = vmatpush3.bf16.msra.mxu0 %v6967_v60  ;;  %v6984_v23 = vld [vmem:[#allocation22 + $0x10] sm:$0xff]   ;;  %s3131_s27 = scvt.s32.f32 %s5384_s5  ;;  %v6985_v42 = vld [vmem:[#allocation22 + $0x18] sm:$0xff]   ;;  %v6986_v43 = vld [vmem:[#allocation22 + $0x20] sm:$0xff]   ;;  %p5411_p2 = scmp.ne.s32.totalorder %s5410_s8, 0 }
0x1e51   :  { %6405 = vmatprep.subr.bf16.mxu0 %v7466_v4  ;;  %6424 = vmatpush3.bf16.msra.mxu1 %v6975_v31  ;;  %v3134_v25 = vld [vmem:[#allocation3 + $0x30] sm:$0xff]  ;;  %v6987_v62 = vld [vmem:[#allocation22 + $0x28] sm:$0xff]   ;;  %v3135_v3 = vld [vmem:[#allocation3 + $0x38] sm:$0xff] }
0x1e52   :  { %6425 = vmatprep.subr.bf16.mxu1 %v7466_v4  ;;  %s8375_s0 = ssub.f32 1.0, %s3131_s27  ;;  %v3136_v5 = vstv %s3131_s27  ;;  %v3140_v20 = vld [vmem:[#allocation4] sm:$0xff]  ;;  %v3141_v46 = vld [vmem:[#allocation4 + $0x8] sm:$0xff]  ;;  %v6996_v17 = vld [vmem:[#allocation21 + $0x4] ss:$8 sps:$4 sm:$0xff] (!%p5411_p2)  }
0x1e53   :  { %v3137_v27 = vmul.f32 %v3136_v5, %v3134_v25  ;;  %v6988_v34 = vld [vmem:[#allocation22 + $0x30] sm:$0xff]   ;;  %v6989_v44 = vld [vmem:[#allocation22 + $0x38] sm:$0xff]   ;;  %v3138_v50 = vmul.f32 %v3136_v5, %v3135_v3  ;;  %v6998_v31 = vld [vmem:[#allocation21] ss:$8 sps:$4 sm:$0xff] (!%p5411_p2)  }
0x1e54   :  { %6406 = vmatpush3.bf16.msra.mxu0 %v6968_v13  ;;  %v3142_v21 = vstv %s8375_s0  ;;  %v7013_v25 = vld [vmem:[#allocation21 + $0x50] ss:$8 sps:$4 sm:$0xff] (!%p5411_p2)   ;;  %v7014_v5 = vld [vmem:[#allocation21 + $0x64] ss:$8 sps:$4 sm:$0xff] (!%p5411_p2)  }
0x1e55   :  { %6407 = vmatprep.subr.bf16.mxu0 %v7466_v4  ;;  %6426 = vmatpush3.bf16.msra.mxu1 %v6976_v18  ;;  %v3143_v30 = vmul.f32 %v3142_v21, %v3140_v20  ;;  %v3144_v53 = vmul.f32 %v3142_v21, %v3141_v46  ;;  %v6999_v18 = vld [vmem:[#allocation21 + $0x14] ss:$8 sps:$4 sm:$0xff] (!%p5411_p2)   ;;  %v7016_v20 = vld [vmem:[#allocation21 + $0x60] ss:$8 sps:$4 sm:$0xff] (!%p5411_p2)  }
0x1e56   :  { %6427 = vmatprep.subr.bf16.mxu1 %v7466_v4  ;;  %v7017_v21 = vld [vmem:[#allocation21 + $0x74] ss:$8 sps:$4 sm:$0xff] (!%p5411_p2)  }
0x1e57   :  { %v3146_v54 = vadd.f32 %v3144_v53, %v3138_v50 }
0x1e58   :  { %6408 = vmatpush3.bf16.msra.mxu0 %v6969_v55 }
0x1e59   :  { %6409 = vmatprep.subr.bf16.mxu0 %v7466_v4  ;;  %6428 = vmatpush3.bf16.msra.mxu1 %v6977_v19  ;;  %v7001_v19 = vld [vmem:[#allocation21 + $0x10] ss:$8 sps:$4 sm:$0xff] (!%p5411_p2)  }
0x1e5a   :  { %6429 = vmatprep.subr.bf16.mxu1 %v7466_v4 }
0x1e5c   :  { %6410 = vmatpush3.bf16.msra.mxu0 %v6970_v58 }
0x1e5d   :  { %6411 = vmatprep.subr.bf16.mxu0 %v7466_v4  ;;  %6430 = vmatpush3.bf16.msra.mxu1 %v6978_v32  ;;  %v7002_v32 = vld [vmem:[#allocation21 + $0x24] ss:$8 sps:$4 sm:$0xff] (!%p5411_p2)  }
0x1e5e   :  { %6431 = vmatprep.subr.bf16.mxu1 %v7466_v4 }
0x1e60   :  { %6412 = vmatpush3.bf16.msra.mxu0 %v6971_v28 }
0x1e61   :  { %6413 = vmatprep.subr.bf16.mxu0 %v7466_v4  ;;  %6432 = vmatpush3.bf16.msra.mxu1 %v6979_v10  ;;  %v7004_v10 = vld [vmem:[#allocation21 + $0x20] ss:$8 sps:$4 sm:$0xff] (!%p5411_p2)  }
0x1e62   :  { %6433 = vmatprep.subr.bf16.mxu1 %v7466_v4 }
0x1e64   :  { %6414 = vmatpush3.bf16.msra.mxu0 %v6972_v61 }
0x1e65   :  { %6415 = vmatprep.subr.bf16.mxu0 %v7466_v4  ;;  %6434 = vmatpush3.bf16.msra.mxu1 %v6980_v63  ;;  %v7005_v63 = vld [vmem:[#allocation21 + $0x34] ss:$8 sps:$4 sm:$0xff] (!%p5411_p2)  }
0x1e66   :  { %6435 = vmatprep.subr.bf16.mxu1 %v7466_v4 }
0x1e68   :  { %6416 = vmatpush3.bf16.msra.mxu0 %v6973_v29 }
0x1e69   :  { %6441 = vmatprep.subr.bf16.mxu0 %v7466_v4  ;;  %6436 = vmatpush3.bf16.msra.mxu1 %v6981_v36  ;;  %v7007_v36 = vld [vmem:[#allocation21 + $0x30] ss:$8 sps:$4 sm:$0xff] (!%p5411_p2)  }
0x1e6b   :  { %6418 = vmatmul.mubr.bf16.vlgmr.msra.gmra.mrb[0].mxu0 %v8340_v11  ;;  %v3145_v11 = vadd.f32 %v3143_v30, %v3137_v27  ;;  %v7019_v27 = vld [vmem:[#allocation21 + $0x70] ss:$8 sps:$4 sm:$0xff] (!%p5411_p2)  }
0x1e6c   :  { %6457 = vmatprep.mubr.msk.bf16.mxu0 %vm7467_vm1, %v7466_v4  ;;  %6442 = vmatpush3.bf16.msra.mxu0 %v6982_v14  ;;  %v7008_v14 = vld [vmem:[#allocation21 + $0x44] ss:$8 sps:$4 sm:$0xff] (!%p5411_p2)  }
0x1e6d   :  { %6443 = vmatprep.subr.bf16.mxu0 %v7466_v4 }
0x1e70   :  { %6444 = vmatpush3.bf16.msra.mxu0 %v6983_v16  ;;  %v7010_v16 = vld [vmem:[#allocation21 + $0x40] ss:$8 sps:$4 sm:$0xff] (!%p5411_p2)  }
0x1e71   :  { %6445 = vmatprep.subr.bf16.mxu0 %v7466_v4 }
0x1e74   :  { %6446 = vmatpush3.bf16.msra.mxu0 %v6984_v23  ;;  %v7011_v23 = vld [vmem:[#allocation21 + $0x54] ss:$8 sps:$4 sm:$0xff] (!%p5411_p2)  }
0x1e75   :  { %6447 = vmatprep.subr.bf16.mxu0 %v7466_v4 }
0x1e78   :  { %6448 = vmatpush3.bf16.msra.mxu0 %v6985_v42 }
0x1e79   :  { %6449 = vmatprep.subr.bf16.mxu0 %v7466_v4 }
0x1e7c   :  { %6450 = vmatpush3.bf16.msra.mxu0 %v6986_v43 }
0x1e7d   :  { %6451 = vmatprep.subr.bf16.mxu0 %v7466_v4 }
0x1e80   :  { %6452 = vmatpush3.bf16.msra.mxu0 %v6987_v62 }
0x1e81   :  { %6453 = vmatprep.subr.bf16.mxu0 %v7466_v4 }
0x1e84   :  { %6454 = vmatpush3.bf16.msra.mxu0 %v6988_v34 }
0x1e85   :  { %6455 = vmatprep.subr.bf16.mxu0 %v7466_v4 }
0x1e88   :  { %6456 = vmatpush3.bf16.msra.mxu0 %v6989_v44 }
0x1e89   :  { %3590 = vmatprep.subr.bf16.mxu0 (!%p5411_p2), %v6996_v17 }
0x1f3e   :  { %v3245_v35 = vpop.f32.mrb[0].mxu0 }
0x1f3f   :  { %v3251_v2 = vadd.f32 %v3245_v35, %v3145_v11  ;;  %v6419_v37 = vpop.f32.mrb[1].mxu0  ;;  %v7474_v35 = vmov (!%p5411_p2), 0  }
0x1f40   :  { %v3248_v7 = vpop.f32.mrb[2].mxu0  ;;  %v7475_v37 = vmov (!%p5411_p2), 1.0|1.0  }
0x1f41   :  { %v3252_v38 = vadd.f32 %v8215_v51, %v3251_v2  ;;  %v6420_v12 = vpop.f32.mrb[3].mxu0 }
0x1f43   :  { %v5393_v15 = vmul.f32 -1.442695, %v3252_v38 }
0x1f45   :  { %6990 = vpow2.f32 %v5393_v15 }
0x1f4f   :  { %v6991_v24 = vpop.eup %6990 }
0x1f50   :  { %v3256_v39 = vadd.f32 1.0, %v6991_v24 }
0x1f52   :  { %6992 = vrcp.f32 %v3256_v39 }
0x1f5c   :  { %v6993_v40 = vpop.eup %6992 }
0x1f5d   :  { %v3259_v0 = vmul.f32 %v6993_v40, %v8336_v33  ;;  %v3368_v45 = vsub.f32 1.0, %v6993_v40 }
0x1f5f   :  { %v3260_v41 = vpack.c.bf16 %v3259_v0, %v3259_v0  ;;  %v3369_v48 = vmul.f32 %v3368_v45, %v8336_v33 }
0x1f61   :  { %6438 = vmatmul.mubr.bf16.vlgmr.msra.gmra.mrb[0].mxu1 %v3260_v41 }
0x2034   :  { %v3359_v56 = vpop.f32.mrb[0].mxu1 }
0x2035   :  { %v3365_v57 = vadd.f32 %v3359_v56, %v3146_v54  ;;  %v6439_v8 = vpop.f32.mrb[1].mxu1 }
0x2036   :  { %v3362_v47 = vpop.f32.mrb[2].mxu1 }
0x2037   :  { %v3366_v59 = vadd.f32 %v8226_v1, %v3365_v57  ;;  %v6440_v49 = vpop.f32.mrb[3].mxu1 }
0x2039   :  { %6994 = vtanh.f32 %v3366_v59 }
0x2043   :  { %v6995_v22 = vpop.eup %6994 }
0x2044   :  { %v3370_v26 = vmul.f32 %v6995_v22, %v6993_v40 }
0x2046   :  { %v8386_v60 = vadd.f32 %v3370_v26, %v3369_v48 }
0x2048   :  { %v8390_v13 = vpack.c.bf16 %v8386_v60, %v8386_v60 }
0x204a   :  { %6458 = vmatmul.mubr.bf16.vlgmr.msra.gmra.mrb[4].mxu0 %v8390_v13 }
0x204b   :  { %3591 = vmatpush1.bf16.msra.mxu0 (!%p5411_p2), %v6998_v31  ;;  %3622 = vmatprep.mubr.bf16.mxu0 (!%p5411_p2), %v7474_v35 }
0x204c   :  { %3592 = vmatprep.subr.bf16.mxu0 (!%p5411_p2), %v6999_v18 }
0x204f   :  { %3593 = vmatpush1.bf16.msra.mxu0 (!%p5411_p2), %v7001_v19 }
0x2050   :  { %3594 = vmatprep.subr.bf16.mxu0 (!%p5411_p2), %v7002_v32 }
0x2053   :  { %3595 = vmatpush1.bf16.msra.mxu0 (!%p5411_p2), %v7004_v10 }
0x2054   :  { %3596 = vmatprep.subr.bf16.mxu0 (!%p5411_p2), %v7005_v63 }
0x2057   :  { %3597 = vmatpush1.bf16.msra.mxu0 (!%p5411_p2), %v7007_v36 }
0x2058   :  { %3598 = vmatprep.subr.bf16.mxu0 (!%p5411_p2), %v7008_v14 }
0x205b   :  { %3599 = vmatpush1.bf16.msra.mxu0 (!%p5411_p2), %v7010_v16 }
0x205c   :  { %3600 = vmatprep.subr.bf16.mxu0 (!%p5411_p2), %v7011_v23 }
0x205f   :  { %3601 = vmatpush1.bf16.msra.mxu0 (!%p5411_p2), %v7013_v25 }
0x2060   :  { %3602 = vmatprep.subr.bf16.mxu0 (!%p5411_p2), %v7014_v5 }
0x2063   :  { %3603 = vmatpush1.bf16.msra.mxu0 (!%p5411_p2), %v7016_v20 }
0x2064   :  { %3604 = vmatprep.subr.bf16.mxu0 (!%p5411_p2), %v7017_v21 }
0x2067   :  { %3605 = vmatpush1.bf16.msra.mxu0 (!%p5411_p2), %v7019_v27 }
0x211a   :  { %3483 = sbr.rel (%p5411_p2) target bundleno = 8984 (0x2318), region = 125 }
0x211d   :  { %v3471_v55 = vpop.f32.mrb[4].mxu0 }
0x211e   :  { %v3472_v58 = vadd.f32 %v8241_v52, %v3471_v55  ;;  %v6459_v28 = vpop.f32.mrb[5].mxu0 }
0x211f   :  { %v3474_v61 = vpop.f32.mrb[6].mxu0 }
0x2120   :  { %3478 = vst [vmem:[#allocation24 + $0x18] sm:$0xff] %v3472_v58  ;;  %v6460_v29 = vpop.f32.mrb[7].mxu0  ;;  %v3484_v33 = vsel (!%p5411_p2), %vm663_vm0, %v3472_v58, -1e+30 }
0x2121   :  { %3485 = vmax.xlane.f32.xlu0 %v3484_v33 }
0x21ae   :  { %v3486_v30 = vpop.xlane.xlu0 %3485 }
0x21af   :  { %vm3487_vm11 = vcmp.eq.f32.partialorder %v3484_v33, %v3486_v30 }
0x21b0   :  { %v3488_v11 = vsel %vm3487_vm11, %v7751_v9, 128.0 }
0x21b1   :  { %3489 = vmin.xlane.f32.xlu0 %v3488_v11 }
0x223e   :  { %v3490_v2 = vpop.xlane.xlu0 %3489 }
0x223f   :  { %vm3491_vm12 = vcmp.eq.f32.partialorder %v7751_v9, %v3490_v2 }
0x2240   :  { %vm5428_vm13 = vmpackc.low %vm3491_vm12, %vm3491_vm12 }
0x2241   :  { %5429 = vmatmul.mubr.msk.bf16.vlgmr.msra.gmra.mrb[0].mxu0 %vm5428_vm13, %v7475_v37 }
0x2314   :  { %v3624_v7 = vpop.f32.mrb[0].mxu0 }
0x2315   :  { %3631 = vst [vmem:[#allocation4] sm:$0xff] %v3624_v7  ;;  %v3626_v38 = vpop.f32.mrb[1].mxu0 }
0x2316   :  { %3632 = vst [vmem:[#allocation4 + $0x8] sm:$0xff] %v3626_v38  ;;  %v3628_v12 = vpop.f32.mrb[2].mxu0 }
0x2317   :  { %v3629_v15 = vpop.f32.mrb[3].mxu0 }
0x2318 PF:  { %6461 = vmatprep.subr.bf16.mxu0 %v7466_v4  ;;  %v7020_v24 = vld [vmem:[#allocation18] sm:$0xff]   ;;  %6477 = vmatprep.mubr.msk.bf16.mxu0 %vm7467_vm1, %v7466_v4  ;;  %v7021_v39 = vld [vmem:[#allocation18 + $0x8] sm:$0xff]   ;;  %v7022_v40 = vld [vmem:[#allocation18 + $0x10] sm:$0xff]   ;;  %s5430_s3 = sld [smem:[#allocation5 + $0x4]]  ;;  %s5456_s14 = sld [smem:[#allocation5 + $0x5]] }
0x2319   :  { %6481 = vmatprep.subr.bf16.mxu1 %v7466_v4  ;;  %6497 = vmatprep.mubr.msk.bf16.mxu1 %vm7467_vm1, %v7466_v4  ;;  %v7023_v0 = vld [vmem:[#allocation18 + $0x18] sm:$0xff]   ;;  %v7024_v41 = vld [vmem:[#allocation18 + $0x20] sm:$0xff]   ;;  %v7025_v42 = vld [vmem:[#allocation18 + $0x28] sm:$0xff]  }
0x231a   :  { %6462 = vmatpush3.bf16.msra.mxu0 %v7020_v24  ;;  %v7026_v43 = vld [vmem:[#allocation18 + $0x30] sm:$0xff]   ;;  %v7027_v62 = vld [vmem:[#allocation18 + $0x38] sm:$0xff]   ;;  %v7028_v34 = vld [vmem:[#allocation19] sm:$0xff]  }
0x231b   :  { %6463 = vmatprep.subr.bf16.mxu0 %v7466_v4  ;;  %6482 = vmatpush3.bf16.msra.mxu1 %v7028_v34  ;;  %v7029_v44 = vld [vmem:[#allocation19 + $0x8] sm:$0xff]   ;;  %v7030_v3 = vld [vmem:[#allocation19 + $0x10] sm:$0xff]   ;;  %v7031_v46 = vld [vmem:[#allocation19 + $0x18] sm:$0xff]  }
0x231c   :  { %6483 = vmatprep.subr.bf16.mxu1 %v7466_v4  ;;  %v7032_v50 = vld [vmem:[#allocation19 + $0x20] sm:$0xff]   ;;  %v7033_v53 = vld [vmem:[#allocation19 + $0x28] sm:$0xff]   ;;  %v7034_v54 = vld [vmem:[#allocation19 + $0x30] sm:$0xff]  }
0x231d   :  { %v7035_v56 = vld [vmem:[#allocation19 + $0x38] sm:$0xff]   ;;  %v7036_v57 = vld [vmem:[#allocation22] sm:$0xff]   ;;  %v7037_v8 = vld [vmem:[#allocation22 + $0x8] sm:$0xff]  }
0x231e   :  { %6464 = vmatpush3.bf16.msra.mxu0 %v7021_v39  ;;  %v7038_v47 = vld [vmem:[#allocation22 + $0x10] sm:$0xff]   ;;  %s3634_s13 = scvt.s32.f32 %s5430_s3  ;;  %v3637_v59 = vld [vmem:[#allocation3 + $0x40] sm:$0xff]  ;;  %v7039_v63 = vld [vmem:[#allocation22 + $0x18] sm:$0xff]   ;;  %p5457_p3 = scmp.ne.s32.totalorder %s5456_s14, 0 }
0x231f   :  { %6465 = vmatprep.subr.bf16.mxu0 %v7466_v4  ;;  %6484 = vmatpush3.bf16.msra.mxu1 %v7029_v44  ;;  %v3643_v45 = vld [vmem:[#allocation4] sm:$0xff]  ;;  %v7040_v36 = vld [vmem:[#allocation22 + $0x20] sm:$0xff]   ;;  %v7041_v14 = vld [vmem:[#allocation22 + $0x28] sm:$0xff]  }
0x2320   :  { %6485 = vmatprep.subr.bf16.mxu1 %v7466_v4  ;;  %s8425_s1 = ssub.f32 1.0, %s3634_s13  ;;  %v3639_v49 = vstv %s3634_s13  ;;  %v7042_v16 = vld [vmem:[#allocation22 + $0x30] sm:$0xff]   ;;  %v7043_v23 = vld [vmem:[#allocation22 + $0x38] sm:$0xff]   ;;  %v7050_v34 = vld [vmem:[#allocation21 + $0x4] ss:$8 sps:$4 sm:$0xff] (!%p5457_p3)  }
0x2321   :  { %v3640_v48 = vmul.f32 %v3639_v49, %v3637_v59  ;;  %v3638_v25 = vld [vmem:[#allocation3 + $0x48] sm:$0xff]  ;;  %v3644_v5 = vld [vmem:[#allocation4 + $0x8] sm:$0xff] }
0x2322   :  { %6466 = vmatpush3.bf16.msra.mxu0 %v7022_v40  ;;  %v3645_v22 = vstv %s8425_s1  ;;  %v3641_v20 = vmul.f32 %v3639_v49, %v3638_v25  ;;  %v7052_v44 = vld [vmem:[#allocation21] ss:$8 sps:$4 sm:$0xff] (!%p5457_p3)   ;;  %v7067_v59 = vld [vmem:[#allocation21 + $0x50] ss:$8 sps:$4 sm:$0xff] (!%p5457_p3)   ;;  %v7068_v49 = vld [vmem:[#allocation21 + $0x64] ss:$8 sps:$4 sm:$0xff] (!%p5457_p3)  }
0x2323   :  { %6467 = vmatprep.subr.bf16.mxu0 %v7466_v4  ;;  %6486 = vmatpush3.bf16.msra.mxu1 %v7030_v3  ;;  %v3646_v26 = vmul.f32 %v3645_v22, %v3643_v45  ;;  %v3647_v21 = vmul.f32 %v3645_v22, %v3644_v5  ;;  %v7053_v3 = vld [vmem:[#allocation21 + $0x14] ss:$8 sps:$4 sm:$0xff] (!%p5457_p3)   ;;  %v7070_v45 = vld [vmem:[#allocation21 + $0x60] ss:$8 sps:$4 sm:$0xff] (!%p5457_p3)  }
0x2324   :  { %6487 = vmatprep.subr.bf16.mxu1 %v7466_v4  ;;  %v7071_v22 = vld [vmem:[#allocation21 + $0x74] ss:$8 sps:$4 sm:$0xff] (!%p5457_p3)  }
0x2325   :  { %v3649_v27 = vadd.f32 %v3647_v21, %v3641_v20 }
0x2326   :  { %6468 = vmatpush3.bf16.msra.mxu0 %v7023_v0 }
0x2327   :  { %6469 = vmatprep.subr.bf16.mxu0 %v7466_v4  ;;  %6488 = vmatpush3.bf16.msra.mxu1 %v7031_v46  ;;  %v7055_v46 = vld [vmem:[#allocation21 + $0x10] ss:$8 sps:$4 sm:$0xff] (!%p5457_p3)  }
0x2328   :  { %6489 = vmatprep.subr.bf16.mxu1 %v7466_v4 }
0x232a   :  { %6470 = vmatpush3.bf16.msra.mxu0 %v7024_v41 }
0x232b   :  { %6471 = vmatprep.subr.bf16.mxu0 %v7466_v4  ;;  %6490 = vmatpush3.bf16.msra.mxu1 %v7032_v50  ;;  %v7056_v50 = vld [vmem:[#allocation21 + $0x24] ss:$8 sps:$4 sm:$0xff] (!%p5457_p3)  }
0x232c   :  { %6491 = vmatprep.subr.bf16.mxu1 %v7466_v4 }
0x232e   :  { %6472 = vmatpush3.bf16.msra.mxu0 %v7025_v42 }
0x232f   :  { %6473 = vmatprep.subr.bf16.mxu0 %v7466_v4  ;;  %6492 = vmatpush3.bf16.msra.mxu1 %v7033_v53  ;;  %v7058_v53 = vld [vmem:[#allocation21 + $0x20] ss:$8 sps:$4 sm:$0xff] (!%p5457_p3)  }
0x2330   :  { %6493 = vmatprep.subr.bf16.mxu1 %v7466_v4 }
0x2332   :  { %6474 = vmatpush3.bf16.msra.mxu0 %v7026_v43 }
0x2333   :  { %6475 = vmatprep.subr.bf16.mxu0 %v7466_v4  ;;  %6494 = vmatpush3.bf16.msra.mxu1 %v7034_v54  ;;  %v7059_v54 = vld [vmem:[#allocation21 + $0x34] ss:$8 sps:$4 sm:$0xff] (!%p5457_p3)  }
0x2334   :  { %6495 = vmatprep.subr.bf16.mxu1 %v7466_v4 }
0x2336   :  { %6476 = vmatpush3.bf16.msra.mxu0 %v7027_v62 }
0x2337   :  { %6501 = vmatprep.subr.bf16.mxu0 %v7466_v4  ;;  %6496 = vmatpush3.bf16.msra.mxu1 %v7035_v56  ;;  %v7061_v56 = vld [vmem:[#allocation21 + $0x30] ss:$8 sps:$4 sm:$0xff] (!%p5457_p3)  }
0x2339   :  { %6478 = vmatmul.mubr.bf16.vlgmr.msra.gmra.mrb[0].mxu0 %v8390_v13  ;;  %v3648_v13 = vadd.f32 %v3646_v26, %v3640_v48  ;;  %v7073_v48 = vld [vmem:[#allocation21 + $0x70] ss:$8 sps:$4 sm:$0xff] (!%p5457_p3)  }
0x233a   :  { %6517 = vmatprep.mubr.msk.bf16.mxu0 %vm7467_vm1, %v7466_v4  ;;  %6502 = vmatpush3.bf16.msra.mxu0 %v7036_v57  ;;  %v7062_v57 = vld [vmem:[#allocation21 + $0x44] ss:$8 sps:$4 sm:$0xff] (!%p5457_p3)  }
0x233b   :  { %6503 = vmatprep.subr.bf16.mxu0 %v7466_v4 }
0x233e   :  { %6504 = vmatpush3.bf16.msra.mxu0 %v7037_v8  ;;  %v7064_v8 = vld [vmem:[#allocation21 + $0x40] ss:$8 sps:$4 sm:$0xff] (!%p5457_p3)  }
0x233f   :  { %6505 = vmatprep.subr.bf16.mxu0 %v7466_v4 }
0x2342   :  { %6506 = vmatpush3.bf16.msra.mxu0 %v7038_v47  ;;  %v7065_v47 = vld [vmem:[#allocation21 + $0x54] ss:$8 sps:$4 sm:$0xff] (!%p5457_p3)  }
0x2343   :  { %6507 = vmatprep.subr.bf16.mxu0 %v7466_v4 }
0x2346   :  { %6508 = vmatpush3.bf16.msra.mxu0 %v7039_v63 }
0x2347   :  { %6509 = vmatprep.subr.bf16.mxu0 %v7466_v4 }
0x234a   :  { %6510 = vmatpush3.bf16.msra.mxu0 %v7040_v36 }
0x234b   :  { %6511 = vmatprep.subr.bf16.mxu0 %v7466_v4 }
0x234e   :  { %6512 = vmatpush3.bf16.msra.mxu0 %v7041_v14 }
0x234f   :  { %6513 = vmatprep.subr.bf16.mxu0 %v7466_v4 }
0x2352   :  { %6514 = vmatpush3.bf16.msra.mxu0 %v7042_v16 }
0x2353   :  { %6515 = vmatprep.subr.bf16.mxu0 %v7466_v4 }
0x2356   :  { %6516 = vmatpush3.bf16.msra.mxu0 %v7043_v23 }
0x2357   :  { %4093 = vmatprep.subr.bf16.mxu0 (!%p5457_p3), %v7050_v34 }
0x240c   :  { %v3748_v55 = vpop.f32.mrb[0].mxu0 }
0x240d   :  { %v3754_v58 = vadd.f32 %v3748_v55, %v3648_v13  ;;  %v6479_v28 = vpop.f32.mrb[1].mxu0  ;;  %v7476_v55 = vmov (!%p5457_p3), 0  }
0x240e   :  { %v3751_v61 = vpop.f32.mrb[2].mxu0  ;;  %v7477_v28 = vmov (!%p5457_p3), 1.0|1.0  }
0x240f   :  { %v3755_v29 = vadd.f32 %v8215_v51, %v3754_v58  ;;  %v6480_v33 = vpop.f32.mrb[3].mxu0 }
0x2411   :  { %v5439_v17 = vmul.f32 -1.442695, %v3755_v29 }
0x2413   :  { %7044 = vpow2.f32 %v5439_v17 }
0x241d   :  { %v7045_v31 = vpop.eup %7044 }
0x241e   :  { %v3759_v18 = vadd.f32 1.0, %v7045_v31 }
0x2420   :  { %7046 = vrcp.f32 %v3759_v18 }
0x242a   :  { %v7047_v19 = vpop.eup %7046 }
0x242b   :  { %v3762_v32 = vmul.f32 %v7047_v19, %v8386_v60  ;;  %v3871_v38 = vsub.f32 1.0, %v7047_v19 }
0x242d   :  { %v3763_v10 = vpack.c.bf16 %v3762_v32, %v3762_v32  ;;  %v3872_v15 = vmul.f32 %v3871_v38, %v8386_v60 }
0x242f   :  { %6498 = vmatmul.mubr.bf16.vlgmr.msra.gmra.mrb[0].mxu1 %v3763_v10 }
0x2502   :  { %v3862_v30 = vpop.f32.mrb[0].mxu1 }
0x2503   :  { %v3868_v11 = vadd.f32 %v3862_v30, %v3649_v27  ;;  %v6499_v35 = vpop.f32.mrb[1].mxu1 }
0x2504   :  { %v3865_v2 = vpop.f32.mrb[2].mxu1 }
0x2505   :  { %v3869_v37 = vadd.f32 %v8226_v1, %v3868_v11  ;;  %v6500_v7 = vpop.f32.mrb[3].mxu1 }
0x2507   :  { %7048 = vtanh.f32 %v3869_v37 }
0x2511   :  { %v7049_v12 = vpop.eup %7048 }
0x2512   :  { %v3873_v24 = vmul.f32 %v7049_v12, %v7047_v19 }
0x2514   :  { %v8436_v39 = vadd.f32 %v3873_v24, %v3872_v15 }
0x2516   :  { %v8440_v40 = vpack.c.bf16 %v8436_v39, %v8436_v39 }
0x2518   :  { %6518 = vmatmul.mubr.bf16.vlgmr.msra.gmra.mrb[4].mxu0 %v8440_v40 }
0x2519   :  { %4094 = vmatpush1.bf16.msra.mxu0 (!%p5457_p3), %v7052_v44  ;;  %4125 = vmatprep.mubr.bf16.mxu0 (!%p5457_p3), %v7476_v55 }
0x251a   :  { %4095 = vmatprep.subr.bf16.mxu0 (!%p5457_p3), %v7053_v3 }
0x251d   :  { %4096 = vmatpush1.bf16.msra.mxu0 (!%p5457_p3), %v7055_v46 }
0x251e   :  { %4097 = vmatprep.subr.bf16.mxu0 (!%p5457_p3), %v7056_v50 }
0x2521   :  { %4098 = vmatpush1.bf16.msra.mxu0 (!%p5457_p3), %v7058_v53 }
0x2522   :  { %4099 = vmatprep.subr.bf16.mxu0 (!%p5457_p3), %v7059_v54 }
0x2525   :  { %4100 = vmatpush1.bf16.msra.mxu0 (!%p5457_p3), %v7061_v56 }
0x2526   :  { %4101 = vmatprep.subr.bf16.mxu0 (!%p5457_p3), %v7062_v57 }
0x2529   :  { %4102 = vmatpush1.bf16.msra.mxu0 (!%p5457_p3), %v7064_v8 }
0x252a   :  { %4103 = vmatprep.subr.bf16.mxu0 (!%p5457_p3), %v7065_v47 }
0x252d   :  { %4104 = vmatpush1.bf16.msra.mxu0 (!%p5457_p3), %v7067_v59 }
0x252e   :  { %4105 = vmatprep.subr.bf16.mxu0 (!%p5457_p3), %v7068_v49 }
0x2531   :  { %4106 = vmatpush1.bf16.msra.mxu0 (!%p5457_p3), %v7070_v45 }
0x2532   :  { %4107 = vmatprep.subr.bf16.mxu0 (!%p5457_p3), %v7071_v22 }
0x2535   :  { %4108 = vmatpush1.bf16.msra.mxu0 (!%p5457_p3), %v7073_v48 }
0x25e8   :  { %3986 = sbr.rel (%p5457_p3) target bundleno = 10214 (0x27e6), region = 129 }
0x25eb   :  { %v3974_v0 = vpop.f32.mrb[4].mxu0 }
0x25ec   :  { %v3975_v41 = vadd.f32 %v8241_v52, %v3974_v0  ;;  %v6519_v42 = vpop.f32.mrb[5].mxu0 }
0x25ed   :  { %v3977_v43 = vpop.f32.mrb[6].mxu0 }
0x25ee   :  { %3981 = vst [vmem:[#allocation24 + $0x20] sm:$0xff] %v3975_v41  ;;  %v6520_v62 = vpop.f32.mrb[7].mxu0  ;;  %v3987_v60 = vsel (!%p5457_p3), %vm663_vm0, %v3975_v41, -1e+30 }
0x25ef   :  { %3988 = vmax.xlane.f32.xlu0 %v3987_v60 }
0x267c   :  { %v3989_v26 = vpop.xlane.xlu0 %3988 }
0x267d   :  { %vm3990_vm14 = vcmp.eq.f32.partialorder %v3987_v60, %v3989_v26 }
0x267e   :  { %v3991_v13 = vsel %vm3990_vm14, %v7751_v9, 128.0 }
0x267f   :  { %3992 = vmin.xlane.f32.xlu0 %v3991_v13 }
0x270c   :  { %v3993_v58 = vpop.xlane.xlu0 %3992 }
0x270d   :  { %vm3994_vm15 = vcmp.eq.f32.partialorder %v7751_v9, %v3993_v58 }
0x270e   :  { %vm5474_vm2 = vmpackc.low %vm3994_vm15, %vm3994_vm15 }
0x270f   :  { %5475 = vmatmul.mubr.msk.bf16.vlgmr.msra.gmra.mrb[0].mxu0 %vm5474_vm2, %v7477_v28 }
0x27e2   :  { %v4127_v61 = vpop.f32.mrb[0].mxu0 }
0x27e3   :  { %4134 = vst [vmem:[#allocation4] sm:$0xff] %v4127_v61  ;;  %v4129_v29 = vpop.f32.mrb[1].mxu0 }
0x27e4   :  { %4135 = vst [vmem:[#allocation4 + $0x8] sm:$0xff] %v4129_v29  ;;  %v4131_v33 = vpop.f32.mrb[2].mxu0 }
0x27e5   :  { %v4132_v17 = vpop.f32.mrb[3].mxu0 }
0x27e6 PF:  { %6521 = vmatprep.subr.bf16.mxu0 %v7466_v4  ;;  %v7074_v31 = vld [vmem:[#allocation18] sm:$0xff]   ;;  %6537 = vmatprep.mubr.msk.bf16.mxu0 %vm7467_vm1, %v7466_v4  ;;  %v7075_v18 = vld [vmem:[#allocation18 + $0x8] sm:$0xff]   ;;  %v7076_v19 = vld [vmem:[#allocation18 + $0x10] sm:$0xff]   ;;  %s5476_s18 = sld [smem:[#allocation5 + $0x5]]  ;;  %s5502_s10 = sld [smem:[#allocation5 + $0x6]] }
0x27e7   :  { %6541 = vmatprep.subr.bf16.mxu1 %v7466_v4  ;;  %6557 = vmatprep.mubr.msk.bf16.mxu1 %vm7467_vm1, %v7466_v4  ;;  %v7077_v32 = vld [vmem:[#allocation18 + $0x18] sm:$0xff]   ;;  %v7078_v10 = vld [vmem:[#allocation18 + $0x20] sm:$0xff]   ;;  %v7079_v63 = vld [vmem:[#allocation18 + $0x28] sm:$0xff]  }
0x27e8   :  { %6522 = vmatpush3.bf16.msra.mxu0 %v7074_v31  ;;  %v7080_v36 = vld [vmem:[#allocation18 + $0x30] sm:$0xff]   ;;  %v7081_v14 = vld [vmem:[#allocation18 + $0x38] sm:$0xff]   ;;  %v7082_v16 = vld [vmem:[#allocation19] sm:$0xff]  }
0x27e9   :  { %6523 = vmatprep.subr.bf16.mxu0 %v7466_v4  ;;  %6542 = vmatpush3.bf16.msra.mxu1 %v7082_v16  ;;  %v7083_v23 = vld [vmem:[#allocation19 + $0x8] sm:$0xff]   ;;  %v7084_v25 = vld [vmem:[#allocation19 + $0x10] sm:$0xff]   ;;  %v7085_v5 = vld [vmem:[#allocation19 + $0x18] sm:$0xff]  }
0x27ea   :  { %6543 = vmatprep.subr.bf16.mxu1 %v7466_v4  ;;  %v7086_v20 = vld [vmem:[#allocation19 + $0x20] sm:$0xff]   ;;  %v7087_v21 = vld [vmem:[#allocation19 + $0x28] sm:$0xff]   ;;  %v7088_v27 = vld [vmem:[#allocation19 + $0x30] sm:$0xff]  }
0x27eb   :  { %v7089_v30 = vld [vmem:[#allocation19 + $0x38] sm:$0xff]   ;;  %v7090_v11 = vld [vmem:[#allocation22] sm:$0xff]   ;;  %v7091_v35 = vld [vmem:[#allocation22 + $0x8] sm:$0xff]  }
0x27ec   :  { %6524 = vmatpush3.bf16.msra.mxu0 %v7075_v18  ;;  %v7092_v2 = vld [vmem:[#allocation22 + $0x10] sm:$0xff]   ;;  %s4137_s6 = scvt.s32.f32 %s5476_s18  ;;  %v7093_v54 = vld [vmem:[#allocation22 + $0x18] sm:$0xff]   ;;  %v7094_v56 = vld [vmem:[#allocation22 + $0x20] sm:$0xff]   ;;  %p5503_p4 = scmp.ne.s32.totalorder %s5502_s10, 0 }
0x27ed   :  { %6525 = vmatprep.subr.bf16.mxu0 %v7466_v4  ;;  %6544 = vmatpush3.bf16.msra.mxu1 %v7083_v23  ;;  %v4140_v37 = vld [vmem:[#allocation3 + $0x50] sm:$0xff]  ;;  %v7095_v57 = vld [vmem:[#allocation22 + $0x28] sm:$0xff]   ;;  %v4141_v59 = vld [vmem:[#allocation3 + $0x58] sm:$0xff] }
0x27ee   :  { %6545 = vmatprep.subr.bf16.mxu1 %v7466_v4  ;;  %s8475_s19 = ssub.f32 1.0, %s4137_s6  ;;  %v4142_v7 = vstv %s4137_s6  ;;  %v4146_v38 = vld [vmem:[#allocation4] sm:$0xff]  ;;  %v4147_v49 = vld [vmem:[#allocation4 + $0x8] sm:$0xff]  ;;  %v7104_v16 = vld [vmem:[#allocation21 + $0x4] ss:$8 sps:$4 sm:$0xff] (!%p5503_p4)  }
0x27ef   :  { %v4143_v15 = vmul.f32 %v4142_v7, %v4140_v37  ;;  %v7096_v8 = vld [vmem:[#allocation22 + $0x30] sm:$0xff]   ;;  %v7097_v47 = vld [vmem:[#allocation22 + $0x38] sm:$0xff]   ;;  %v4144_v45 = vmul.f32 %v4142_v7, %v4141_v59  ;;  %v7106_v23 = vld [vmem:[#allocation21] ss:$8 sps:$4 sm:$0xff] (!%p5503_p4)  }
0x27f0   :  { %6526 = vmatpush3.bf16.msra.mxu0 %v7076_v19  ;;  %v4148_v12 = vstv %s8475_s19  ;;  %v7121_v37 = vld [vmem:[#allocation21 + $0x50] ss:$8 sps:$4 sm:$0xff] (!%p5503_p4)   ;;  %v7122_v7 = vld [vmem:[#allocation21 + $0x64] ss:$8 sps:$4 sm:$0xff] (!%p5503_p4)  }
0x27f1   :  { %6527 = vmatprep.subr.bf16.mxu0 %v7466_v4  ;;  %6546 = vmatpush3.bf16.msra.mxu1 %v7084_v25  ;;  %v4149_v24 = vmul.f32 %v4148_v12, %v4146_v38  ;;  %v4150_v22 = vmul.f32 %v4148_v12, %v4147_v49  ;;  %v7107_v25 = vld [vmem:[#allocation21 + $0x14] ss:$8 sps:$4 sm:$0xff] (!%p5503_p4)   ;;  %v7124_v38 = vld [vmem:[#allocation21 + $0x60] ss:$8 sps:$4 sm:$0xff] (!%p5503_p4)  }
0x27f2   :  { %6547 = vmatprep.subr.bf16.mxu1 %v7466_v4  ;;  %v7125_v12 = vld [vmem:[#allocation21 + $0x74] ss:$8 sps:$4 sm:$0xff] (!%p5503_p4)  }
0x27f3   :  { %v4152_v48 = vadd.f32 %v4150_v22, %v4144_v45 }
0x27f4   :  { %6528 = vmatpush3.bf16.msra.mxu0 %v7077_v32 }
0x27f5   :  { %6529 = vmatprep.subr.bf16.mxu0 %v7466_v4  ;;  %6548 = vmatpush3.bf16.msra.mxu1 %v7085_v5  ;;  %v7109_v5 = vld [vmem:[#allocation21 + $0x10] ss:$8 sps:$4 sm:$0xff] (!%p5503_p4)  }
0x27f6   :  { %6549 = vmatprep.subr.bf16.mxu1 %v7466_v4 }
0x27f8   :  { %6530 = vmatpush3.bf16.msra.mxu0 %v7078_v10 }
0x27f9   :  { %6531 = vmatprep.subr.bf16.mxu0 %v7466_v4  ;;  %6550 = vmatpush3.bf16.msra.mxu1 %v7086_v20  ;;  %v7110_v20 = vld [vmem:[#allocation21 + $0x24] ss:$8 sps:$4 sm:$0xff] (!%p5503_p4)  }
0x27fa   :  { %6551 = vmatprep.subr.bf16.mxu1 %v7466_v4 }
0x27fc   :  { %6532 = vmatpush3.bf16.msra.mxu0 %v7079_v63 }
0x27fd   :  { %6533 = vmatprep.subr.bf16.mxu0 %v7466_v4  ;;  %6552 = vmatpush3.bf16.msra.mxu1 %v7087_v21  ;;  %v7112_v21 = vld [vmem:[#allocation21 + $0x20] ss:$8 sps:$4 sm:$0xff] (!%p5503_p4)  }
0x27fe   :  { %6553 = vmatprep.subr.bf16.mxu1 %v7466_v4 }
0x2800   :  { %6534 = vmatpush3.bf16.msra.mxu0 %v7080_v36 }
0x2801   :  { %6535 = vmatprep.subr.bf16.mxu0 %v7466_v4  ;;  %6554 = vmatpush3.bf16.msra.mxu1 %v7088_v27  ;;  %v7113_v27 = vld [vmem:[#allocation21 + $0x34] ss:$8 sps:$4 sm:$0xff] (!%p5503_p4)  }
0x2802   :  { %6555 = vmatprep.subr.bf16.mxu1 %v7466_v4 }
0x2804   :  { %6536 = vmatpush3.bf16.msra.mxu0 %v7081_v14 }
0x2805   :  { %6561 = vmatprep.subr.bf16.mxu0 %v7466_v4  ;;  %6556 = vmatpush3.bf16.msra.mxu1 %v7089_v30  ;;  %v7115_v30 = vld [vmem:[#allocation21 + $0x30] ss:$8 sps:$4 sm:$0xff] (!%p5503_p4)  }
0x2807   :  { %6538 = vmatmul.mubr.bf16.vlgmr.msra.gmra.mrb[0].mxu0 %v8440_v40  ;;  %v4151_v40 = vadd.f32 %v4149_v24, %v4143_v15  ;;  %v7127_v15 = vld [vmem:[#allocation21 + $0x70] ss:$8 sps:$4 sm:$0xff] (!%p5503_p4)  }
0x2808   :  { %6577 = vmatprep.mubr.msk.bf16.mxu0 %vm7467_vm1, %v7466_v4  ;;  %6562 = vmatpush3.bf16.msra.mxu0 %v7090_v11  ;;  %v7116_v11 = vld [vmem:[#allocation21 + $0x44] ss:$8 sps:$4 sm:$0xff] (!%p5503_p4)  }
0x2809   :  { %6563 = vmatprep.subr.bf16.mxu0 %v7466_v4 }
0x280c   :  { %6564 = vmatpush3.bf16.msra.mxu0 %v7091_v35  ;;  %v7118_v35 = vld [vmem:[#allocation21 + $0x40] ss:$8 sps:$4 sm:$0xff] (!%p5503_p4)  }
0x280d   :  { %6565 = vmatprep.subr.bf16.mxu0 %v7466_v4 }
0x2810   :  { %6566 = vmatpush3.bf16.msra.mxu0 %v7092_v2  ;;  %v7119_v2 = vld [vmem:[#allocation21 + $0x54] ss:$8 sps:$4 sm:$0xff] (!%p5503_p4)  }
0x2811   :  { %6567 = vmatprep.subr.bf16.mxu0 %v7466_v4 }
0x2814   :  { %6568 = vmatpush3.bf16.msra.mxu0 %v7093_v54 }
0x2815   :  { %6569 = vmatprep.subr.bf16.mxu0 %v7466_v4 }
0x2818   :  { %6570 = vmatpush3.bf16.msra.mxu0 %v7094_v56 }
0x2819   :  { %6571 = vmatprep.subr.bf16.mxu0 %v7466_v4 }
0x281c   :  { %6572 = vmatpush3.bf16.msra.mxu0 %v7095_v57 }
0x281d   :  { %6573 = vmatprep.subr.bf16.mxu0 %v7466_v4 }
0x2820   :  { %6574 = vmatpush3.bf16.msra.mxu0 %v7096_v8 }
0x2821   :  { %6575 = vmatprep.subr.bf16.mxu0 %v7466_v4 }
0x2824   :  { %6576 = vmatpush3.bf16.msra.mxu0 %v7097_v47 }
0x2825   :  { %4596 = vmatprep.subr.bf16.mxu0 (!%p5503_p4), %v7104_v16 }
0x28da   :  { %v4251_v0 = vpop.f32.mrb[0].mxu0 }
0x28db   :  { %v4257_v41 = vadd.f32 %v4251_v0, %v4151_v40  ;;  %v6539_v42 = vpop.f32.mrb[1].mxu0  ;;  %v7478_v0 = vmov (!%p5503_p4), 0  }
0x28dc   :  { %v4254_v43 = vpop.f32.mrb[2].mxu0  ;;  %v7479_v42 = vmov (!%p5503_p4), 1.0|1.0  }
0x28dd   :  { %v4258_v62 = vadd.f32 %v8215_v51, %v4257_v41  ;;  %v6540_v60 = vpop.f32.mrb[3].mxu0 }
0x28df   :  { %v5485_v34 = vmul.f32 -1.442695, %v4258_v62 }
0x28e1   :  { %7098 = vpow2.f32 %v5485_v34 }
0x28eb   :  { %v7099_v44 = vpop.eup %7098 }
0x28ec   :  { %v4262_v3 = vadd.f32 1.0, %v7099_v44 }
0x28ee   :  { %7100 = vrcp.f32 %v4262_v3 }
0x28f8   :  { %v7101_v46 = vpop.eup %7100 }
0x28f9   :  { %v4265_v50 = vmul.f32 %v7101_v46, %v8436_v39  ;;  %v4374_v29 = vsub.f32 1.0, %v7101_v46 }
0x28fb   :  { %v4266_v53 = vpack.c.bf16 %v4265_v50, %v4265_v50  ;;  %v4375_v17 = vmul.f32 %v4374_v29, %v8436_v39 }
0x28fd   :  { %6558 = vmatmul.mubr.bf16.vlgmr.msra.gmra.mrb[0].mxu1 %v4266_v53 }
0x29d0   :  { %v4365_v26 = vpop.f32.mrb[0].mxu1 }
0x29d1   :  { %v4371_v13 = vadd.f32 %v4365_v26, %v4152_v48  ;;  %v6559_v55 = vpop.f32.mrb[1].mxu1 }
0x29d2   :  { %v4368_v58 = vpop.f32.mrb[2].mxu1 }
0x29d3   :  { %v4372_v28 = vadd.f32 %v8226_v1, %v4371_v13  ;;  %v6560_v61 = vpop.f32.mrb[3].mxu1 }
0x29d5   :  { %7102 = vtanh.f32 %v4372_v28 }
0x29df   :  { %v7103_v33 = vpop.eup %7102 }
0x29e0   :  { %v4376_v31 = vmul.f32 %v7103_v33, %v7101_v46 }
0x29e2   :  { %v8486_v18 = vadd.f32 %v4376_v31, %v4375_v17 }
0x29e4   :  { %v8490_v19 = vpack.c.bf16 %v8486_v18, %v8486_v18 }
0x29e6   :  { %6578 = vmatmul.mubr.bf16.vlgmr.msra.gmra.mrb[4].mxu0 %v8490_v19 }
0x29e7   :  { %4597 = vmatpush1.bf16.msra.mxu0 (!%p5503_p4), %v7106_v23  ;;  %4628 = vmatprep.mubr.bf16.mxu0 (!%p5503_p4), %v7478_v0 }
0x29e8   :  { %4598 = vmatprep.subr.bf16.mxu0 (!%p5503_p4), %v7107_v25 }
0x29eb   :  { %4599 = vmatpush1.bf16.msra.mxu0 (!%p5503_p4), %v7109_v5 }
0x29ec   :  { %4600 = vmatprep.subr.bf16.mxu0 (!%p5503_p4), %v7110_v20 }
0x29ef   :  { %4601 = vmatpush1.bf16.msra.mxu0 (!%p5503_p4), %v7112_v21 }
0x29f0   :  { %4602 = vmatprep.subr.bf16.mxu0 (!%p5503_p4), %v7113_v27 }
0x29f3   :  { %4603 = vmatpush1.bf16.msra.mxu0 (!%p5503_p4), %v7115_v30 }
0x29f4   :  { %4604 = vmatprep.subr.bf16.mxu0 (!%p5503_p4), %v7116_v11 }
0x29f7   :  { %4605 = vmatpush1.bf16.msra.mxu0 (!%p5503_p4), %v7118_v35 }
0x29f8   :  { %4606 = vmatprep.subr.bf16.mxu0 (!%p5503_p4), %v7119_v2 }
0x29fb   :  { %4607 = vmatpush1.bf16.msra.mxu0 (!%p5503_p4), %v7121_v37 }
0x29fc   :  { %4608 = vmatprep.subr.bf16.mxu0 (!%p5503_p4), %v7122_v7 }
0x29ff   :  { %4609 = vmatpush1.bf16.msra.mxu0 (!%p5503_p4), %v7124_v38 }
0x2a00   :  { %4610 = vmatprep.subr.bf16.mxu0 (!%p5503_p4), %v7125_v12 }
0x2a03   :  { %4611 = vmatpush1.bf16.msra.mxu0 (!%p5503_p4), %v7127_v15 }
0x2ab6   :  { %4489 = sbr.rel (%p5503_p4) target bundleno = 11444 (0x2cb4), region = 133 }
0x2ab9   :  { %v4477_v32 = vpop.f32.mrb[4].mxu0 }
0x2aba   :  { %v4478_v10 = vadd.f32 %v8241_v52, %v4477_v32  ;;  %v6579_v63 = vpop.f32.mrb[5].mxu0 }
0x2abb   :  { %v4480_v36 = vpop.f32.mrb[6].mxu0 }
0x2abc   :  { %4484 = vst [vmem:[#allocation24 + $0x28] sm:$0xff] %v4478_v10  ;;  %v6580_v14 = vpop.f32.mrb[7].mxu0  ;;  %v4490_v39 = vsel (!%p5503_p4), %vm663_vm0, %v4478_v10, -1e+30 }
0x2abd   :  { %4491 = vmax.xlane.f32.xlu0 %v4490_v39 }
0x2b4a   :  { %v4492_v24 = vpop.xlane.xlu0 %4491 }
0x2b4b   :  { %vm4493_vm3 = vcmp.eq.f32.partialorder %v4490_v39, %v4492_v24 }
0x2b4c   :  { %v4494_v40 = vsel %vm4493_vm3, %v7751_v9, 128.0 }
0x2b4d   :  { %4495 = vmin.xlane.f32.xlu0 %v4494_v40 }
0x2bda   :  { %v4496_v41 = vpop.xlane.xlu0 %4495 }
0x2bdb   :  { %vm4497_vm4 = vcmp.eq.f32.partialorder %v7751_v9, %v4496_v41 }
0x2bdc   :  { %vm5520_vm5 = vmpackc.low %vm4497_vm4, %vm4497_vm4 }
0x2bdd   :  { %5521 = vmatmul.mubr.msk.bf16.vlgmr.msra.gmra.mrb[0].mxu0 %vm5520_vm5, %v7479_v42 }
0x2cb0   :  { %v4630_v43 = vpop.f32.mrb[0].mxu0 }
0x2cb1   :  { %4637 = vst [vmem:[#allocation4] sm:$0xff] %v4630_v43  ;;  %v4632_v62 = vpop.f32.mrb[1].mxu0 }
0x2cb2   :  { %4638 = vst [vmem:[#allocation4 + $0x8] sm:$0xff] %v4632_v62  ;;  %v4634_v60 = vpop.f32.mrb[2].mxu0 }
0x2cb3   :  { %v4635_v34 = vpop.f32.mrb[3].mxu0 }
0x2cb4 PF:  { %6581 = vmatprep.subr.bf16.mxu0 %v7466_v4  ;;  %v7128_v44 = vld [vmem:[#allocation18] sm:$0xff]   ;;  %6597 = vmatprep.mubr.msk.bf16.mxu0 %vm7467_vm1, %v7466_v4  ;;  %v7129_v3 = vld [vmem:[#allocation18 + $0x8] sm:$0xff]   ;;  %v7130_v46 = vld [vmem:[#allocation18 + $0x10] sm:$0xff]   ;;  %s5522_s4 = sld [smem:[#allocation5 + $0x6]]  ;;  %s5548_s22 = sld [smem:[#allocation5 + $0x7]] }
0x2cb5   :  { %6601 = vmatprep.subr.bf16.mxu1 %v7466_v4  ;;  %6617 = vmatprep.mubr.msk.bf16.mxu1 %vm7467_vm1, %v7466_v4  ;;  %v7131_v50 = vld [vmem:[#allocation18 + $0x18] sm:$0xff]   ;;  %v7132_v53 = vld [vmem:[#allocation18 + $0x20] sm:$0xff]   ;;  %v7133_v54 = vld [vmem:[#allocation18 + $0x28] sm:$0xff]  }
0x2cb6   :  { %6582 = vmatpush3.bf16.msra.mxu0 %v7128_v44  ;;  %v7134_v56 = vld [vmem:[#allocation18 + $0x30] sm:$0xff]   ;;  %v7135_v57 = vld [vmem:[#allocation18 + $0x38] sm:$0xff]   ;;  %v7136_v8 = vld [vmem:[#allocation19] sm:$0xff]  }
0x2cb7   :  { %6583 = vmatprep.subr.bf16.mxu0 %v7466_v4  ;;  %6602 = vmatpush3.bf16.msra.mxu1 %v7136_v8  ;;  %v7137_v47 = vld [vmem:[#allocation19 + $0x8] sm:$0xff]   ;;  %v7138_v59 = vld [vmem:[#allocation19 + $0x10] sm:$0xff]   ;;  %v7139_v49 = vld [vmem:[#allocation19 + $0x18] sm:$0xff]  }
0x2cb8   :  { %6603 = vmatprep.subr.bf16.mxu1 %v7466_v4  ;;  %v7140_v45 = vld [vmem:[#allocation19 + $0x20] sm:$0xff]   ;;  %v7141_v22 = vld [vmem:[#allocation19 + $0x28] sm:$0xff]   ;;  %v7142_v48 = vld [vmem:[#allocation19 + $0x30] sm:$0xff]  }
0x2cb9   :  { %v7143_v26 = vld [vmem:[#allocation19 + $0x38] sm:$0xff]   ;;  %v7144_v13 = vld [vmem:[#allocation22] sm:$0xff]   ;;  %v7145_v55 = vld [vmem:[#allocation22 + $0x8] sm:$0xff]  }
0x2cba   :  { %6584 = vmatpush3.bf16.msra.mxu0 %v7129_v3  ;;  %v7146_v58 = vld [vmem:[#allocation22 + $0x10] sm:$0xff]   ;;  %s4640_s20 = scvt.s32.f32 %s5522_s4  ;;  %v4643_v28 = vld [vmem:[#allocation3 + $0x60] sm:$0xff]  ;;  %v7147_v27 = vld [vmem:[#allocation22 + $0x18] sm:$0xff]   ;;  %p5549_p5 = scmp.ne.s32.totalorder %s5548_s22, 0 }
0x2cbb   :  { %6585 = vmatprep.subr.bf16.mxu0 %v7466_v4  ;;  %6604 = vmatpush3.bf16.msra.mxu1 %v7137_v47  ;;  %v4649_v29 = vld [vmem:[#allocation4] sm:$0xff]  ;;  %v7148_v30 = vld [vmem:[#allocation22 + $0x20] sm:$0xff]   ;;  %v7149_v11 = vld [vmem:[#allocation22 + $0x28] sm:$0xff]  }
0x2cbc   :  { %6605 = vmatprep.subr.bf16.mxu1 %v7466_v4  ;;  %s8525_s7 = ssub.f32 1.0, %s4640_s20  ;;  %v4645_v61 = vstv %s4640_s20  ;;  %v7151_v35 = vld [vmem:[#allocation22 + $0x38] sm:$0xff]   ;;  %v4644_v2 = vld [vmem:[#allocation3 + $0x68] sm:$0xff]  ;;  %v7172_v6 = vld [vmem:[#allocation21 + $0x40] ss:$8 sps:$4 sm:$0xff] (!%p5549_p5)  }
0x2cbd   :  { %v4646_v17 = vmul.f32 %v4645_v61, %v4643_v28  ;;  %v4650_v37 = vld [vmem:[#allocation4 + $0x8] sm:$0xff]  ;;  %v4647_v7 = vmul.f32 %v4645_v61, %v4644_v2  ;;  %v7163_v8 = vld [vmem:[#allocation21 + $0x10] ss:$8 sps:$4 sm:$0xff] (!%p5549_p5)   ;;  %v7164_v47 = vld [vmem:[#allocation21 + $0x24] ss:$8 sps:$4 sm:$0xff] (!%p5549_p5)  }
0x2cbe   :  { %6586 = vmatpush3.bf16.msra.mxu0 %v7130_v46  ;;  %v4651_v33 = vstv %s8525_s7 }
0x2cbf   :  { %6587 = vmatprep.subr.bf16.mxu0 %v7466_v4  ;;  %6606 = vmatpush3.bf16.msra.mxu1 %v7138_v59  ;;  %v4652_v31 = vmul.f32 %v4651_v33, %v4649_v29  ;;  %v4653_v38 = vmul.f32 %v4651_v33, %v4650_v37  ;;  %v7167_v59 = vld [vmem:[#allocation21 + $0x34] ss:$8 sps:$4 sm:$0xff] (!%p5549_p5)   ;;  %v7480_v29 = vmov (!%p5549_p5), 0  }
0x2cc0   :  { %6607 = vmatprep.subr.bf16.mxu1 %v7466_v4 }
0x2cc1   :  { %v4655_v12 = vadd.f32 %v4653_v38, %v4647_v7 }
0x2cc2   :  { %6588 = vmatpush3.bf16.msra.mxu0 %v7131_v50 }
0x2cc3   :  { %6589 = vmatprep.subr.bf16.mxu0 %v7466_v4  ;;  %6608 = vmatpush3.bf16.msra.mxu1 %v7139_v49  ;;  %v7169_v49 = vld [vmem:[#allocation21 + $0x30] ss:$8 sps:$4 sm:$0xff] (!%p5549_p5)  }
0x2cc4   :  { %6609 = vmatprep.subr.bf16.mxu1 %v7466_v4 }
0x2cc6   :  { %6590 = vmatpush3.bf16.msra.mxu0 %v7132_v53 }
0x2cc7   :  { %6591 = vmatprep.subr.bf16.mxu0 %v7466_v4  ;;  %6610 = vmatpush3.bf16.msra.mxu1 %v7140_v45  ;;  %v7170_v45 = vld [vmem:[#allocation21 + $0x44] ss:$8 sps:$4 sm:$0xff] (!%p5549_p5)  }
0x2cc8   :  { %6611 = vmatprep.subr.bf16.mxu1 %v7466_v4 }
0x2cca   :  { %6592 = vmatpush3.bf16.msra.mxu0 %v7133_v54 }
0x2ccb   :  { %6593 = vmatprep.subr.bf16.mxu0 %v7466_v4  ;;  %6612 = vmatpush3.bf16.msra.mxu1 %v7141_v22  ;;  %v7173_v22 = vld [vmem:[#allocation21 + $0x54] ss:$8 sps:$4 sm:$0xff] (!%p5549_p5)  }
0x2ccc   :  { %6613 = vmatprep.subr.bf16.mxu1 %v7466_v4 }
0x2cce   :  { %6594 = vmatpush3.bf16.msra.mxu0 %v7134_v56  ;;  %v7158_v56 = vld [vmem:[#allocation21 + $0x4] ss:$8 sps:$4 sm:$0xff] (!%p5549_p5)  }
0x2ccf   :  { %6595 = vmatprep.subr.bf16.mxu0 %v7466_v4  ;;  %6614 = vmatpush3.bf16.msra.mxu1 %v7142_v48  ;;  %v7175_v48 = vld [vmem:[#allocation21 + $0x50] ss:$8 sps:$4 sm:$0xff] (!%p5549_p5)  }
0x2cd0   :  { %6615 = vmatprep.subr.bf16.mxu1 %v7466_v4 }
0x2cd2   :  { %6596 = vmatpush3.bf16.msra.mxu0 %v7135_v57  ;;  %v7161_v57 = vld [vmem:[#allocation21 + $0x14] ss:$8 sps:$4 sm:$0xff] (!%p5549_p5)  }
0x2cd3   :  { %6621 = vmatprep.subr.bf16.mxu0 %v7466_v4  ;;  %6616 = vmatpush3.bf16.msra.mxu1 %v7143_v26  ;;  %v7176_v26 = vld [vmem:[#allocation21 + $0x64] ss:$8 sps:$4 sm:$0xff] (!%p5549_p5)  }
0x2cd5   :  { %6598 = vmatmul.mubr.bf16.vlgmr.msra.gmra.mrb[0].mxu0 %v8490_v19  ;;  %v4654_v19 = vadd.f32 %v4652_v31, %v4646_v17  ;;  %v7481_v17 = vmov (!%p5549_p5), 1.0|1.0  }
0x2cd6   :  { %6637 = vmatprep.mubr.msk.bf16.mxu0 %vm7467_vm1, %v7466_v4  ;;  %6622 = vmatpush3.bf16.msra.mxu0 %v7144_v13  ;;  %v7178_v13 = vld [vmem:[#allocation21 + $0x60] ss:$8 sps:$4 sm:$0xff] (!%p5549_p5)  }
0x2cd7   :  { %6623 = vmatprep.subr.bf16.mxu0 %v7466_v4 }
0x2cda   :  { %6624 = vmatpush3.bf16.msra.mxu0 %v7145_v55  ;;  %v7179_v55 = vld [vmem:[#allocation21 + $0x74] ss:$8 sps:$4 sm:$0xff] (!%p5549_p5)  }
0x2cdb   :  { %6625 = vmatprep.subr.bf16.mxu0 %v7466_v4 }
0x2cde   :  { %6626 = vmatpush3.bf16.msra.mxu0 %v7146_v58  ;;  %v7181_v58 = vld [vmem:[#allocation21 + $0x70] ss:$8 sps:$4 sm:$0xff] (!%p5549_p5)  }
0x2cdf   :  { %6627 = vmatprep.subr.bf16.mxu0 %v7466_v4 }
0x2ce2   :  { %6628 = vmatpush3.bf16.msra.mxu0 %v7147_v27 }
0x2ce3   :  { %6629 = vmatprep.subr.bf16.mxu0 %v7466_v4 }
0x2ce6   :  { %6630 = vmatpush3.bf16.msra.mxu0 %v7148_v30 }
0x2ce7   :  { %6631 = vmatprep.subr.bf16.mxu0 %v7466_v4 }
0x2cea   :  { %6632 = vmatpush3.bf16.msra.mxu0 %v7149_v11 }
0x2ceb   :  { %6633 = vmatprep.subr.bf16.mxu0 %v7466_v4 }
0x2da8   :  { %v4754_v32 = vpop.f32.mrb[0].mxu0 }
0x2da9   :  { %v4760_v10 = vadd.f32 %v4754_v32, %v4654_v19  ;;  %v6599_v63 = vpop.f32.mrb[1].mxu0 }
0x2daa   :  { %v4757_v36 = vpop.f32.mrb[2].mxu0 }
0x2dab   :  { %v4761_v14 = vadd.f32 %v8215_v51, %v4760_v10  ;;  %v6600_v39 = vpop.f32.mrb[3].mxu0  ;;  %v7150_v51 = vld [vmem:[#allocation22 + $0x30] sm:$0xff]  }
0x2dac   :  { %6634 = vmatpush3.bf16.msra.mxu0 %v7150_v51 }
0x2dad   :  { %v5531_v16 = vmul.f32 -1.442695, %v4761_v14  ;;  %6635 = vmatprep.subr.bf16.mxu0 %v7466_v4 }
0x2daf   :  { %7152 = vpow2.f32 %v5531_v16 }
0x2db0   :  { %6636 = vmatpush3.bf16.msra.mxu0 %v7151_v35 }
0x2db1   :  { %5099 = vmatprep.subr.bf16.mxu0 (!%p5549_p5), %v7158_v56 }
0x2db9   :  { %v7153_v23 = vpop.eup %7152 }
0x2dba   :  { %v4765_v25 = vadd.f32 1.0, %v7153_v23 }
0x2dbc   :  { %7154 = vrcp.f32 %v4765_v25 }
0x2dc6   :  { %v7155_v5 = vpop.eup %7154 }
0x2dc7   :  { %v4768_v20 = vmul.f32 %v7155_v5, %v8486_v18  ;;  %v4877_v43 = vsub.f32 1.0, %v7155_v5 }
0x2dc9   :  { %v4769_v21 = vpack.c.bf16 %v4768_v20, %v4768_v20  ;;  %v4878_v60 = vmul.f32 %v4877_v43, %v8486_v18  ;;  %v7160_v18 = vld [vmem:[#allocation21] ss:$8 sps:$4 sm:$0xff] (!%p5549_p5)  }
0x2dcb   :  { %6618 = vmatmul.mubr.bf16.vlgmr.msra.gmra.mrb[0].mxu1 %v4769_v21 }
0x2e9e   :  { %v4868_v15 = vpop.f32.mrb[0].mxu1 }
0x2e9f   :  { %v4874_v24 = vadd.f32 %v4868_v15, %v4655_v12  ;;  %v6619_v40 = vpop.f32.mrb[1].mxu1 }
0x2ea0   :  { %v4871_v0 = vpop.f32.mrb[2].mxu1 }
0x2ea1   :  { %v4875_v41 = vadd.f32 %v8226_v1, %v4874_v24  ;;  %v6620_v42 = vpop.f32.mrb[3].mxu1 }
0x2ea3   :  { %7156 = vtanh.f32 %v4875_v41 }
0x2ead   :  { %v7157_v62 = vpop.eup %7156 }
0x2eae   :  { %v4879_v34 = vmul.f32 %v7157_v62, %v7155_v5 }
0x2eb0   :  { %v4880_v4 = vadd.f32 %v4879_v34, %v4878_v60 }
0x2eb2   :  { %v4881_v44 = vpack.c.bf16 %v4880_v4, %v4880_v4 }
0x2eb4   :  { %6638 = vmatmul.mubr.bf16.vlgmr.msra.gmra.mrb[4].mxu0 %v4881_v44 }
0x2eb5   :  { %5100 = vmatpush1.bf16.msra.mxu0 (!%p5549_p5), %v7160_v18  ;;  %5131 = vmatprep.mubr.bf16.mxu0 (!%p5549_p5), %v7480_v29 }
0x2eb6   :  { %5101 = vmatprep.subr.bf16.mxu0 (!%p5549_p5), %v7161_v57 }
0x2eb9   :  { %5102 = vmatpush1.bf16.msra.mxu0 (!%p5549_p5), %v7163_v8 }
0x2eba   :  { %5103 = vmatprep.subr.bf16.mxu0 (!%p5549_p5), %v7164_v47 }
0x2f84   :  { %4992 = sbr.rel (%p5549_p5) target bundleno = 12674 (0x3182), region = 137 }
0x2f87   :  { %v4980_v3 = vpop.f32.mrb[4].mxu0 }
0x2f88   :  { %v4981_v46 = vadd.f32 %v8241_v52, %v4980_v3  ;;  %v6639_v50 = vpop.f32.mrb[5].mxu0  ;;  %v7166_v52 = vld [vmem:[#allocation21 + $0x20] ss:$8 sps:$4 sm:$0xff] (!%p5549_p5)  }
0x2f89   :  { %v4983_v53 = vpop.f32.mrb[6].mxu0  ;;  %5104 = vmatpush1.bf16.msra.mxu0 (!%p5549_p5), %v7166_v52 }
0x2f8a   :  { %4987 = vst [vmem:[#allocation24 + $0x30] sm:$0xff] %v4981_v46  ;;  %v6640_v54 = vpop.f32.mrb[7].mxu0  ;;  %v4993_v1 = vsel (!%p5549_p5), %vm663_vm0, %v4981_v46, -1e+30  ;;  %5105 = vmatprep.subr.bf16.mxu0 (!%p5549_p5), %v7167_v59 }
0x2f8b   :  { %4994 = vmax.xlane.f32.xlu0 %v4993_v1 }
0x2f8d   :  { %5106 = vmatpush1.bf16.msra.mxu0 %v7169_v49 }
0x2f8e   :  { %5107 = vmatprep.subr.bf16.mxu0 %v7170_v45 }
0x2f91   :  { %5108 = vmatpush1.bf16.msra.mxu0 %v7172_v6 }
0x2f92   :  { %5109 = vmatprep.subr.bf16.mxu0 %v7173_v22 }
0x2f95   :  { %5110 = vmatpush1.bf16.msra.mxu0 %v7175_v48 }
0x2f96   :  { %5111 = vmatprep.subr.bf16.mxu0 %v7176_v26 }
0x2f99   :  { %5112 = vmatpush1.bf16.msra.mxu0 %v7178_v13 }
0x2f9a   :  { %5113 = vmatprep.subr.bf16.mxu0 %v7179_v55 }
0x2f9d   :  { %5114 = vmatpush1.bf16.msra.mxu0 %v7181_v58 }
0x3018   :  { %v4995_v28 = vpop.xlane.xlu0 %4994 }
0x3019   :  { %vm4996_vm0 = vcmp.eq.f32.partialorder %v4993_v1, %v4995_v28 }
0x301a   :  { %v4997_v61 = vsel %vm4996_vm0, %v7751_v9, 128.0 }
0x301b   :  { %4998 = vmin.xlane.f32.xlu0 %v4997_v61 }
0x30a8   :  { %v4999_v33 = vpop.xlane.xlu0 %4998 }
0x30a9   :  { %vm5000_vm1 = vcmp.eq.f32.partialorder %v7751_v9, %v4999_v33 }
0x30aa   :  { %vm5566_vm6 = vmpackc.low %vm5000_vm1, %vm5000_vm1 }
0x30ab   :  { %5567 = vmatmul.mubr.msk.bf16.vlgmr.msra.gmra.mrb[0].mxu0 %vm5566_vm6, %v7481_v17 }
0x317e   :  { %v5133_v31 = vpop.f32.mrb[0].mxu0 }
0x317f   :  { %5140 = vst [vmem:[#allocation4] sm:$0xff] %v5133_v31  ;;  %v5135_v19 = vpop.f32.mrb[1].mxu0 }
0x3180   :  { %5141 = vst [vmem:[#allocation4 + $0x8] sm:$0xff] %v5135_v19  ;;  %v5137_v32 = vpop.f32.mrb[2].mxu0 }
0x3181   :  { %v5138_v10 = vpop.f32.mrb[3].mxu0 }
0x3182 PF:  { %s7482_s11 = smov [#allocation24]  }
0x3183   :  { %s5147_s25 = sshll.u32 %s7482_s11, 4  ;;  %s5148_s25 = int_to_ptr.vmem [resolvable:$true] %s5147_s25 }
0x3184   :  { %s7412_s12 = scalar_lea.vmem %s5148_s25, 896  ;;  %p7417_p7 = scmp.lt.s32.totalorder %s5148_s25, %s5148_s25 }
0x3185   :  { %p7413_p6 = scmp.ne.s32.totalorder %s5148_s25, %s7412_s12  ;;  %p7418_p8 = scmp.lt.s32.totalorder %s7412_s12, %s7412_s12 }
0x3187   :  { %p7419_p9 = por %p7418_p8, %p7417_p7 }
0x3189   :  { %p7420_p10 = pnand %p7419_p9, %p7413_p6 }
0x318b   :  { %7423 = shalt.err (!%p7420_p10)
}
0x318c   :  { %s7424_s15 = scalar_lea.hbm %s8572_s16, 896 }
0x318d   :  { %p7425_p11 = scmp.ne.s32.totalorder %s8572_s16, %s7424_s15  ;;  %p7428_p12 = scmp.lt.u32.totalorder %s7424_s15, %s8572_s16 }
0x318f   :  { %p7430_p13 = pnand %p7428_p12, %p7425_p11 }
0x3191   :  { %7433 = shalt.err (!%p7430_p13)
}
0x3192   :  { %s8579_s29 = smov 128  }
0x3193   :  { %5153 = dma.vmem_to_hbm [thread:$0]  %s5148_s25, 896, %s8572_s16, [#allocation7], %s8579_s29, %s8579_s29, %s7457_s2  }
0x3194   :  { %7448 = dma.done.wait [#allocation7], 896  }
0x3195   :  { %7449 = vsyncadd [#allocation7], 4294966400 }
0x3196   :  { %5157 = vsyncpa [#allocation6], 1 }
0x3197   :  { %5158 = vsyncpa [#allocation11], 1 }
0x3198   :  { %5159 = vsyncpa [#allocation14], 1 }
0x3199   :  { %5160 = vsyncpa [#allocation17], 1 }
0x319a   :  { %5161 = vsyncpa [#allocation20], 1 }
0x319b   :  { %5162 = vsyncpa [#allocation23], 1 }
0x319c   :  { %5163 = vsyncpa [#allocation7], 1 }
0x319d   :  { %5164 = vsyncpa [#allocation8], 1 }

</bundles_post_ra>
